<compile_context>
chip_gen: v5e
topology: v5e:2x2
jax: 0.10.0
libtpu: 0.0.40
codegen_flags: <defaults>
</compile_context>

<pallas_src>
import jax
import jax.numpy as jnp
from jax import lax
from jax.experimental import pallas as pl
from jax.experimental.pallas import tpu as pltpu

K = 7          # kernel size
PAD = 3        # spatial padding
EPS = 1e-6     # BatchNorm eps
LANE = 128     # TPU lane width


def _round_up(x, m):
    return (x + m - 1) // m * m


def _pick_tile_c(c, h, w, hp, wp, budget_bytes=6 * 1024 * 1024):
    """Largest channel tile that (a) divides C, (b) is a multiple of 8 or == C
    (needed so the flattened pass-2 blocks satisfy the (8,128) rule), and
    (c) keeps per-step VMEM (pipelined blocks + compiler temporaries for the
    7 shifted row windows) under budget."""
    per_c = 4 * (2 * hp * w + 2 * h * w + 10 * h * wp + hp * wp)
    cands = [t for t in range(1, c + 1)
             if c % t == 0 and (t == c or t % 8 == 0)]
    fitting = [t for t in cands if t * per_c <= budget_bytes]
    return max(fitting) if fitting else min(cands)


def _conv_stats_kernel(x_ref, w_ref, b_ref, y_ref, st_ref):
    """Pass 1: depthwise 7x7 conv + bias, plus per-(image, channel-tile) BN stats.

    x_ref  : (1, tc, Hp, W)  input, H zero-padded by 3 (W compact in HBM)
    w_ref  : (1, tc, 7, 7)   depthwise taps
    b_ref  : (1, tc, 1, 1)   conv bias
    y_ref  : (1, tc, H, W)   conv output (compact, no lane padding in HBM)
    st_ref : (1, 1, tc, 2)   [..., 0] = sum, [..., 1] = sum of squares
    """
    _, tc, hp, w = x_ref.shape
    h = y_ref.shape[2]
    wp = _round_up(w + 2 * PAD, LANE)

    # Lane-pad to a 128 multiple inside VMEM only (HBM stays compact).
    x = x_ref[0]                                        # (tc, Hp, W)
    xp = jnp.concatenate(
        [jnp.zeros((tc, hp, PAD), jnp.float32),
         x,
         jnp.zeros((tc, hp, wp - w - PAD), jnp.float32)], axis=2)  # (tc, Hp, Wp)

    wgt = w_ref[0]                                      # (tc, 7, 7), loaded once

    # 7 hoisted sublane-shifted row windows (not 49).
    rows = [xp[:, kh:kh + h, :] for kh in range(K)]

    # Factored conv: per kw reduce over kh on input-aligned lanes, then one
    # lane rotation per kw.  Wrapped tail lands in lanes >= w (discarded).
    acc = None
    for kw in range(K):
        s = rows[0] * wgt[:, 0:1, kw:kw + 1]
        for kh in range(1, K):
            s = s + rows[kh] * wgt[:, kh:kh + 1, kw:kw + 1]
        if kw:
            s = jnp.concatenate([s[:, :, kw:], s[:, :, :kw]], axis=2)
        acc = s if acc is None else acc + s
    acc = acc + b_ref[0]                                # (tc,1,1) broadcast

    y = acc[:, :, :w]                                   # valid lanes only
    y_ref[0] = y                                        # compact intermediate

    # Partial BN stats (single traversal: sum + sum-of-squares).
    s1 = jnp.sum(jnp.sum(y, axis=2, keepdims=True), axis=1, keepdims=True)
    s2 = jnp.sum(jnp.sum(y * y, axis=2, keepdims=True), axis=1, keepdims=True)
    st = jnp.concatenate([s1, s2], axis=2).reshape(tc, 2)
    st_ref[...] = st[None, None, :, :]


def _bn_apply_kernel(y_ref, sc_ref, sh_ref, o_ref):
    """Pass 2: y * scale + shift on lane-dense flattened (tc, H*W) blocks."""
    o_ref[...] = y_ref[...] * sc_ref[...] + sh_ref[...]


def repara_unit(x_nchw, w_oihw, bias, gamma, beta):
    """x_nchw: (N, C, H, W) float32.  Returns (N, C, H, W) float32."""
    n, c, h, w = x_nchw.shape
    hp = h + 2 * PAD
    wp = _round_up(w + 2 * PAD, LANE)

    x = x_nchw.astype(jnp.float32)
    # H-only zero pad (~1.4x data); W/lane padding is done in VMEM in pass 1.
    xh = jnp.pad(x, ((0, 0), (0, 0), (PAD, PAD), (0, 0)))

    w4 = w_oihw[:, 0, :, :][None].astype(jnp.float32)          # (1, C, 7, 7)
    b4 = bias.reshape(1, c, 1, 1).astype(jnp.float32)

    tc = _pick_tile_c(c, h, w, hp, wp)
    nct = c // tc
    grid = (n, nct)
    cparams = pltpu.CompilerParams(
        dimension_semantics=("parallel", "parallel"),
        vmem_limit_bytes=32 * 1024 * 1024)

    y, stats = pl.pallas_call(
        _conv_stats_kernel,
        out_shape=(
            jax.ShapeDtypeStruct((n, c, h, w), jnp.float32),
            jax.ShapeDtypeStruct((n, nct, tc, 2), jnp.float32),
        ),
        grid=grid,
        in_specs=[
            pl.BlockSpec((1, tc, hp, w), lambda i, j: (i, j, 0, 0)),
            pl.BlockSpec((1, tc, K, K), lambda i, j: (0, j, 0, 0)),
            pl.BlockSpec((1, tc, 1, 1), lambda i, j: (0, j, 0, 0)),
        ],
        out_specs=(
            pl.BlockSpec((1, tc, h, w), lambda i, j: (i, j, 0, 0)),
            pl.BlockSpec((1, 1, tc, 2), lambda i, j: (i, j, 0, 0)),
        ),
        compiler_params=cparams,
    )(xh, w4, b4)

    # Fold training-mode BN (biased batch variance) into per-channel scale/shift.
    count = float(n * h * w)
    tot = jnp.sum(stats, axis=0).reshape(c, 2)
    mean = tot[:, 0] / count
    var = jnp.maximum(tot[:, 1] / count - mean * mean, 0.0)
    inv = lax.rsqrt(var + EPS)
    scale = gamma.astype(jnp.float32) * inv
    shift = beta.astype(jnp.float32) - mean * scale

    # Flattened (lane-dense) views for the elementwise BN apply; reshapes are
    # free metadata ops in XLA (contiguous layout).
    hw = h * w
    y2 = y.reshape(n, c, hw)
    sc3 = scale.reshape(1, c, 1)
    sh3 = shift.reshape(1, c, 1)

    out2 = pl.pallas_call(
        _bn_apply_kernel,
        out_shape=jax.ShapeDtypeStruct((n, c, hw), jnp.float32),
        grid=grid,
        in_specs=[
            pl.BlockSpec((1, tc, hw), lambda i, j: (i, j, 0)),
            pl.BlockSpec((1, tc, 1), lambda i, j: (0, j, 0)),
            pl.BlockSpec((1, tc, 1), lambda i, j: (0, j, 0)),
        ],
        out_specs=pl.BlockSpec((1, tc, hw), lambda i, j: (i, j, 0)),
        compiler_params=cparams,
    )(y2, sc3, sh3)
    return out2.reshape(n, c, h, w)


def ref_forward(x_nchw, w_oihw, bias, gamma, beta):
    """Pure-JAX reference (matches PyTorch training-mode forward)."""
    c = x_nchw.shape[1]
    y = lax.conv_general_dilated(
        x_nchw, w_oihw, window_strides=(1, 1),
        padding=[(PAD, PAD), (PAD, PAD)],
        dimension_numbers=("NCHW", "OIHW", "NCHW"),
        feature_group_count=c)
    y = y + bias[None, :, None, None]
    mean = jnp.mean(y, axis=(0, 2, 3), keepdims=True)
    var = jnp.mean((y - mean) ** 2, axis=(0, 2, 3), keepdims=True)
    return ((y - mean) * lax.rsqrt(var + EPS)
            * gamma[None, :, None, None] + beta[None, :, None, None])


if __name__ == "__main__":
    key = jax.random.PRNGKey(0)
    k_x, k_w, k_b, k_g, k_be = jax.random.split(key, 5)

    N, C, H, W = 2, 4, 16, 16
    x = jax.random.normal(k_x, (N, C, H, W), jnp.float32)

    # Shapes match nn.Conv2d(dim, dim, 7, padding=3, groups=dim) + BatchNorm2d(dim).
    w_oihw = jax.random.normal(k_w, (C, 1, K, K), jnp.float32) * 0.1
    bias = jax.random.normal(k_b, (C,), jnp.float32) * 0.1
    gamma = 1.0 + 0.1 * jax.random.normal(k_g, (C,), jnp.float32)
    beta = 0.1 * jax.random.normal(k_be, (C,), jnp.float32)

    fwd = jax.jit(repara_unit)
    out = jax.block_until_ready(fwd(x, w_oihw, bias, gamma, beta))

    ref = jax.block_until_ready(ref_forward(x, w_oihw, bias, gamma, beta))
    assert out.shape == (N, C, H, W)
    max_err = float(jnp.max(jnp.abs(out - ref)))
    assert max_err < 2e-4, f"max abs err = {max_err}"

    print("KERNEL_OK")
</pallas_src>

<mosaic_0001>
module attributes {stable_mosaic.version = 11 : i64} {
  func.func @_bn_apply_kernel(%arg0: i32, %arg1: i32, %arg2: memref<1x4x256xf32, #tpu.memory_space<vmem>>, %arg3: memref<1x4x1xf32, #tpu.memory_space<vmem>>, %arg4: memref<1x4x1xf32, #tpu.memory_space<vmem>>, %arg5: memref<1x4x256xf32, #tpu.memory_space<vmem>>) attributes {dimension_semantics = [#tpu.dimension_semantics<parallel>, #tpu.dimension_semantics<parallel>], iteration_bounds = array<i64: 2, 1>, scalar_prefetch = 0 : i64, scratch_operands = 0 : i64, tpu.core_type = #tpu.core_type<tc>, window_params = [{transform_indices = @transform_0, window_bounds = array<i64: 1, 4, 256>}, {transform_indices = @transform_1, window_bounds = array<i64: 1, 4, 1>}, {transform_indices = @transform_2, window_bounds = array<i64: 1, 4, 1>}, {transform_indices = @transform_3, window_bounds = array<i64: 1, 4, 256>}]} {
    %c0 = arith.constant 0 : index
    %c0_0 = arith.constant 0 : index
    %c0_1 = arith.constant 0 : index
    %0 = vector.load %arg2[%c0, %c0_0, %c0_1] : memref<1x4x256xf32, #tpu.memory_space<vmem>>, vector<1x4x256xf32>
    %c0_2 = arith.constant 0 : index
    %c0_3 = arith.constant 0 : index
    %c0_4 = arith.constant 0 : index
    %1 = vector.load %arg3[%c0_2, %c0_3, %c0_4] : memref<1x4x1xf32, #tpu.memory_space<vmem>>, vector<1x4x1xf32>
    %2 = vector.broadcast %1 : vector<1x4x1xf32> to vector<1x4x256xf32>
    %3 = arith.mulf %0, %2 : vector<1x4x256xf32>
    %c0_5 = arith.constant 0 : index
    %c0_6 = arith.constant 0 : index
    %c0_7 = arith.constant 0 : index
    %4 = vector.load %arg4[%c0_5, %c0_6, %c0_7] : memref<1x4x1xf32, #tpu.memory_space<vmem>>, vector<1x4x1xf32>
    %5 = vector.broadcast %4 : vector<1x4x1xf32> to vector<1x4x256xf32>
    %6 = arith.addf %3, %5 : vector<1x4x256xf32>
    %c0_8 = arith.constant 0 : index
    %c0_9 = arith.constant 0 : index
    %c0_10 = arith.constant 0 : index
    %7 = vector.load %arg5[%c0_8, %c0_9, %c0_10] : memref<1x4x256xf32, #tpu.memory_space<vmem>>, vector<1x4x256xf32>
    tpu.vector_store %arg5[%c0_8, %c0_9, %c0_10], %6 {strides = array<i32>} : memref<1x4x256xf32, #tpu.memory_space<vmem>>, vector<1x4x256xf32>,
    return
  }
  func.func @transform_0(%arg0: i32, %arg1: i32) -> (i32, i32, i32) {
    %c0_i32 = arith.constant 0 : i32
    %c0_i32_0 = arith.constant 0 : i32
    return %arg0, %arg1, %c0_i32 : i32, i32, i32
  }
  func.func @transform_1(%arg0: i32, %arg1: i32) -> (i32, i32, i32) {
    %c0_i32 = arith.constant 0 : i32
    %c0_i32_0 = arith.constant 0 : i32
    %c0_i32_1 = arith.constant 0 : i32
    return %c0_i32, %arg1, %c0_i32_0 : i32, i32, i32
  }
  func.func @transform_2(%arg0: i32, %arg1: i32) -> (i32, i32, i32) {
    %c0_i32 = arith.constant 0 : i32
    %c0_i32_0 = arith.constant 0 : i32
    %c0_i32_1 = arith.constant 0 : i32
    return %c0_i32, %arg1, %c0_i32_0 : i32, i32, i32
  }
  func.func @transform_3(%arg0: i32, %arg1: i32) -> (i32, i32, i32) {
    %c0_i32 = arith.constant 0 : i32
    %c0_i32_0 = arith.constant 0 : i32
    return %arg0, %arg1, %c0_i32 : i32, i32, i32
  }
}

module attributes {stable_mosaic.version = 11 : i64} {
  func.func @_conv_stats_kernel(%arg0: i32, %arg1: i32, %arg2: memref<1x4x22x16xf32, #tpu.memory_space<vmem>>, %arg3: memref<1x4x7x7xf32, #tpu.memory_space<vmem>>, %arg4: memref<1x4x1x1xf32, #tpu.memory_space<vmem>>, %arg5: memref<1x4x16x16xf32, #tpu.memory_space<vmem>>, %arg6: memref<1x1x4x2xf32, #tpu.memory_space<vmem>>) attributes {dimension_semantics = [#tpu.dimension_semantics<parallel>, #tpu.dimension_semantics<parallel>], iteration_bounds = array<i64: 2, 1>, scalar_prefetch = 0 : i64, scratch_operands = 0 : i64, tpu.core_type = #tpu.core_type<tc>, window_params = [{transform_indices = @transform_0, window_bounds = array<i64: 1, 4, 22, 16>}, {transform_indices = @transform_1, window_bounds = array<i64: 1, 4, 7, 7>}, {transform_indices = @transform_2, window_bounds = array<i64: 1, 4, 1, 1>}, {transform_indices = @transform_3, window_bounds = array<i64: 1, 4, 16, 16>}, {transform_indices = @transform_4, window_bounds = array<i64: 1, 1, 4, 2>}]} {
    %c0 = arith.constant 0 : index
    %c0_0 = arith.constant 0 : index
    %c0_1 = arith.constant 0 : index
    %c0_2 = arith.constant 0 : index
    %0 = vector.load %arg2[%c0, %c0_0, %c0_1, %c0_2] : memref<1x4x22x16xf32, #tpu.memory_space<vmem>>, vector<1x4x22x16xf32>
    %1 = vector.shape_cast %0 : vector<1x4x22x16xf32> to vector<4x22x16xf32>
    %cst = arith.constant 0.000000e+00 : f32
    %2 = vector.broadcast %cst : f32 to vector<4x22x3xf32>
    %cst_3 = arith.constant 0.000000e+00 : f32
    %3 = vector.broadcast %cst_3 : f32 to vector<4x22x109xf32>
    %4 = tpu.concatenate %2, %1, %3 in 2 : vector<4x22x3xf32>, vector<4x22x16xf32>, vector<4x22x109xf32> -> vector<4x22x128xf32>
    %c0_4 = arith.constant 0 : index
    %c0_5 = arith.constant 0 : index
    %c0_6 = arith.constant 0 : index
    %c0_7 = arith.constant 0 : index
    %5 = vector.load %arg3[%c0_4, %c0_5, %c0_6, %c0_7] : memref<1x4x7x7xf32, #tpu.memory_space<vmem>>, vector<1x4x7x7xf32>
    %6 = vector.shape_cast %5 : vector<1x4x7x7xf32> to vector<4x7x7xf32>
    %7 = vector.extract_strided_slice %4 {offsets = [0, 0, 0], sizes = [4, 16, 128], strides = [1, 1, 1]} : vector<4x22x128xf32> to vector<4x16x128xf32>
    %8 = vector.extract_strided_slice %4 {offsets = [0, 1, 0], sizes = [4, 16, 128], strides = [1, 1, 1]} : vector<4x22x128xf32> to vector<4x16x128xf32>
    %9 = vector.extract_strided_slice %4 {offsets = [0, 2, 0], sizes = [4, 16, 128], strides = [1, 1, 1]} : vector<4x22x128xf32> to vector<4x16x128xf32>
    %10 = vector.extract_strided_slice %4 {offsets = [0, 3, 0], sizes = [4, 16, 128], strides = [1, 1, 1]} : vector<4x22x128xf32> to vector<4x16x128xf32>
    %11 = vector.extract_strided_slice %4 {offsets = [0, 4, 0], sizes = [4, 16, 128], strides = [1, 1, 1]} : vector<4x22x128xf32> to vector<4x16x128xf32>
    %12 = vector.extract_strided_slice %4 {offsets = [0, 5, 0], sizes = [4, 16, 128], strides = [1, 1, 1]} : vector<4x22x128xf32> to vector<4x16x128xf32>
    %13 = vector.extract_strided_slice %4 {offsets = [0, 6, 0], sizes = [4, 16, 128], strides = [1, 1, 1]} : vector<4x22x128xf32> to vector<4x16x128xf32>
    %14 = vector.extract_strided_slice %6 {offsets = [0, 0, 0], sizes = [4, 1, 1], strides = [1, 1, 1]} : vector<4x7x7xf32> to vector<4x1x1xf32>
    %15 = vector.broadcast %14 : vector<4x1x1xf32> to vector<4x16x128xf32>
    %16 = arith.mulf %7, %15 : vector<4x16x128xf32>
    %17 = vector.extract_strided_slice %6 {offsets = [0, 1, 0], sizes = [4, 1, 1], strides = [1, 1, 1]} : vector<4x7x7xf32> to vector<4x1x1xf32>
    %18 = vector.broadcast %17 : vector<4x1x1xf32> to vector<4x16x128xf32>
    %19 = arith.mulf %8, %18 : vector<4x16x128xf32>
    %20 = arith.addf %16, %19 : vector<4x16x128xf32>
    %21 = vector.extract_strided_slice %6 {offsets = [0, 2, 0], sizes = [4, 1, 1], strides = [1, 1, 1]} : vector<4x7x7xf32> to vector<4x1x1xf32>
    %22 = vector.broadcast %21 : vector<4x1x1xf32> to vector<4x16x128xf32>
    %23 = arith.mulf %9, %22 : vector<4x16x128xf32>
    %24 = arith.addf %20, %23 : vector<4x16x128xf32>
    %25 = vector.extract_strided_slice %6 {offsets = [0, 3, 0], sizes = [4, 1, 1], strides = [1, 1, 1]} : vector<4x7x7xf32> to vector<4x1x1xf32>
    %26 = vector.broadcast %25 : vector<4x1x1xf32> to vector<4x16x128xf32>
    %27 = arith.mulf %10, %26 : vector<4x16x128xf32>
    %28 = arith.addf %24, %27 : vector<4x16x128xf32>
    %29 = vector.extract_strided_slice %6 {offsets = [0, 4, 0], sizes = [4, 1, 1], strides = [1, 1, 1]} : vector<4x7x7xf32> to vector<4x1x1xf32>
    %30 = vector.broadcast %29 : vector<4x1x1xf32> to vector<4x16x128xf32>
    %31 = arith.mulf %11, %30 : vector<4x16x128xf32>
    %32 = arith.addf %28, %31 : vector<4x16x128xf32>
    %33 = vector.extract_strided_slice %6 {offsets = [0, 5, 0], sizes = [4, 1, 1], strides = [1, 1, 1]} : vector<4x7x7xf32> to vector<4x1x1xf32>
    %34 = vector.broadcast %33 : vector<4x1x1xf32> to vector<4x16x128xf32>
    %35 = arith.mulf %12, %34 : vector<4x16x128xf32>
    %36 = arith.addf %32, %35 : vector<4x16x128xf32>
    %37 = vector.extract_strided_slice %6 {offsets = [0, 6, 0], sizes = [4, 1, 1], strides = [1, 1, 1]} : vector<4x7x7xf32> to vector<4x1x1xf32>
    %38 = vector.broadcast %37 : vector<4x1x1xf32> to vector<4x16x128xf32>
    %39 = arith.mulf %13, %38 : vector<4x16x128xf32>
    %40 = arith.addf %36, %39 : vector<4x16x128xf32>
    %41 = vector.extract_strided_slice %6 {offsets = [0, 0, 1], sizes = [4, 1, 1], strides = [1, 1, 1]} : vector<4x7x7xf32> to vector<4x1x1xf32>
    %42 = vector.broadcast %41 : vector<4x1x1xf32> to vector<4x16x128xf32>
    %43 = arith.mulf %7, %42 : vector<4x16x128xf32>
    %44 = vector.extract_strided_slice %6 {offsets = [0, 1, 1], sizes = [4, 1, 1], strides = [1, 1, 1]} : vector<4x7x7xf32> to vector<4x1x1xf32>
    %45 = vector.broadcast %44 : vector<4x1x1xf32> to vector<4x16x128xf32>
    %46 = arith.mulf %8, %45 : vector<4x16x128xf32>
    %47 = arith.addf %43, %46 : vector<4x16x128xf32>
    %48 = vector.extract_strided_slice %6 {offsets = [0, 2, 1], sizes = [4, 1, 1], strides = [1, 1, 1]} : vector<4x7x7xf32> to vector<4x1x1xf32>
    %49 = vector.broadcast %48 : vector<4x1x1xf32> to vector<4x16x128xf32>
    %50 = arith.mulf %9, %49 : vector<4x16x128xf32>
    %51 = arith.addf %47, %50 : vector<4x16x128xf32>
    %52 = vector.extract_strided_slice %6 {offsets = [0, 3, 1], sizes = [4, 1, 1], strides = [1, 1, 1]} : vector<4x7x7xf32> to vector<4x1x1xf32>
    %53 = vector.broadcast %52 : vector<4x1x1xf32> to vector<4x16x128xf32>
    %54 = arith.mulf %10, %53 : vector<4x16x128xf32>
    %55 = arith.addf %51, %54 : vector<4x16x128xf32>
    %56 = vector.extract_strided_slice %6 {offsets = [0, 4, 1], sizes = [4, 1, 1], strides = [1, 1, 1]} : vector<4x7x7xf32> to vector<4x1x1xf32>
    %57 = vector.broadcast %56 : vector<4x1x1xf32> to vector<4x16x128xf32>
    %58 = arith.mulf %11, %57 : vector<4x16x128xf32>
    %59 = arith.addf %55, %58 : vector<4x16x128xf32>
    %60 = vector.extract_strided_slice %6 {offsets = [0, 5, 1], sizes = [4, 1, 1], strides = [1, 1, 1]} : vector<4x7x7xf32> to vector<4x1x1xf32>
    %61 = vector.broadcast %60 : vector<4x1x1xf32> to vector<4x16x128xf32>
    %62 = arith.mulf %12, %61 : vector<4x16x128xf32>
    %63 = arith.addf %59, %62 : vector<4x16x128xf32>
    %64 = vector.extract_strided_slice %6 {offsets = [0, 6, 1], sizes = [4, 1, 1], strides = [1, 1, 1]} : vector<4x7x7xf32> to vector<4x1x1xf32>
    %65 = vector.broadcast %64 : vector<4x1x1xf32> to vector<4x16x128xf32>
    %66 = arith.mulf %13, %65 : vector<4x16x128xf32>
    %67 = arith.addf %63, %66 : vector<4x16x128xf32>
    %68 = vector.extract_strided_slice %67 {offsets = [0, 0, 1], sizes = [4, 16, 127], strides = [1, 1, 1]} : vector<4x16x128xf32> to vector<4x16x127xf32>
    %69 = vector.extract_strided_slice %67 {offsets = [0, 0, 0], sizes = [4, 16, 1], strides = [1, 1, 1]} : vector<4x16x128xf32> to vector<4x16x1xf32>
    %70 = tpu.concatenate %68, %69 in 2 : vector<4x16x127xf32>, vector<4x16x1xf32> -> vector<4x16x128xf32>
    %71 = arith.addf %40, %70 : vector<4x16x128xf32>
    %72 = vector.extract_strided_slice %6 {offsets = [0, 0, 2], sizes = [4, 1, 1], strides = [1, 1, 1]} : vector<4x7x7xf32> to vector<4x1x1xf32>
    %73 = vector.broadcast %72 : vector<4x1x1xf32> to vector<4x16x128xf32>
    %74 = arith.mulf %7, %73 : vector<4x16x128xf32>
    %75 = vector.extract_strided_slice %6 {offsets = [0, 1, 2], sizes = [4, 1, 1], strides = [1, 1, 1]} : vector<4x7x7xf32> to vector<4x1x1xf32>
    %76 = vector.broadcast %75 : vector<4x1x1xf32> to vector<4x16x128xf32>
    %77 = arith.mulf %8, %76 : vector<4x16x128xf32>
    %78 = arith.addf %74, %77 : vector<4x16x128xf32>
    %79 = vector.extract_strided_slice %6 {offsets = [0, 2, 2], sizes = [4, 1, 1], strides = [1, 1, 1]} : vector<4x7x7xf32> to vector<4x1x1xf32>
    %80 = vector.broadcast %79 : vector<4x1x1xf32> to vector<4x16x128xf32>
    %81 = arith.mulf %9, %80 : vector<4x16x128xf32>
    %82 = arith.addf %78, %81 : vector<4x16x128xf32>
    %83 = vector.extract_strided_slice %6 {offsets = [0, 3, 2], sizes = [4, 1, 1], strides = [1, 1, 1]} : vector<4x7x7xf32> to vector<4x1x1xf32>
    %84 = vector.broadcast %83 : vector<4x1x1xf32> to vector<4x16x128xf32>
    %85 = arith.mulf %10, %84 : vector<4x16x128xf32>
    %86 = arith.addf %82, %85 : vector<4x16x128xf32>
    %87 = vector.extract_strided_slice %6 {offsets = [0, 4, 2], sizes = [4, 1, 1], strides = [1, 1, 1]} : vector<4x7x7xf32> to vector<4x1x1xf32>
    %88 = vector.broadcast %87 : vector<4x1x1xf32> to vector<4x16x128xf32>
    %89 = arith.mulf %11, %88 : vector<4x16x128xf32>
    %90 = arith.addf %86, %89 : vector<4x16x128xf32>
    %91 = vector.extract_strided_slice %6 {offsets = [0, 5, 2], sizes = [4, 1, 1], strides = [1, 1, 1]} : vector<4x7x7xf32> to vector<4x1x1xf32>
    %92 = vector.broadcast %91 : vector<4x1x1xf32> to vector<4x16x128xf32>
    %93 = arith.mulf %12, %92 : vector<4x16x128xf32>
    %94 = arith.addf %90, %93 : vector<4x16x128xf32>
    %95 = vector.extract_strided_slice %6 {offsets = [0, 6, 2], sizes = [4, 1, 1], strides = [1, 1, 1]} : vector<4x7x7xf32> to vector<4x1x1xf32>
    %96 = vector.broadcast %95 : vector<4x1x1xf32> to vector<4x16x128xf32>
    %97 = arith.mulf %13, %96 : vector<4x16x128xf32>
    %98 = arith.addf %94, %97 : vector<4x16x128xf32>
    %99 = vector.extract_strided_slice %98 {offsets = [0, 0, 2], sizes = [4, 16, 126], strides = [1, 1, 1]} : vector<4x16x128xf32> to vector<4x16x126xf32>
    %100 = vector.extract_strided_slice %98 {offsets = [0, 0, 0], sizes = [4, 16, 2], strides = [1, 1, 1]} : vector<4x16x128xf32> to vector<4x16x2xf32>
    %101 = tpu.concatenate %99, %100 in 2 : vector<4x16x126xf32>, vector<4x16x2xf32> -> vector<4x16x128xf32>
    %102 = arith.addf %71, %101 : vector<4x16x128xf32>
    %103 = vector.extract_strided_slice %6 {offsets = [0, 0, 3], sizes = [4, 1, 1], strides = [1, 1, 1]} : vector<4x7x7xf32> to vector<4x1x1xf32>
    %104 = vector.broadcast %103 : vector<4x1x1xf32> to vector<4x16x128xf32>
    %105 = arith.mulf %7, %104 : vector<4x16x128xf32>
    %106 = vector.extract_strided_slice %6 {offsets = [0, 1, 3], sizes = [4, 1, 1], strides = [1, 1, 1]} : vector<4x7x7xf32> to vector<4x1x1xf32>
    %107 = vector.broadcast %106 : vector<4x1x1xf32> to vector<4x16x128xf32>
    %108 = arith.mulf %8, %107 : vector<4x16x128xf32>
    %109 = arith.addf %105, %108 : vector<4x16x128xf32>
    %110 = vector.extract_strided_slice %6 {offsets = [0, 2, 3], sizes = [4, 1, 1], strides = [1, 1, 1]} : vector<4x7x7xf32> to vector<4x1x1xf32>
    %111 = vector.broadcast %110 : vector<4x1x1xf32> to vector<4x16x128xf32>
    %112 = arith.mulf %9, %111 : vector<4x16x128xf32>
    %113 = arith.addf %109, %112 : vector<4x16x128xf32>
    %114 = vector.extract_strided_slice %6 {offsets = [0, 3, 3], sizes = [4, 1, 1], strides = [1, 1, 1]} : vector<4x7x7xf32> to vector<4x1x1xf32>
    %115 = vector.broadcast %114 : vector<4x1x1xf32> to vector<4x16x128xf32>
    %116 = arith.mulf %10, %115 : vector<4x16x128xf32>
    %117 = arith.addf %113, %116 : vector<4x16x128xf32>
    %118 = vector.extract_strided_slice %6 {offsets = [0, 4, 3], sizes = [4, 1, 1], strides = [1, 1, 1]} : vector<4x7x7xf32> to vector<4x1x1xf32>
    %119 = vector.broadcast %118 : vector<4x1x1xf32> to vector<4x16x128xf32>
    %120 = arith.mulf %11, %119 : vector<4x16x128xf32>
    %121 = arith.addf %117, %120 : vector<4x16x128xf32>
    %122 = vector.extract_strided_slice %6 {offsets = [0, 5, 3], sizes = [4, 1, 1], strides = [1, 1, 1]} : vector<4x7x7xf32> to vector<4x1x1xf32>
    %123 = vector.broadcast %122 : vector<4x1x1xf32> to vector<4x16x128xf32>
    %124 = arith.mulf %12, %123 : vector<4x16x128xf32>
    %125 = arith.addf %121, %124 : vector<4x16x128xf32>
    %126 = vector.extract_strided_slice %6 {offsets = [0, 6, 3], sizes = [4, 1, 1], strides = [1, 1, 1]} : vector<4x7x7xf32> to vector<4x1x1xf32>
    %127 = vector.broadcast %126 : vector<4x1x1xf32> to vector<4x16x128xf32>
    %128 = arith.mulf %13, %127 : vector<4x16x128xf32>
    %129 = arith.addf %125, %128 : vector<4x16x128xf32>
    %130 = vector.extract_strided_slice %129 {offsets = [0, 0, 3], sizes = [4, 16, 125], strides = [1, 1, 1]} : vector<4x16x128xf32> to vector<4x16x125xf32>
    %131 = vector.extract_strided_slice %129 {offsets = [0, 0, 0], sizes = [4, 16, 3], strides = [1, 1, 1]} : vector<4x16x128xf32> to vector<4x16x3xf32>
    %132 = tpu.concatenate %130, %131 in 2 : vector<4x16x125xf32>, vector<4x16x3xf32> -> vector<4x16x128xf32>
    %133 = arith.addf %102, %132 : vector<4x16x128xf32>
    %134 = vector.extract_strided_slice %6 {offsets = [0, 0, 4], sizes = [4, 1, 1], strides = [1, 1, 1]} : vector<4x7x7xf32> to vector<4x1x1xf32>
    %135 = vector.broadcast %134 : vector<4x1x1xf32> to vector<4x16x128xf32>
    %136 = arith.mulf %7, %135 : vector<4x16x128xf32>
    %137 = vector.extract_strided_slice %6 {offsets = [0, 1, 4], sizes = [4, 1, 1], strides = [1, 1, 1]} : vector<4x7x7xf32> to vector<4x1x1xf32>
    %138 = vector.broadcast %137 : vector<4x1x1xf32> to vector<4x16x128xf32>
    %139 = arith.mulf %8, %138 : vector<4x16x128xf32>
    %140 = arith.addf %136, %139 : vector<4x16x128xf32>
    %141 = vector.extract_strided_slice %6 {offsets = [0, 2, 4], sizes = [4, 1, 1], strides = [1, 1, 1]} : vector<4x7x7xf32> to vector<4x1x1xf32>
    %142 = vector.broadcast %141 : vector<4x1x1xf32> to vector<4x16x128xf32>
    %143 = arith.mulf %9, %142 : vector<4x16x128xf32>
    %144 = arith.addf %140, %143 : vector<4x16x128xf32>
    %145 = vector.extract_strided_slice %6 {offsets = [0, 3, 4], sizes = [4, 1, 1], strides = [1, 1, 1]} : vector<4x7x7xf32> to vector<4x1x1xf32>
    %146 = vector.broadcast %145 : vector<4x1x1xf32> to vector<4x16x128xf32>
    %147 = arith.mulf %10, %146 : vector<4x16x128xf32>
    %148 = arith.addf %144, %147 : vector<4x16x128xf32>
    %149 = vector.extract_strided_slice %6 {offsets = [0, 4, 4], sizes = [4, 1, 1], strides = [1, 1, 1]} : vector<4x7x7xf32> to vector<4x1x1xf32>
    %150 = vector.broadcast %149 : vector<4x1x1xf32> to vector<4x16x128xf32>
    %151 = arith.mulf %11, %150 : vector<4x16x128xf32>
    %152 = arith.addf %148, %151 : vector<4x16x128xf32>
    %153 = vector.extract_strided_slice %6 {offsets = [0, 5, 4], sizes = [4, 1, 1], strides = [1, 1, 1]} : vector<4x7x7xf32> to vector<4x1x1xf32>
    %154 = vector.broadcast %153 : vector<4x1x1xf32> to vector<4x16x128xf32>
    %155 = arith.mulf %12, %154 : vector<4x16x128xf32>
    %156 = arith.addf %152, %155 : vector<4x16x128xf32>
    %157 = vector.extract_strided_slice %6 {offsets = [0, 6, 4], sizes = [4, 1, 1], strides = [1, 1, 1]} : vector<4x7x7xf32> to vector<4x1x1xf32>
    %158 = vector.broadcast %157 : vector<4x1x1xf32> to vector<4x16x128xf32>
    %159 = arith.mulf %13, %158 : vector<4x16x128xf32>
    %160 = arith.addf %156, %159 : vector<4x16x128xf32>
    %161 = vector.extract_strided_slice %160 {offsets = [0, 0, 4], sizes = [4, 16, 124], strides = [1, 1, 1]} : vector<4x16x128xf32> to vector<4x16x124xf32>
    %162 = vector.extract_strided_slice %160 {offsets = [0, 0, 0], sizes = [4, 16, 4], strides = [1, 1, 1]} : vector<4x16x128xf32> to vector<4x16x4xf32>
    %163 = tpu.concatenate %161, %162 in 2 : vector<4x16x124xf32>, vector<4x16x4xf32> -> vector<4x16x128xf32>
    %164 = arith.addf %133, %163 : vector<4x16x128xf32>
    %165 = vector.extract_strided_slice %6 {offsets = [0, 0, 5], sizes = [4, 1, 1], strides = [1, 1, 1]} : vector<4x7x7xf32> to vector<4x1x1xf32>
    %166 = vector.broadcast %165 : vector<4x1x1xf32> to vector<4x16x128xf32>
    %167 = arith.mulf %7, %166 : vector<4x16x128xf32>
    %168 = vector.extract_strided_slice %6 {offsets = [0, 1, 5], sizes = [4, 1, 1], strides = [1, 1, 1]} : vector<4x7x7xf32> to vector<4x1x1xf32>
    %169 = vector.broadcast %168 : vector<4x1x1xf32> to vector<4x16x128xf32>
    %170 = arith.mulf %8, %169 : vector<4x16x128xf32>
    %171 = arith.addf %167, %170 : vector<4x16x128xf32>
    %172 = vector.extract_strided_slice %6 {offsets = [0, 2, 5], sizes = [4, 1, 1], strides = [1, 1, 1]} : vector<4x7x7xf32> to vector<4x1x1xf32>
    %173 = vector.broadcast %172 : vector<4x1x1xf32> to vector<4x16x128xf32>
    %174 = arith.mulf %9, %173 : vector<4x16x128xf32>
    %175 = arith.addf %171, %174 : vector<4x16x128xf32>
    %176 = vector.extract_strided_slice %6 {offsets = [0, 3, 5], sizes = [4, 1, 1], strides = [1, 1, 1]} : vector<4x7x7xf32> to vector<4x1x1xf32>
    %177 = vector.broadcast %176 : vector<4x1x1xf32> to vector<4x16x128xf32>
    %178 = arith.mulf %10, %177 : vector<4x16x128xf32>
    %179 = arith.addf %175, %178 : vector<4x16x128xf32>
    %180 = vector.extract_strided_slice %6 {offsets = [0, 4, 5], sizes = [4, 1, 1], strides = [1, 1, 1]} : vector<4x7x7xf32> to vector<4x1x1xf32>
    %181 = vector.broadcast %180 : vector<4x1x1xf32> to vector<4x16x128xf32>
    %182 = arith.mulf %11, %181 : vector<4x16x128xf32>
    %183 = arith.addf %179, %182 : vector<4x16x128xf32>
    %184 = vector.extract_strided_slice %6 {offsets = [0, 5, 5], sizes = [4, 1, 1], strides = [1, 1, 1]} : vector<4x7x7xf32> to vector<4x1x1xf32>
    %185 = vector.broadcast %184 : vector<4x1x1xf32> to vector<4x16x128xf32>
    %186 = arith.mulf %12, %185 : vector<4x16x128xf32>
    %187 = arith.addf %183, %186 : vector<4x16x128xf32>
    %188 = vector.extract_strided_slice %6 {offsets = [0, 6, 5], sizes = [4, 1, 1], strides = [1, 1, 1]} : vector<4x7x7xf32> to vector<4x1x1xf32>
    %189 = vector.broadcast %188 : vector<4x1x1xf32> to vector<4x16x128xf32>
    %190 = arith.mulf %13, %189 : vector<4x16x128xf32>
    %191 = arith.addf %187, %190 : vector<4x16x128xf32>
    %192 = vector.extract_strided_slice %191 {offsets = [0, 0, 5], sizes = [4, 16, 123], strides = [1, 1, 1]} : vector<4x16x128xf32> to vector<4x16x123xf32>
    %193 = vector.extract_strided_slice %191 {offsets = [0, 0, 0], sizes = [4, 16, 5], strides = [1, 1, 1]} : vector<4x16x128xf32> to vector<4x16x5xf32>
    %194 = tpu.concatenate %192, %193 in 2 : vector<4x16x123xf32>, vector<4x16x5xf32> -> vector<4x16x128xf32>
    %195 = arith.addf %164, %194 : vector<4x16x128xf32>
    %196 = vector.extract_strided_slice %6 {offsets = [0, 0, 6], sizes = [4, 1, 1], strides = [1, 1, 1]} : vector<4x7x7xf32> to vector<4x1x1xf32>
    %197 = vector.broadcast %196 : vector<4x1x1xf32> to vector<4x16x128xf32>
    %198 = arith.mulf %7, %197 : vector<4x16x128xf32>
    %199 = vector.extract_strided_slice %6 {offsets = [0, 1, 6], sizes = [4, 1, 1], strides = [1, 1, 1]} : vector<4x7x7xf32> to vector<4x1x1xf32>
    %200 = vector.broadcast %199 : vector<4x1x1xf32> to vector<4x16x128xf32>
    %201 = arith.mulf %8, %200 : vector<4x16x128xf32>
    %202 = arith.addf %198, %201 : vector<4x16x128xf32>
    %203 = vector.extract_strided_slice %6 {offsets = [0, 2, 6], sizes = [4, 1, 1], strides = [1, 1, 1]} : vector<4x7x7xf32> to vector<4x1x1xf32>
    %204 = vector.broadcast %203 : vector<4x1x1xf32> to vector<4x16x128xf32>
    %205 = arith.mulf %9, %204 : vector<4x16x128xf32>
    %206 = arith.addf %202, %205 : vector<4x16x128xf32>
    %207 = vector.extract_strided_slice %6 {offsets = [0, 3, 6], sizes = [4, 1, 1], strides = [1, 1, 1]} : vector<4x7x7xf32> to vector<4x1x1xf32>
    %208 = vector.broadcast %207 : vector<4x1x1xf32> to vector<4x16x128xf32>
    %209 = arith.mulf %10, %208 : vector<4x16x128xf32>
    %210 = arith.addf %206, %209 : vector<4x16x128xf32>
    %211 = vector.extract_strided_slice %6 {offsets = [0, 4, 6], sizes = [4, 1, 1], strides = [1, 1, 1]} : vector<4x7x7xf32> to vector<4x1x1xf32>
    %212 = vector.broadcast %211 : vector<4x1x1xf32> to vector<4x16x128xf32>
    %213 = arith.mulf %11, %212 : vector<4x16x128xf32>
    %214 = arith.addf %210, %213 : vector<4x16x128xf32>
    %215 = vector.extract_strided_slice %6 {offsets = [0, 5, 6], sizes = [4, 1, 1], strides = [1, 1, 1]} : vector<4x7x7xf32> to vector<4x1x1xf32>
    %216 = vector.broadcast %215 : vector<4x1x1xf32> to vector<4x16x128xf32>
    %217 = arith.mulf %12, %216 : vector<4x16x128xf32>
    %218 = arith.addf %214, %217 : vector<4x16x128xf32>
    %219 = vector.extract_strided_slice %6 {offsets = [0, 6, 6], sizes = [4, 1, 1], strides = [1, 1, 1]} : vector<4x7x7xf32> to vector<4x1x1xf32>
    %220 = vector.broadcast %219 : vector<4x1x1xf32> to vector<4x16x128xf32>
    %221 = arith.mulf %13, %220 : vector<4x16x128xf32>
    %222 = arith.addf %218, %221 : vector<4x16x128xf32>
    %223 = vector.extract_strided_slice %222 {offsets = [0, 0, 6], sizes = [4, 16, 122], strides = [1, 1, 1]} : vector<4x16x128xf32> to vector<4x16x122xf32>
    %224 = vector.extract_strided_slice %222 {offsets = [0, 0, 0], sizes = [4, 16, 6], strides = [1, 1, 1]} : vector<4x16x128xf32> to vector<4x16x6xf32>
    %225 = tpu.concatenate %223, %224 in 2 : vector<4x16x122xf32>, vector<4x16x6xf32> -> vector<4x16x128xf32>
    %226 = arith.addf %195, %225 : vector<4x16x128xf32>
    %c0_8 = arith.constant 0 : index
    %c0_9 = arith.constant 0 : index
    %c0_10 = arith.constant 0 : index
    %c0_11 = arith.constant 0 : index
    %227 = vector.load %arg4[%c0_8, %c0_9, %c0_10, %c0_11] : memref<1x4x1x1xf32, #tpu.memory_space<vmem>>, vector<1x4x1x1xf32>
    %228 = vector.shape_cast %227 : vector<1x4x1x1xf32> to vector<4x1x1xf32>
    %229 = vector.broadcast %228 : vector<4x1x1xf32> to vector<4x16x128xf32>
    %230 = arith.addf %226, %229 : vector<4x16x128xf32>
    %231 = vector.extract_strided_slice %230 {offsets = [0, 0, 0], sizes = [4, 16, 16], strides = [1, 1, 1]} : vector<4x16x128xf32> to vector<4x16x16xf32>
    %c0_12 = arith.constant 0 : index
    %c0_13 = arith.constant 0 : index
    %c0_14 = arith.constant 0 : index
    %c0_15 = arith.constant 0 : index
    %232 = vector.load %arg5[%c0_12, %c0_13, %c0_14, %c0_15] : memref<1x4x16x16xf32, #tpu.memory_space<vmem>>, vector<1x4x16x16xf32>
    %233 = vector.shape_cast %232 : vector<1x4x16x16xf32> to vector<4x16x16xf32>
    %234 = vector.shape_cast %231 : vector<4x16x16xf32> to vector<1x4x16x16xf32>
    tpu.vector_store %arg5[%c0_12, %c0_13, %c0_14, %c0_15], %234 {strides = array<i32>} : memref<1x4x16x16xf32, #tpu.memory_space<vmem>>, vector<1x4x16x16xf32>,
    %cst_16 = arith.constant dense<0.000000e+00> : vector<4x16xf32>
    %235 = vector.multi_reduction <add>, %231, %cst_16 [2] : vector<4x16x16xf32> to vector<4x16xf32>
    %236 = vector.shape_cast %235 : vector<4x16xf32> to vector<4x16x1xf32>
    %cst_17 = arith.constant dense<0.000000e+00> : vector<4x1xf32>
    %237 = vector.multi_reduction <add>, %236, %cst_17 [1] : vector<4x16x1xf32> to vector<4x1xf32>
    %238 = vector.shape_cast %237 : vector<4x1xf32> to vector<4x1x1xf32>
    %239 = arith.mulf %231, %231 : vector<4x16x16xf32>
    %cst_18 = arith.constant dense<0.000000e+00> : vector<4x16xf32>
    %240 = vector.multi_reduction <add>, %239, %cst_18 [2] : vector<4x16x16xf32> to vector<4x16xf32>
    %241 = vector.shape_cast %240 : vector<4x16xf32> to vector<4x16x1xf32>
    %cst_19 = arith.constant dense<0.000000e+00> : vector<4x1xf32>
    %242 = vector.multi_reduction <add>, %241, %cst_19 [1] : vector<4x16x1xf32> to vector<4x1xf32>
    %243 = vector.shape_cast %242 : vector<4x1xf32> to vector<4x1x1xf32>
    %244 = tpu.concatenate %238, %243 in 2 : vector<4x1x1xf32>, vector<4x1x1xf32> -> vector<4x1x2xf32>
    %245 = vector.shape_cast %244 : vector<4x1x2xf32> to vector<4x2xf32>
    %246 = vector.shape_cast %245 : vector<4x2xf32> to vector<1x1x4x2xf32>
    %c0_20 = arith.constant 0 : index
    %c0_21 = arith.constant 0 : index
    %c0_22 = arith.constant 0 : index
    %c0_23 = arith.constant 0 : index
    %247 = vector.load %arg6[%c0_20, %c0_21, %c0_22, %c0_23] : memref<1x1x4x2xf32, #tpu.memory_space<vmem>>, vector<1x1x4x2xf32>
    tpu.vector_store %arg6[%c0_20, %c0_21, %c0_22, %c0_23], %246 {strides = array<i32>} : memref<1x1x4x2xf32, #tpu.memory_space<vmem>>, vector<1x1x4x2xf32>,
    return
  }
  func.func @transform_0(%arg0: i32, %arg1: i32) -> (i32, i32, i32, i32) {
    %c0_i32 = arith.constant 0 : i32
    %c0_i32_0 = arith.constant 0 : i32
    %c0_i32_1 = arith.constant 0 : i32
    return %arg0, %arg1, %c0_i32, %c0_i32_0 : i32, i32, i32, i32
  }
  func.func @transform_1(%arg0: i32, %arg1: i32) -> (i32, i32, i32, i32) {
    %c0_i32 = arith.constant 0 : i32
    %c0_i32_0 = arith.constant 0 : i32
    %c0_i32_1 = arith.constant 0 : i32
    %c0_i32_2 = arith.constant 0 : i32
    return %c0_i32, %arg1, %c0_i32_0, %c0_i32_1 : i32, i32, i32, i32
  }
  func.func @transform_2(%arg0: i32, %arg1: i32) -> (i32, i32, i32, i32) {
    %c0_i32 = arith.constant 0 : i32
    %c0_i32_0 = arith.constant 0 : i32
    %c0_i32_1 = arith.constant 0 : i32
    %c0_i32_2 = arith.constant 0 : i32
    return %c0_i32, %arg1, %c0_i32_0, %c0_i32_1 : i32, i32, i32, i32
  }
  func.func @transform_3(%arg0: i32, %arg1: i32) -> (i32, i32, i32, i32) {
    %c0_i32 = arith.constant 0 : i32
    %c0_i32_0 = arith.constant 0 : i32
    %c0_i32_1 = arith.constant 0 : i32
    return %arg0, %arg1, %c0_i32, %c0_i32_0 : i32, i32, i32, i32
  }
  func.func @transform_4(%arg0: i32, %arg1: i32) -> (i32, i32, i32, i32) {
    %c0_i32 = arith.constant 0 : i32
    %c0_i32_0 = arith.constant 0 : i32
    %c0_i32_1 = arith.constant 0 : i32
    return %arg0, %arg1, %c0_i32, %c0_i32_0 : i32, i32, i32, i32
  }
}

</mosaic_0001>

<bundles_post_ra>
// kernel: repara_unit.3
= control target key start
LH: loop header
LB: loop body
LE: loop exit
PB: predicated region body
PF: predicated region fallthrough
CT: control target
= control target key end

     0   :  { %s476_s12 = smov 0   ;;  %s478_s13 = smov 0   ;;  %s512_s0 = inlined_call_operand.vmem [shape: f32[2,4,256], index: 0, kind: input, shape index: {}]   ;;  %s513_s1 = inlined_call_operand.vmem [shape: f32[1,4,1], index: 1, kind: input, shape index: {}]   ;;  %s514_s2 = inlined_call_operand.vmem [shape: f32[1,4,1], index: 2, kind: input, shape index: {}]   ;;  %s515_s3 = inlined_call_operand.vmem [shape: f32[2,4,256], index: 3, kind: output, shape index: {}]  }
   0x1   :  { %s480_s14 = smov 0  }
   0x2 LB: > { %s25_s15 = sadd.s32 1, %s448_s13  ;;  %p394_p0 = scmp.ge.s32.totalorder %s452_s14, 1  ;;  %s452_s14 = sphi %s480_s14, %s13_s14   ;;  %s448_s13 = sphi %s478_s13, %s517_s13   ;;  %s444_s12 = sphi %s476_s12, %s516_s12  }
   0x3   : > { %p27_p1 = scmp.ge.s32.totalorder %s25_s15, 2  ;;  %p175_p2 = scmp.lt.s32.totalorder %s452_s14, 3 }
   0x5   : > { %s519_s15 = smov (%p27_p1, %s25_s15), 0  ;;  %p176_p3 = pnand %p394_p0, %p175_p2 }
   0x6   : > { %p215_p4 = scmp.lt.s32.totalorder (!%p176_p3), %s444_s12, 1 }
   0x7   : > { %179 = sbr.rel (%p176_p3) target bundleno = 142 (0x8e), region = 32 }
   0xc   : > { %v242_v0 = vld [vmem:[%s513_s1] sm:$0xf]  ;;  %v454_v1 = vmov 0   ;;  %s521_s12 = smov (!%p215_p4, %s444_s12), 1  ;;  %v455_v3 = vmov 839922192  }
   0xd   : > { %429 = vset.pattern.permute.xlu0 %v454_v1  ;;  %v253_v2 = vld [vmem:[%s514_s2] sm:$0xf]  ;;  %v248_v4 = vunpack.c.l.s4 %v455_v3  ;;  %s401_s20 = sshll.u32 %s521_s12, 3 }
   0xe   : > { %245 = vperm.xlu0 %429, %v242_v0   ;;  %s223_s23 = scalar_lea.vmem %s512_s0, %s401_s20  ;;  %s240_s26 = scalar_lea.vmem %s515_s3, %s401_s20 }
   0xf   : > { %v249_v6 = vunpack.c.0.s8 %v248_v4  ;;  %v241_v8 = vld [vmem:[%s223_s23] sm:$0xff] }
  0x16   : > { %256 = vperm.xlu0 %429, %v253_v2  }
  0x80   : > { %v246_v5 = vpop.permute.xlu0 %245 }
  0x81   : > { %v250_v7 = vperm.slane %v246_v5, %v249_v6 }
  0x83   : > { %v252_v10 = vmul.f32 %v250_v7, %v241_v8 }
  0x88   : > { %v257_v9 = vpop.permute.xlu0 %256 }
  0x89   : > { %v261_v11 = vperm.slane %v257_v9, %v249_v6 }
  0x8b   : > { %v263_v12 = vadd.f32 %v261_v11, %v252_v10 }
  0x8d   : > { %264 = vst [vmem:[%s240_s26] sm:$0xff] %v263_v12 }
  0x8e PF: > { %s13_s14 = sadd.s32 1, %s452_s14   ;;  %s516_s12 = smov %s448_s13 }
  0x8f   : > { %p10_p5 = scmp.ge.s32.totalorder %s13_s14, 4   ;;  %s517_s13 = smov %s519_s15 }
  0x91   :  { %12 = sbr.rel (!%p10_p5) target bundleno = 2 (0x2), region = 68 }

// kernel: repara_unit.2
= control target key start
LH: loop header
LB: loop body
LE: loop exit
PB: predicated region body
PF: predicated region fallthrough
CT: control target
= control target key end

     0   :  { %s5020_s15 = smov 0   ;;  %s5022_s16 = smov 0   ;;  %s7833_s0 = inlined_call_operand.vmem [shape: f32[2,4,22,16], index: 0, kind: input, shape index: {}]   ;;  %s7834_s1 = inlined_call_operand.vmem [shape: f32[1,4,7,7], index: 1, kind: input, shape index: {}]   ;;  %s7835_s2 = inlined_call_operand.vmem [shape: f32[1,4,1,1], index: 2, kind: input, shape index: {}]   ;;  %s7836_s3 = inlined_call_operand.vmem [shape: f32[2,4,16,16], index: 3, kind: output, shape index: {0}]   ;;  %s7837_s4 = inlined_call_operand.vmem [shape: f32[2,1,4,2], index: 4, kind: output, shape index: {1}]  }
   0x1   :  { %7967 = sst [smem:[#allocation89_spill]] %s7833_s0  ;;  %s5024_s17 = smov 0  }
   0x2   :  { %7968 = sst [smem:[#allocation90_spill]] %s7835_s2 }
   0x3   :  { %7969 = sst [smem:[#allocation91_spill]] %s7836_s3 }
   0x4   :  { %7970 = sst [smem:[#allocation92_spill]] %s7837_s4 }
   0x5 LB: > { %7971 = sst [smem:[#allocation2_spill]] %s4981_s16  ;;  %s27_s18 = sadd.s32 1, %s4981_s16  ;;  %s4985_s17 = sphi %s5024_s17, %s15_s17   ;;  %s4981_s16 = sphi %s5022_s16, %s8318_s16   ;;  %s4977_s15 = sphi %s5020_s15, %s8317_s15  }
   0x6   : > { %7972 = sst [smem:[#allocation3_spill]] %s4985_s17  ;;  %p4514_p0 = scmp.ge.s32.totalorder %s4985_s17, 1 }
   0x7   : > { %p29_p1 = scmp.ge.s32.totalorder %s27_s18, 2  ;;  %p210_p2 = scmp.lt.s32.totalorder %s4985_s17, 3 }
   0x9   : > { %s8320_s18 = smov (%p29_p1, %s27_s18), 0  ;;  %p211_p3 = pnand %p4514_p0, %p210_p2 }
   0xa   : > { %7973 = sst [smem:[#allocation4_spill]] %s8320_s18 }
   0xb   : > { %214 = sbr.rel (%p211_p3) target bundleno = 1819 (0x71b), region = 32 }
  0x10   : > { %p263_p4 = scmp.lt.s32.totalorder %s4977_s15, 1  ;;  %s7975_s0 = sld [smem:[#allocation89_spill]]  ;;  %v5055_v3 = vld [vmem:[%s7834_s1] sm:$0x7f]  ;;  %v5060_v4 = vld [vmem:[%s7834_s1 + $0x8] sm:$0x7f] }
  0x11   : > { %s4987_s23 = smov 3   ;;  %4523 = vpush %v5055_v3  ;;  %v5075_v10 = vld [vmem:[%s7834_s1 + $0x10] sm:$0x7f]  ;;  %v5079_v12 = vrot.slane %v5055_v3, 1  ;;  %v5084_v13 = vld [vmem:[%s7834_s1 + $0x18] sm:$0x7f] }
  0x12   : > { %s8322_s15 = smov (!%p263_p4, %s4977_s15), 1  ;;  %4525 = vpush %v5060_v4  ;;  %v5098_v17 = vrot.slane %v5060_v4, 1  ;;  %v5102_v18 = vrot.slane %v5075_v10, 1  ;;  %v5105_v19 = vrot.slane %v5084_v13, 1  ;;  %s7840_s6 = smov 127   ;;  %v5115_v20 = vrot.slane %v5055_v3, 2 }
  0x13   : > { %7974 = sst [smem:[#allocation5_spill]] %s8322_s15  ;;  %s4522_s19 = smul.u32 96, %s8322_s15  ;;  %7976 = vst [vmem:[#allocation6_spill] sm:$0xff] %v5079_v12  ;;  %v5120_v21 = vrot.slane %v5060_v4, 2  ;;  %v5123_v22 = vrot.slane %v5084_v13, 2  ;;  %v5126_v23 = vrot.slane %v5075_v10, 2 }
  0x14   : > { %4527 = vpush %v5075_v10  ;;  %v5131_v24 = vrot.slane %v5055_v3, 3  ;;  %v5135_v25 = vrot.slane %v5075_v10, 3  ;;  %v5138_v26 = vrot.slane %v5060_v4, 3  ;;  %v5142_v27 = vrot.slane %v5084_v13, 3  ;;  %s7838_s7 = smov 126  }
  0x15   : > { %4529 = vpush %v5084_v13  ;;  %v5146_v28 = vrot.slane %v5055_v3, 4  ;;  %v5150_v29 = vrot.slane %v5060_v4, 4  ;;  %v5158_v30 = vrot.slane %v5075_v10, 4  ;;  %v5164_v31 = vrot.slane %v5084_v13, 4 }
  0x16   : > { %s5044_s22 = scalar_lea.vmem %s7975_s0, %s4522_s19  ;;  %4531 = vpush %v5079_v12  ;;  %v5168_v32 = vrot.slane %v5055_v3, 5  ;;  %v5172_v33 = vrot.slane %v5060_v4, 5  ;;  %v5176_v34 = vrot.slane %v5075_v10, 5  ;;  %v5180_v35 = vrot.slane %v5084_v13, 5 }
  0x17   : > { %v304_v0 = vld [vmem:[%s5044_s22 + $0x10] sm:$0x3f]  ;;  %v302_v1 = vld [vmem:[%s5044_s22] sm:$0xff]  ;;  %v305_v5 = vld [vmem:[%s5044_s22 + $0x18] sm:$0xff]  ;;  %7977 = vst [vmem:[#allocation7_spill] sm:$0xff] %v5098_v17  ;;  %v5184_v36 = vrot.slane %v5055_v3, 6 }
  0x18   : > { %330 = vrot.lane.b32.xlu1 %v304_v0, %s4987_s23  ;;  %326 = vrot.lane.b32.xlu0 %v302_v1, %s4987_s23  ;;  %v306_v2 = vld [vmem:[%s5044_s22 + $0x20] sm:$0xff]  ;;  %v303_v6 = vld [vmem:[%s5044_s22 + $0x8] sm:$0xff]  ;;  %7978 = vst [vmem:[#allocation8_spill] sm:$0xff] %v5102_v18  ;;  %v5188_v37 = vrot.slane %v5060_v4, 6  ;;  %v5196_v38 = vrot.slane %v5075_v10, 6  ;;  %v5209_v39 = vrot.slane %v5084_v13, 6 }
  0x19   : > { %334 = vrot.lane.b32.xlu2 %v306_v2, %s4987_s23  ;;  %v307_v7 = vld [vmem:[%s5044_s22 + $0x28] sm:$0x3f]  ;;  %v309_v8 = vld [vmem:[%s5044_s22 + $0x38] sm:$0xff]  ;;  %v308_v9 = vld [vmem:[%s5044_s22 + $0x30] sm:$0xff]  ;;  %7979 = vst [vmem:[#allocation9_spill] sm:$0xff] %v5105_v19  ;;  %vm362_vm0 = vcmask 23552  }
  0x1a   : > { %v310_v11 = vld [vmem:[%s5044_s22 + $0x40] sm:$0x3f]  ;;  %v312_v14 = vld [vmem:[%s5044_s22 + $0x50] sm:$0xff]  ;;  %v311_v15 = vld [vmem:[%s5044_s22 + $0x48] sm:$0xff]  ;;  %4533 = vpush %v5098_v17  ;;  %vm375_vm1 = vcmask 154624   ;;  %vm456_vm2 = vcmask 1046528  }
  0x1b   : > { %v313_v16 = vld [vmem:[%s5044_s22 + $0x58] sm:$0x3f]  ;;  %4535 = vpush %v5102_v18  ;;  %vm533_vm3 = vcmask 1045504   ;;  %vm610_vm4 = vcmask 1044480   ;;  %vm687_vm5 = vcmask 1043456   ;;  %vm764_vm6 = vcmask 1042432  }
  0x1c   : > { %4537 = vpush %v5105_v19  ;;  %vm841_vm7 = vcmask 1041408   ;;  %vm4202_vm8 = vcmask 130048   ;;  %vm4323_vm9 = vcmask 7168   ;;  %vm4333_vm10 = vcmask 1041409  }
  0x1d   : > { %7980 = vst [vmem:[#allocation10_spill] sm:$0xff] %v5115_v20  ;;  %vm4336_vm11 = vcmask 1042434   ;;  %vm4339_vm12 = vcmask 1043459   ;;  %vm4342_vm13 = vcmask 11264  }
  0x1e   : > { %7981 = vst [vmem:[#allocation11_spill] sm:$0xff] %v5120_v21 }
  0x1f   : > { %7982 = vst [vmem:[#allocation12_spill] sm:$0xff] %v5123_v22 }
  0x20   : > { %332 = vrot.lane.b32.xlu1 %v305_v5, %s4987_s23  ;;  %328 = vrot.lane.b32.xlu0 %v303_v6, %s4987_s23  ;;  %7983 = vst [vmem:[#allocation13_spill] sm:$0xff] %v5126_v23 }
  0x21   : > { %336 = vrot.lane.b32.xlu2 %v307_v7, %s4987_s23  ;;  %4539 = vpush %v5115_v20 }
  0x22   : > { %4541 = vpush %v5120_v21 }
  0x23   : > { %7984 = vst [vmem:[#allocation14_spill] sm:$0xff] %v5131_v24 }
  0x24   : > { %4543 = vpush %v5126_v23 }
  0x25   : > { %7985 = vst [vmem:[#allocation15_spill] sm:$0xff] %v5135_v25 }
  0x26   : > { %7986 = vst [vmem:[#allocation16_spill] sm:$0xff] %v5138_v26 }
  0x27   : > { %4545 = vpush %v5123_v22 }
  0x28   : > { %340 = vrot.lane.b32.xlu1 %v309_v8, %s4987_s23  ;;  %338 = vrot.lane.b32.xlu0 %v308_v9, %s4987_s23  ;;  %7987 = vst [vmem:[#allocation17_spill] sm:$0xff] %v5142_v27 }
  0x29   : > { %342 = vrot.lane.b32.xlu2 %v310_v11, %s4987_s23  ;;  %4547 = vpush %v5131_v24 }
  0x2a   : > { %7988 = vst [vmem:[#allocation18_spill] sm:$0xff] %v5146_v28 }
  0x2b   : > { %4549 = vpush %v5138_v26 }
  0x2c   : > { %7989 = vst [vmem:[#allocation19_spill] sm:$0xff] %v5150_v29 }
  0x2d   : > { %4551 = vpush %v5135_v25 }
  0x2e   : > { %7990 = vst [vmem:[#allocation20_spill] sm:$0xff] %v5158_v30 }
  0x2f   : > { %4553 = vpush %v5142_v27 }
  0x30   : > { %346 = vrot.lane.b32.xlu1 %v312_v14, %s4987_s23  ;;  %344 = vrot.lane.b32.xlu0 %v311_v15, %s4987_s23  ;;  %7991 = vst [vmem:[#allocation21_spill] sm:$0xff] %v5164_v31 }
  0x31   : > { %348 = vrot.lane.b32.xlu2 %v313_v16, %s4987_s23  ;;  %4555 = vpush %v5146_v28 }
  0x32   : > { %7992 = vst [vmem:[#allocation22_spill] sm:$0xff] %v5168_v32 }
  0x33   : > { %4557 = vpush %v5150_v29 }
  0x34   : > { %7993 = vst [vmem:[#allocation23_spill] sm:$0xff] %v5172_v33 }
  0x35   : > { %4559 = vpush %v5158_v30 }
  0x36   : > { %7994 = vst [vmem:[#allocation24_spill] sm:$0xff] %v5176_v34 }
  0x37   : > { %4561 = vpush %v5164_v31 }
  0x38   : > { %880 = vrot.lane.b32.xlu1 %v5060_v4, %s7840_s6  ;;  %878 = vrot.lane.b32.xlu0 %v5055_v3, %s7840_s6  ;;  %7995 = vst [vmem:[#allocation25_spill] sm:$0xff] %v5180_v35 }
  0x39   : > { %882 = vrot.lane.b32.xlu2 %v5075_v10, %s7840_s6  ;;  %4563 = vpush %v5168_v32 }
  0x3a   : > { %7996 = vst [vmem:[#allocation26_spill] sm:$0xff] %v5184_v36 }
  0x3b   : > { %4565 = vpush %v5172_v33 }
  0x3c   : > { %7997 = vst [vmem:[#allocation27_spill] sm:$0xff] %v5188_v37 }
  0x3d   : > { %4567 = vpush %v5176_v34 }
  0x3e   : > { %7998 = vst [vmem:[#allocation28_spill] sm:$0xff] %v5196_v38 }
  0x3f   : > { %4569 = vpush %v5180_v35 }
  0x40   : > { %906 = vrot.lane.b32.xlu1 %v5079_v12, %s7840_s6  ;;  %884 = vrot.lane.b32.xlu0 %v5084_v13, %s7840_s6  ;;  %4571 = vpush %v5184_v36 }
  0x41   : > { %908 = vrot.lane.b32.xlu2 %v5098_v17, %s7840_s6  ;;  %4573 = vpush %v5188_v37 }
  0x42   : > { %4575 = vpush %v5196_v38  ;;  %s5304_s8 = spop %4523 }
  0x43   : > { %7999 = vst [vmem:[#allocation29_spill] sm:$0xff] %v5209_v39  ;;  %s5306_s9 = spop %4525 }
  0x44   : > { %4577 = vpush %v5209_v39 }
  0x45   : > { %s5308_s10 = spop %4527 }
  0x46   : > { %s5316_s11 = spop %4529 }
  0x47   : > { %s5318_s12 = spop %4531 }
  0x48   : > { %912 = vrot.lane.b32.xlu1 %v5105_v19, %s7840_s6  ;;  %910 = vrot.lane.b32.xlu0 %v5102_v18, %s7840_s6 }
  0x49   : > { %986 = vrot.lane.b32.xlu2 %v5115_v20, %s7840_s6 }
  0x4b   : > { %s5320_s13 = spop %4533 }
  0x4c   : > { %s5322_s14 = spop %4535 }
  0x4d   : > { %s5326_s19 = spop %4537 }
  0x50   : > { %990 = vrot.lane.b32.xlu1 %v5126_v23, %s7840_s6  ;;  %988 = vrot.lane.b32.xlu0 %v5120_v21, %s7840_s6 }
  0x51   : > { %992 = vrot.lane.b32.xlu2 %v5123_v22, %s7840_s6 }
  0x52   : > { %s5332_s20 = spop %4539 }
  0x53   : > { %s5334_s21 = spop %4541 }
  0x55   : > { %s5336_s22 = spop %4543 }
  0x58   : > { %1068 = vrot.lane.b32.xlu1 %v5138_v26, %s7840_s6  ;;  %1066 = vrot.lane.b32.xlu0 %v5131_v24, %s7840_s6  ;;  %s5340_s23 = spop %4545 }
  0x59   : > { %1070 = vrot.lane.b32.xlu2 %v5135_v25, %s7840_s6 }
  0x5a   : > { %s5342_s24 = spop %4547 }
  0x5c   : > { %s5344_s25 = spop %4549 }
  0x5e   : > { %s5346_s26 = spop %4551 }
  0x60   : > { %1146 = vrot.lane.b32.xlu1 %v5146_v28, %s7840_s6  ;;  %1072 = vrot.lane.b32.xlu0 %v5142_v27, %s7840_s6  ;;  %s5348_s27 = spop %4553 }
  0x61   : > { %1148 = vrot.lane.b32.xlu2 %v5150_v29, %s7840_s6 }
  0x62   : > { %s5350_s28 = spop %4555 }
  0x64   : > { %s5352_s29 = spop %4557 }
  0x66   : > { %s5354_s30 = spop %4559 }
  0x68   : > { %1152 = vrot.lane.b32.xlu1 %v5164_v31, %s7840_s6  ;;  %1150 = vrot.lane.b32.xlu0 %v5158_v30, %s7840_s6  ;;  %s5356_s5 = spop %4561 }
  0x69   : > { %1226 = vrot.lane.b32.xlu2 %v5168_v32, %s7840_s6 }
  0x70   : > { %1230 = vrot.lane.b32.xlu1 %v5176_v34, %s7840_s6  ;;  %1228 = vrot.lane.b32.xlu0 %v5172_v33, %s7840_s6 }
  0x71   : > { %1232 = vrot.lane.b32.xlu2 %v5180_v35, %s7840_s6 }
  0x73   : > { %v5238_v40 = vpop.permute.xlu2 %334 }
  0x78   : > { %1308 = vrot.lane.b32.xlu1 %v5188_v37, %s7840_s6  ;;  %1306 = vrot.lane.b32.xlu0 %v5184_v36, %s7840_s6 }
  0x79   : > { %1310 = vrot.lane.b32.xlu2 %v5196_v38, %s7840_s6 }
  0x7b   : > { %v5246_v41 = vpop.permute.xlu2 %336 }
  0x7c   : > { %v368_v14 = vsel %vm362_vm0, 0.0, %v5246_v41 }
  0x7d   : > { %v5394_v41 = vsel %vm375_vm1, %v368_v14, 0.0 }
  0x7e   : > { %8008 = vst [vmem:[#allocation38_spill] sm:$0xff] %v5394_v41 }
  0x80   : > { %1312 = vrot.lane.b32.xlu0 %v5209_v39, %s7840_s6  ;;  %1428 = vrot.lane.b32.xlu1 %v5060_v4, %s7838_s7 }
  0x81   : > { %1430 = vrot.lane.b32.xlu2 %v5075_v10, %s7838_s7 }
  0x83   : > { %v5254_v42 = vpop.permute.xlu2 %342 }
  0x88   : > { %1426 = vrot.lane.b32.xlu0 %v5055_v3, %s7838_s7  ;;  %1454 = vrot.lane.b32.xlu1 %v5079_v12, %s7838_s7 }
  0x89   : > { %1456 = vrot.lane.b32.xlu2 %v5098_v17, %s7838_s7 }
  0x8a   : > { %v5262_v43 = vpop.permute.xlu1 %330  ;;  %v5264_v44 = vpop.permute.xlu0 %326 }
  0x8b   : > { %v5266_v45 = vpop.permute.xlu2 %348  ;;  %v365_v16 = vsel %vm362_vm0, 0.0, %v5262_v43 }
  0x90   : > { %1432 = vrot.lane.b32.xlu0 %v5084_v13, %s7838_s7  ;;  %1460 = vrot.lane.b32.xlu1 %v5105_v19, %s7838_s7  ;;  %v367_v13 = vsel %vm362_vm0, 0.0, %v5238_v40 }
  0x91   : > { %1534 = vrot.lane.b32.xlu2 %v5115_v20, %s7838_s7  ;;  %v5391_v40 = vsel %vm375_vm1, %v367_v13, 0.0 }
  0x92   : > { %v5274_v46 = vpop.permute.xlu1 %332  ;;  %v5276_v47 = vpop.permute.xlu0 %328  ;;  %8007 = vst [vmem:[#allocation37_spill] sm:$0xff] %v5391_v40 }
  0x93   : > { %v883_v48 = vpop.permute.xlu2 %882  ;;  %v364_v43 = vsel %vm362_vm0, 0.0, %v5276_v47 }
  0x98   : > { %1458 = vrot.lane.b32.xlu0 %v5102_v18, %s7838_s7  ;;  %1538 = vrot.lane.b32.xlu1 %v5126_v23, %s7838_s7 }
  0x99   : > { %1540 = vrot.lane.b32.xlu2 %v5123_v22, %s7838_s7 }
  0x9a   : > { %v5284_v49 = vpop.permute.xlu1 %340  ;;  %v5286_v50 = vpop.permute.xlu0 %338 }
  0x9b   : > { %v909_v51 = vpop.permute.xlu2 %908  ;;  %v369_v47 = vsel %vm362_vm0, 0.0, %v5286_v50 }
  0xa0   : > { %1536 = vrot.lane.b32.xlu0 %v5120_v21, %s7838_s7  ;;  %1616 = vrot.lane.b32.xlu1 %v5138_v26, %s7838_s7 }
  0xa1   : > { %1618 = vrot.lane.b32.xlu2 %v5135_v25, %s7838_s7 }
  0xa2   : > { %v5294_v52 = vpop.permute.xlu1 %346  ;;  %v5296_v53 = vpop.permute.xlu0 %344 }
  0xa3   : > { %v987_v54 = vpop.permute.xlu2 %986 }
  0xa8   : > { %1614 = vrot.lane.b32.xlu0 %v5131_v24, %s7838_s7  ;;  %1694 = vrot.lane.b32.xlu1 %v5146_v28, %s7838_s7 }
  0xa9   : > { %1696 = vrot.lane.b32.xlu2 %v5150_v29, %s7838_s7 }
  0xaa   : > { %v881_v55 = vpop.permute.xlu1 %880  ;;  %v879_v56 = vpop.permute.xlu0 %878 }
  0xab   : > { %4579 = vpush %v879_v56  ;;  %v993_v57 = vpop.permute.xlu2 %992 }
  0xac   : > { %4581 = vpush %v881_v55  ;;  %v374_v55 = vsel %vm362_vm0, 0.0, %v5266_v45  ;;  %v5420_v45 = vsel %vm375_vm1, %v364_v43, 0.0 }
  0xad   : > { %4583 = vpush %v883_v48  ;;  %v371_v48 = vsel %vm362_vm0, 0.0, %v5254_v42  ;;  %v5401_v42 = vsel %vm375_vm1, %v365_v16, 0.0 }
  0xae   : > { %8009 = vst [vmem:[#allocation39_spill] sm:$0xff] %v5401_v42 }
  0xaf   : > { %8012 = vst [vmem:[#allocation42_spill] sm:$0xff] %v5420_v45 }
  0xb0   : > { %1620 = vrot.lane.b32.xlu0 %v5142_v27, %s7838_s7  ;;  %1700 = vrot.lane.b32.xlu1 %v5164_v31, %s7838_s7 }
  0xb1   : > { %1774 = vrot.lane.b32.xlu2 %v5168_v32, %s7838_s7 }
  0xb2   : > { %v907_v58 = vpop.permute.xlu1 %906  ;;  %v885_v59 = vpop.permute.xlu0 %884 }
  0xb3   : > { %4585 = vpush %v885_v59  ;;  %v1071_v62 = vpop.permute.xlu2 %1070 }
  0xb4   : > { %4587 = vpush %v907_v58  ;;  %v373_v58 = vsel %vm362_vm0, 0.0, %v5294_v52 }
  0xb5   : > { %4589 = vpush %v909_v51  ;;  %v363_v51 = vsel %vm362_vm0, 0.0, %v5264_v44  ;;  %v370_v44 = vsel %vm362_vm0, 0.0, %v5284_v49  ;;  %v5426_v49 = vsel %vm375_vm1, %v374_v55, 0.0 }
  0xb6   : > { %v5417_v59 = vsel %vm375_vm1, %v363_v51, 0.0 }
  0xb7   : > { %8011 = vst [vmem:[#allocation41_spill] sm:$0xff] %v5417_v59 }
  0xb8   : > { %1698 = vrot.lane.b32.xlu0 %v5158_v30, %s7838_s7  ;;  %1778 = vrot.lane.b32.xlu1 %v5176_v34, %s7838_s7 }
  0xb9   : > { %1780 = vrot.lane.b32.xlu2 %v5180_v35, %s7838_s7 }
  0xba   : > { %v913_v60 = vpop.permute.xlu1 %912  ;;  %v911_v61 = vpop.permute.xlu0 %910 }
  0xbb   : > { %4591 = vpush %v911_v61  ;;  %v1149_v1 = vpop.permute.xlu2 %1148 }
  0xbc   : > { %4593 = vpush %v913_v60  ;;  %v372_v60 = vsel %vm362_vm0, 0.0, %v5296_v53  ;;  %v5437_v53 = vsel %vm375_vm1, %v369_v47, 0.0 }
  0xbd   : > { %4595 = vpush %v987_v54  ;;  %v5404_v54 = vsel %vm375_vm1, %v371_v48, 0.0 }
  0xbe   : > { %8010 = vst [vmem:[#allocation40_spill] sm:$0xff] %v5404_v54 }
  0xbf   : > { %8015 = vst [vmem:[#allocation45_spill] sm:$0xff] %v5437_v53 }
  0xc0   : > { %1776 = vrot.lane.b32.xlu0 %v5172_v33, %s7838_s7  ;;  %s5358_s7 = spop %4563 }
  0xc1   : > { %8000 = sst [smem:[#allocation30_spill]] %s5358_s7  ;;  %s5360_s6 = spop %4565 }
  0xc2   : > { %v991_v63 = vpop.permute.xlu1 %990  ;;  %v989_v0 = vpop.permute.xlu0 %988  ;;  %s5362_s0 = spop %4567 }
  0xc3   : > { %4597 = vpush %v989_v0  ;;  %v1227_v4 = vpop.permute.xlu2 %1226  ;;  %8001 = sst [smem:[#allocation31_spill]] %s5362_s0  ;;  %s5364_s18 = spop %4569 }
  0xc4   : > { %4599 = vpush %v991_v63  ;;  %8002 = sst [smem:[#allocation32_spill]] %s5364_s18  ;;  %s5366_s16 = spop %4571 }
  0xc5   : > { %4601 = vpush %v993_v57  ;;  %8003 = sst [smem:[#allocation33_spill]] %s5366_s16  ;;  %s5368_s17 = spop %4573  ;;  %v366_v57 = vsel %vm362_vm0, 0.0, %v5274_v46 }
  0xc6   : > { %8004 = sst [smem:[#allocation34_spill]] %s5368_s17  ;;  %s5370_s4 = spop %4575  ;;  %v5431_v0 = vsel %vm375_vm1, %v366_v57, 0.0 }
  0xc7   : > { %8005 = sst [smem:[#allocation35_spill]] %s5370_s4  ;;  %s5372_s3 = spop %4577  ;;  %8013 = vst [vmem:[#allocation43_spill] sm:$0xff] %v5431_v0 }
  0xc8   : > { %8006 = sst [smem:[#allocation36_spill]] %s5372_s3 }
  0xca   : > { %v1069_v2 = vpop.permute.xlu1 %1068  ;;  %v1067_v3 = vpop.permute.xlu0 %1066 }
  0xcb   : > { %4603 = vpush %v1067_v3  ;;  %v1233_v7 = vpop.permute.xlu2 %1232 }
  0xcc   : > { %4605 = vpush %v1069_v2  ;;  %v5440_v2 = vsel %vm375_vm1, %v373_v58, 0.0 }
  0xcd   : > { %4607 = vpush %v1071_v62 }
  0xd2   : > { %v1147_v5 = vpop.permute.xlu1 %1146  ;;  %v1073_v6 = vpop.permute.xlu0 %1072 }
  0xd3   : > { %4609 = vpush %v1073_v6  ;;  %v1311_v15 = vpop.permute.xlu2 %1310 }
  0xd4   : > { %4611 = vpush %v1147_v5 }
  0xd5   : > { %4613 = vpush %v1149_v1  ;;  %v5434_v1 = vsel %vm375_vm1, %v370_v44, 0.0 }
  0xd6   : > { %8014 = vst [vmem:[#allocation44_spill] sm:$0xff] %v5434_v1 }
  0xda   : > { %v1153_v8 = vpop.permute.xlu1 %1152  ;;  %v1151_v9 = vpop.permute.xlu0 %1150 }
  0xdb   : > { %4615 = vpush %v1151_v9  ;;  %v5442_v3 = vpop.permute.xlu2 %1430 }
  0xdc   : > { %4617 = vpush %v1153_v8  ;;  %s5374_s15 = spop %4579 }
  0xdd   : > { %4619 = vpush %v1227_v4  ;;  %s5376_s2 = spop %4581  ;;  %v887_v46 = vstv %s5374_s15  ;;  %v5445_v4 = vsel %vm375_vm1, %v372_v60, 0.0 }
  0xde   : > { %s5382_s16 = spop %4583  ;;  %8016 = vst [vmem:[#allocation46_spill] sm:$0xff] %v5445_v4  ;;  %v898_v5 = vmul.f32 %v887_v46, %v5417_v59  ;;  %v890_v6 = vstv %s5376_s2  ;;  %v899_v13 = vmul.f32 %v887_v46, %v5420_v45 }
  0xdf   : > { %v900_v51 = vmul.f32 %v890_v6, %v5431_v0  ;;  %v901_v57 = vmul.f32 %v890_v6, %v5391_v40 }
  0xe2   : > { %v1231_v10 = vpop.permute.xlu1 %1230  ;;  %v1229_v11 = vpop.permute.xlu0 %1228 }
  0xe3   : > { %4621 = vpush %v1229_v11 }
  0xe4   : > { %4623 = vpush %v1231_v10  ;;  %s5388_s3 = spop %4585 }
  0xe5   : > { %4625 = vpush %v1233_v7  ;;  %s4588_s4 = spop %4587  ;;  %v893_v7 = vstv %s5382_s16  ;;  %v896_v44 = vstv %s5388_s3 }
  0xe6   : > { %v915_v56 = vstv %s4588_s4  ;;  %s4590_s18 = spop %4589  ;;  %v903_v6 = vmul.f32 %v893_v7, %v5434_v1 }
  0xe7   : > { %v926_v50 = vmul.f32 %v915_v56, %v5417_v59  ;;  %v927_v52 = vmul.f32 %v915_v56, %v5420_v45  ;;  %v918_v61 = vstv %s4590_s18  ;;  %v928_v8 = vmul.f32 %v915_v56, %v5401_v42 }
  0xe8   : > { %v929_v9 = vmul.f32 %v918_v61, %v5431_v0  ;;  %v930_v10 = vmul.f32 %v918_v61, %v5391_v40  ;;  %v931_v48 = vmul.f32 %v918_v61, %v5394_v41 }
  0xe9   : > { %v950_v14 = vrot.slane %v926_v50, 1  ;;  %v951_v16 = vrot.slane %v927_v52, 1  ;;  %v953_v58 = vrot.slane %v928_v8, 1  ;;  %v904_v8 = vmul.f32 %v896_v44, %v5445_v4 }
  0xea   : > { %v1309_v62 = vpop.permute.xlu1 %1308  ;;  %v1307_v63 = vpop.permute.xlu0 %1306  ;;  %v955_v60 = vrot.slane %v929_v9, 1  ;;  %v956_v46 = vrot.slane %v930_v10, 1  ;;  %v958_v61 = vrot.slane %v931_v48, 1  ;;  %v905_v48 = vmul.f32 %v896_v44, %v5440_v2 }
  0xeb   : > { %4627 = vpush %v1307_v63  ;;  %v952_v52 = vsel %vm456_vm2, %v950_v14, %v951_v16  ;;  %v954_v31 = vsel %vm456_vm2, %v951_v16, %v953_v58 }
  0xec   : > { %4629 = vpush %v1309_v62  ;;  %s4592_s4 = spop %4591  ;;  %v978_v30 = vadd.f32 %v952_v52, %v898_v5  ;;  %v979_v52 = vadd.f32 %v954_v31, %v899_v13 }
  0xed   : > { %4631 = vpush %v1311_v15  ;;  %v921_v11 = vstv %s4592_s4  ;;  %s4594_s15 = spop %4593  ;;  %v902_v15 = vmul.f32 %v893_v7, %v5437_v53  ;;  %v5472_v7 = vpop.permute.xlu2 %1456 }
  0xee   : > { %s4596_s2 = spop %4595  ;;  %v932_v43 = vmul.f32 %v921_v11, %v5437_v53  ;;  %v933_v55 = vmul.f32 %v921_v11, %v5434_v1  ;;  %v924_v56 = vstv %s4594_s15  ;;  %v934_v47 = vmul.f32 %v921_v11, %v5404_v54 }
  0xef   : > { %v995_v50 = vstv %s4596_s2  ;;  %v935_v62 = vmul.f32 %v924_v56, %v5445_v4  ;;  %v936_v63 = vmul.f32 %v924_v56, %v5440_v2  ;;  %v937_v11 = vmul.f32 %v924_v56, %v5426_v49 }
  0xf0   : > { %v960_v33 = vrot.slane %v932_v43, 1  ;;  %v961_v32 = vrot.slane %v933_v55, 1  ;;  %v963_v9 = vrot.slane %v934_v47, 1  ;;  %v1006_v10 = vmul.f32 %v995_v50, %v5417_v59 }
  0xf1   : > { %v1007_v14 = vmul.f32 %v995_v50, %v5420_v45  ;;  %v957_v43 = vsel %vm456_vm2, %v955_v60, %v956_v46  ;;  %v965_v55 = vrot.slane %v935_v62, 1  ;;  %v966_v56 = vrot.slane %v936_v63, 1 }
  0xf2   : > { %v1313_v35 = vpop.permute.xlu0 %1312  ;;  %v1429_v34 = vpop.permute.xlu1 %1428  ;;  %v962_v47 = vsel %vm456_vm2, %v960_v33, %v961_v32  ;;  %v968_v28 = vrot.slane %v937_v11, 1  ;;  %v1008_v27 = vmul.f32 %v995_v50, %v5401_v42  ;;  %v964_v16 = vsel %vm456_vm2, %v961_v32, %v963_v9 }
  0xf3   : > { %4633 = vpush %v1313_v35  ;;  %v959_v35 = vsel %vm456_vm2, %v956_v46, %v958_v61  ;;  %v1030_v5 = vrot.slane %v1006_v10, 2  ;;  %v1031_v44 = vrot.slane %v1007_v14, 2  ;;  %v980_v26 = vadd.f32 %v957_v43, %v900_v51 }
  0xf4   : > { %s4598_s3 = spop %4597  ;;  %v981_v32 = vadd.f32 %v959_v35, %v901_v57  ;;  %v982_v9 = vadd.f32 %v962_v47, %v902_v15  ;;  %v983_v10 = vadd.f32 %v964_v16, %v903_v6  ;;  %v1033_v14 = vrot.slane %v1008_v27, 2 }
  0xf5   : > { %v998_v29 = vstv %s4598_s3  ;;  %s4600_s16 = spop %4599  ;;  %v967_v31 = vsel %vm456_vm2, %v965_v55, %v966_v56  ;;  %v969_v13 = vsel %vm456_vm2, %v966_v56, %v968_v28  ;;  %v5493_v47 = vpop.permute.xlu2 %1534 }
  0xf6   : > { %v1001_v25 = vstv %s4600_s16  ;;  %s4602_s18 = spop %4601  ;;  %v1009_v58 = vmul.f32 %v998_v29, %v5431_v0  ;;  %v1010_v60 = vmul.f32 %v998_v29, %v5391_v40  ;;  %v1011_v46 = vmul.f32 %v998_v29, %v5394_v41 }
  0xf7   : > { %v1012_v61 = vmul.f32 %v1001_v25, %v5437_v53  ;;  %v1013_v33 = vmul.f32 %v1001_v25, %v5434_v1  ;;  %v1014_v50 = vmul.f32 %v1001_v25, %v5404_v54  ;;  %v1004_v62 = vstv %s4602_s18 }
  0xf8   : > { %v1032_v29 = vsel %vm533_vm3, %v1030_v5, %v1031_v44  ;;  %v1035_v51 = vrot.slane %v1009_v58, 2  ;;  %v1036_v43 = vrot.slane %v1010_v60, 2  ;;  %v1015_v25 = vmul.f32 %v1004_v62, %v5445_v4 }
  0xf9   : > { %v1016_v24 = vmul.f32 %v1004_v62, %v5440_v2  ;;  %v1038_v27 = vrot.slane %v1011_v46, 2  ;;  %v1040_v15 = vrot.slane %v1012_v61, 2  ;;  %v1041_v6 = vrot.slane %v1013_v33, 2 }
  0xfa   : > { %v1427_v63 = vpop.permute.xlu0 %1426  ;;  %v1455_v11 = vpop.permute.xlu1 %1454  ;;  %v1043_v35 = vrot.slane %v1014_v50, 2  ;;  %v984_v28 = vadd.f32 %v967_v31, %v904_v8  ;;  %v985_v55 = vadd.f32 %v969_v13, %v905_v48  ;;  %v1034_v56 = vsel %vm533_vm3, %v1031_v44, %v1033_v14 }
  0xfb   : > { %4635 = vpush %v1427_v63  ;;  %v1058_v60 = vadd.f32 %v1032_v29, %v978_v30  ;;  %v1037_v46 = vsel %vm533_vm3, %v1035_v51, %v1036_v43  ;;  %v1045_v61 = vrot.slane %v1015_v25, 2  ;;  %v1046_v8 = vrot.slane %v1016_v24, 2 }
  0xfc   : > { %4637 = vpush %v1429_v34  ;;  %s4604_s4 = spop %4603  ;;  %v1017_v34 = vmul.f32 %v1004_v62, %v5426_v49  ;;  %v1059_v48 = vadd.f32 %v1034_v56, %v979_v52  ;;  %v1039_v44 = vsel %vm533_vm3, %v1036_v43, %v1038_v27  ;;  %v1042_v33 = vsel %vm533_vm3, %v1040_v15, %v1041_v6 }
  0xfd   : > { %4639 = vpush %v5442_v3  ;;  %v1075_v57 = vstv %s4604_s4  ;;  %s4606_s15 = spop %4605  ;;  %v1044_v50 = vsel %vm533_vm3, %v1041_v6, %v1043_v35  ;;  %v5504_v30 = vadd.f32 %v1037_v46, %v980_v26  ;;  %v5506_v51 = vadd.f32 %v1039_v44, %v981_v32 }
  0xfe   : > { %v1086_v16 = vmul.f32 %v1075_v57, %v5417_v59  ;;  %v1087_v5 = vmul.f32 %v1075_v57, %v5420_v45  ;;  %v1088_v3 = vmul.f32 %v1075_v57, %v5401_v42  ;;  %v1078_v58 = vstv %s4606_s15  ;;  %s4608_s2 = spop %4607 }
  0xff   : > { %v1048_v14 = vrot.slane %v1017_v34, 2  ;;  %v1089_v31 = vmul.f32 %v1078_v58, %v5431_v0  ;;  %v1090_v13 = vmul.f32 %v1078_v58, %v5391_v40  ;;  %v1081_v57 = vstv %s4608_s2 }
 0x100   : > { %v1110_v29 = vrot.slane %v1086_v16, 3  ;;  %v1111_v24 = vrot.slane %v1087_v5, 3  ;;  %v1113_v52 = vrot.slane %v1088_v3, 3  ;;  %v5508_v43 = vadd.f32 %v1042_v33, %v982_v9 }
 0x101   : > { %v1047_v25 = vsel %vm533_vm3, %v1045_v61, %v1046_v8  ;;  %v1091_v27 = vmul.f32 %v1078_v58, %v5394_v41  ;;  %v5513_v15 = vadd.f32 %v1044_v50, %v983_v10  ;;  %v1092_v26 = vmul.f32 %v1081_v57, %v5437_v53  ;;  %v1541_v61 = vpop.permute.xlu2 %1540 }
 0x102   : > { %v1433_v62 = vpop.permute.xlu0 %1432  ;;  %v1461_v63 = vpop.permute.xlu1 %1460  ;;  %v1093_v6 = vmul.f32 %v1081_v57, %v5434_v1  ;;  %v1049_v32 = vsel %vm533_vm3, %v1046_v8, %v1048_v14  ;;  %v1115_v9 = vrot.slane %v1089_v31, 3  ;;  %v1116_v35 = vrot.slane %v1090_v13, 3 }
 0x103   : > { %4641 = vpush %v1433_v62  ;;  %v5519_v34 = vadd.f32 %v1047_v25, %v984_v28  ;;  %v1112_v16 = vsel %vm610_vm4, %v1110_v29, %v1111_v24  ;;  %v1118_v5 = vrot.slane %v1091_v27, 3  ;;  %v5525_v44 = vadd.f32 %v1049_v32, %v985_v55 }
 0x104   : > { %4643 = vpush %v1455_v11  ;;  %s4610_s3 = spop %4609  ;;  %v1094_v11 = vmul.f32 %v1081_v57, %v5404_v54  ;;  %v1120_v8 = vrot.slane %v1092_v26, 3  ;;  %v1121_v33 = vrot.slane %v1093_v6, 3  ;;  %v1117_v14 = vsel %vm610_vm4, %v1115_v9, %v1116_v35 }
 0x105   : > { %4645 = vpush %v5472_v7  ;;  %s4612_s16 = spop %4611  ;;  %v1114_v7 = vsel %vm610_vm4, %v1111_v24, %v1113_v52  ;;  %v1084_v10 = vstv %s4610_s3  ;;  %v1138_v57 = vadd.f32 %v1112_v16, %v1058_v60  ;;  %v5542_v25 = vsel %vm610_vm4, %v1116_v35, %v1118_v5 }
 0x106   : > { %s4614_s18 = spop %4613  ;;  %v1155_v56 = vstv %s4612_s16  ;;  %v1123_v50 = vrot.slane %v1094_v11, 3  ;;  %v5529_v31 = vmul.f32 %v1084_v10, %v5445_v4  ;;  %v5531_v13 = vadd.f32 %v1114_v7, %v1059_v48 }
 0x107   : > { %v1166_v3 = vmul.f32 %v1155_v56, %v5417_v59  ;;  %v1167_v58 = vmul.f32 %v1155_v56, %v5420_v45  ;;  %v1158_v46 = vstv %s4614_s18  ;;  %v5534_v29 = vmul.f32 %v1084_v10, %v5440_v2 }
 0x108   : > { %v1168_v55 = vmul.f32 %v1155_v56, %v5401_v42  ;;  %v1169_v24 = vmul.f32 %v1158_v46, %v5431_v0  ;;  %v5539_v52 = vmul.f32 %v1158_v46, %v5391_v40  ;;  %v5546_v48 = vsel %vm610_vm4, %v1120_v8, %v1121_v33 }
 0x109   : > { %v1190_v27 = vrot.slane %v1166_v3, 4  ;;  %v1191_v26 = vrot.slane %v1167_v58, 4  ;;  %v1124_v6 = vsel %vm610_vm4, %v1121_v33, %v1123_v50  ;;  %v5550_v11 = vmul.f32 %v1084_v10, %v5426_v49  ;;  %v1619_v8 = vpop.permute.xlu2 %1618 }
 0x10a   : > { %v1459_v28 = vpop.permute.xlu0 %1458  ;;  %v1539_v62 = vpop.permute.xlu1 %1538  ;;  %v1193_v16 = vrot.slane %v1168_v55, 4  ;;  %v1195_v7 = vrot.slane %v1169_v24, 4  ;;  %v1140_v55 = vadd.f32 %v1117_v14, %v5504_v30  ;;  %v1143_v22 = vadd.f32 %v1124_v6, %v5513_v15 }
 0x10b   : > { %4647 = vpush %v1459_v28 }
 0x10c   : > { %4649 = vpush %v1461_v63  ;;  %s4616_s4 = spop %4615  ;;  %v5553_v63 = vmul.f32 %v1158_v46, %v5394_v41  ;;  %v1192_v46 = vsel %vm687_vm5, %v1190_v27, %v1191_v26  ;;  %v1194_v30 = vsel %vm687_vm5, %v1191_v26, %v1193_v16 }
 0x10d   : > { %4651 = vpush %v5493_v47  ;;  %v1161_v60 = vstv %s4616_s4  ;;  %s4618_s15 = spop %4617  ;;  %v1218_v14 = vadd.f32 %v1192_v46, %v1138_v57 }
 0x10e   : > { %s4620_s2 = spop %4619  ;;  %v5557_v9 = vmul.f32 %v1161_v60, %v5434_v1  ;;  %v1174_v47 = vmul.f32 %v1161_v60, %v5404_v54  ;;  %v1164_v10 = vstv %s4618_s15  ;;  %v1172_v24 = vmul.f32 %v1161_v60, %v5437_v53 }
 0x10f   : > { %v1235_v35 = vstv %s4620_s2  ;;  %v5573_v27 = vmul.f32 %v1164_v10, %v5445_v4  ;;  %v5580_v60 = vmul.f32 %v1164_v10, %v5440_v2  ;;  %v5601_v46 = vmul.f32 %v1164_v10, %v5426_v49 }
 0x110   : > { %v1246_v3 = vmul.f32 %v1235_v35, %v5417_v59  ;;  %v1247_v58 = vmul.f32 %v1235_v35, %v5420_v45  ;;  %v1248_v50 = vmul.f32 %v1235_v35, %v5401_v42  ;;  %v1201_v32 = vrot.slane %v5557_v9, 4 }
 0x111   : > { %v1203_v56 = vrot.slane %v1174_v47, 4  ;;  %v8017_v35 = vrot.slane %v5539_v52, 4  ;;  %v1200_v21 = vrot.slane %v1172_v24, 4 }
 0x112   : > { %v1537_v28 = vpop.permute.xlu0 %1536  ;;  %v1617_v5 = vpop.permute.xlu1 %1616  ;;  %v1270_v9 = vrot.slane %v1246_v3, 5  ;;  %v1271_v47 = vrot.slane %v1247_v58, 5  ;;  %v1273_v6 = vrot.slane %v1248_v50, 5  ;;  %v1142_v50 = vadd.f32 %v5546_v48, %v5508_v43 }
 0x113   : > { %4653 = vpush %v1537_v28  ;;  %v1197_v33 = vsel %vm687_vm5, %v1195_v7, %v8017_v35  ;;  %v1204_v26 = vsel %vm687_vm5, %v1201_v32, %v1203_v56 }
 0x114   : > { %4655 = vpush %v1539_v62  ;;  %s4622_s3 = spop %4621  ;;  %v1220_v35 = vadd.f32 %v1197_v33, %v1140_v55  ;;  %v1272_v20 = vsel %vm764_vm6, %v1270_v9, %v1271_v47  ;;  %v5611_v10 = vadd.f32 %v1204_v26, %v1143_v22  ;;  %v1202_v33 = vsel %vm687_vm5, %v1200_v21, %v1201_v32 }
 0x115   : > { %4657 = vpush %v1541_v61  ;;  %v1238_v15 = vstv %s4622_s3  ;;  %s4624_s16 = spop %4623 }
 0x116   : > { %v1249_v62 = vmul.f32 %v1238_v15, %v5431_v0  ;;  %v5584_v28 = vmul.f32 %v1238_v15, %v5391_v40  ;;  %v1241_v23 = vstv %s4624_s16  ;;  %v5587_v7 = vmul.f32 %v1238_v15, %v5394_v41  ;;  %s4626_s18 = spop %4625  ;;  %s8020_s16 = smov 127  }
 0x117   : > { %v5590_v57 = vmul.f32 %v1241_v23, %v5437_v53  ;;  %v5595_v3 = vmul.f32 %v1241_v23, %v5434_v1  ;;  %v5598_v58 = vmul.f32 %v1241_v23, %v5404_v54  ;;  %v1274_v23 = vsel %vm764_vm6, %v1271_v47, %v1273_v6 }
 0x118   : > { %v1275_v16 = vrot.slane %v1249_v62, 5  ;;  %v7881_v61 = vrot.slane %v5584_v28, 5  ;;  %v1219_v62 = vadd.f32 %v1194_v30, %v5531_v13  ;;  %v1244_v19 = vstv %s4626_s18  ;;  %s8029_s18 = smov 126  }
 0x119   : > { %v1278_v55 = vrot.slane %v5587_v7, 5  ;;  %v1280_v24 = vrot.slane %v5590_v57, 5  ;;  %v1283_v13 = vrot.slane %v5598_v58, 5  ;;  %v1298_v6 = vadd.f32 %v1272_v20, %v1218_v14  ;;  %v1697_v7 = vpop.permute.xlu2 %1696 }
 0x11a   : > { %v1615_v56 = vpop.permute.xlu0 %1614  ;;  %v1277_v15 = vsel %vm764_vm6, %v1275_v16, %v7881_v61  ;;  %v1281_v16 = vrot.slane %v5595_v3, 5  ;;  %v1695_v22 = vpop.permute.xlu1 %1694  ;;  %v1299_v47 = vadd.f32 %v1274_v23, %v1219_v62 }
 0x11b   : > { %4659 = vpush %v1615_v56  ;;  %v1300_v9 = vadd.f32 %v1277_v15, %v1220_v35 }
 0x11c   : > { %4661 = vpush %v1617_v5  ;;  %s4628_s4 = spop %4627 }
 0x11d   : > { %4663 = vpush %v1619_v8  ;;  %v1315_v30 = vstv %s4628_s4  ;;  %s4630_s15 = spop %4629 }
 0x11e   : > { %v1326_v43 = vmul.f32 %v1315_v30, %v5417_v59  ;;  %v1327_v21 = vmul.f32 %v1315_v30, %v5420_v45  ;;  %v1328_v48 = vmul.f32 %v1315_v30, %v5401_v42  ;;  %v1318_v32 = vstv %s4630_s15  ;;  %s4632_s2 = spop %4631 }
 0x11f   : > { %v1329_v57 = vmul.f32 %v1318_v32, %v5431_v0  ;;  %v1330_v5 = vmul.f32 %v1318_v32, %v5391_v40  ;;  %v1331_v8 = vmul.f32 %v1318_v32, %v5394_v41  ;;  %v1321_v26 = vstv %s4632_s2 }
 0x120   : > { %v1350_v3 = vrot.slane %v1326_v43, 6  ;;  %v1351_v58 = vrot.slane %v1327_v21, 6  ;;  %v1353_v35 = vrot.slane %v1328_v48, 6  ;;  %v1332_v20 = vmul.f32 %v1321_v26, %v5437_v53 }
 0x121   : > { %v1355_v14 = vrot.slane %v1329_v57, 6  ;;  %v1356_v56 = vrot.slane %v1330_v5, 6  ;;  %v1358_v15 = vrot.slane %v1331_v8, 6  ;;  %v1333_v62 = vmul.f32 %v1321_v26, %v5434_v1 }
 0x122   : > { %v1334_v23 = vmul.f32 %v1321_v26, %v5404_v54  ;;  %v1360_v30 = vrot.slane %v1332_v20, 6  ;;  %v1621_v61 = vpop.permute.xlu0 %1620  ;;  %v1354_v18 = vsel %vm841_vm7, %v1351_v58, %v1353_v35  ;;  %v1352_v17 = vsel %vm841_vm7, %v1350_v3, %v1351_v58 }
 0x123   : > { %v1361_v32 = vrot.slane %v1333_v62, 6  ;;  %4665 = vpush %v1621_v61  ;;  %v1357_v43 = vsel %vm841_vm7, %v1355_v14, %v1356_v56  ;;  %v1379_v21 = vadd.f32 %v1354_v18, %v1299_v47  ;;  %v1378_v48 = vadd.f32 %v1352_v17, %v1298_v6 }
 0x124   : > { %v1363_v12 = vrot.slane %v1334_v23, 6  ;;  %4667 = vpush %v1695_v22  ;;  %s4634_s3 = spop %4633  ;;  %v1380_v57 = vadd.f32 %v1357_v43, %v1300_v9  ;;  %v1141_v5 = vadd.f32 %v5542_v25, %v5506_v51  ;;  %v8018_v8 = vrot.slane %v5553_v63, 4  ;;  %v1701_v22 = vpop.permute.xlu1 %1700 }
 0x125   : > { %v8019_v26 = vrot.slane %v5539_v52, 4  ;;  %v1208_v3 = vrot.slane %v5601_v46, 4  ;;  %v1255_v61 = vmul.f32 %v1244_v19, %v5445_v4  ;;  %v1256_v18 = vmul.f32 %v1244_v19, %v5440_v2  ;;  %4669 = vpush %v1697_v7  ;;  %1396 = vrot.lane.b32.xlu2 %v1379_v21, %s8020_s16  ;;  %1394 = vrot.lane.b32.xlu1 %v1378_v48, %s8020_s16 }
 0x126   : > { %v1324_v17 = vstv %s4634_s3  ;;  %v1257_v51 = vmul.f32 %v1244_v19, %v5426_v49  ;;  %1398 = vrot.lane.b32.xlu0 %v1380_v57, %s8020_s16  ;;  %v1284_v52 = vsel %vm764_vm6, %v1281_v16, %v1283_v13  ;;  %v1282_v25 = vsel %vm764_vm6, %v1280_v24, %v1281_v16  ;;  %v1775_v13 = vpop.permute.xlu2 %1774 }
 0x127   : > { %v1199_v35 = vsel %vm687_vm5, %v8019_v26, %v8018_v8  ;;  %v8021_v63 = vrot.slane %v5584_v28, 5  ;;  %v1222_v9 = vadd.f32 %v1202_v33, %v1142_v50  ;;  %v1362_v47 = vsel %vm841_vm7, %v1360_v30, %v1361_v32 }
 0x128   : > { %v1221_v6 = vadd.f32 %v1199_v35, %v1141_v5  ;;  %v1359_v7 = vsel %vm841_vm7, %v1356_v56, %v1358_v15  ;;  %v1335_v58 = vmul.f32 %v1324_v17, %v5445_v4  ;;  %v1336_v19 = vmul.f32 %v1324_v17, %v5440_v2 }
 0x129   : > { %v1279_v46 = vsel %vm764_vm6, %v8021_v63, %v1278_v55  ;;  %v1337_v20 = vmul.f32 %v1324_v17, %v5426_v49  ;;  %v1364_v24 = vsel %vm841_vm7, %v1361_v32, %v1363_v12  ;;  %v8022_v28 = vrot.slane %v5534_v29, 3 }
 0x12a   : > { %v8023_v55 = vrot.slane %v5529_v31, 3  ;;  %v1303_v33 = vadd.f32 %v1284_v52, %v5611_v10  ;;  %v1302_v16 = vadd.f32 %v1282_v25, %v1222_v9  ;;  %v1301_v14 = vadd.f32 %v1279_v46, %v1221_v6  ;;  %v1699_v12 = vpop.permute.xlu0 %1698 }
 0x12b   : > { %v8024_v56 = vrot.slane %v5550_v11, 3  ;;  %v8025_v15 = vmov %v8022_v28  ;;  %v1285_v23 = vrot.slane %v1255_v61, 5  ;;  %v1286_v30 = vrot.slane %v1256_v18, 5  ;;  %4671 = vpush %v1699_v12 }
 0x12c   : > { %v1127_v50 = vsel %vm610_vm4, %v8023_v55, %v8022_v28  ;;  %v1288_v43 = vrot.slane %v1257_v51, 5  ;;  %v1383_v32 = vadd.f32 %v1364_v24, %v1303_v33  ;;  %v1382_v21 = vadd.f32 %v1362_v47, %v1302_v16  ;;  %4673 = vpush %v1701_v22  ;;  %v1779_v52 = vpop.permute.xlu1 %1778  ;;  %s4636_s4 = spop %4635 }
 0x12d   : > { %v1129_v62 = vsel %vm610_vm4, %v8025_v15, %v8024_v56  ;;  %v1381_v31 = vadd.f32 %v1359_v7, %v1301_v14  ;;  %v8026_v48 = vrot.slane %v5580_v60, 4  ;;  %v1365_v57 = vrot.slane %v1335_v58, 6  ;;  %4675 = vpush %v1775_v13  ;;  %s5703_s15 = spop %4637 }
 0x12e   : > { %v1366_v5 = vrot.slane %v1336_v19, 6  ;;  %v1368_v8 = vrot.slane %v1337_v20, 6  ;;  %v8028_v11 = vrot.slane %v5573_v27, 4  ;;  %1402 = vrot.lane.b32.xlu2 %v1382_v21, %s8020_s16  ;;  %v1145_v35 = vadd.f32 %v1129_v62, %v5525_v44  ;;  %1404 = vrot.lane.b32.xlu0 %v1383_v32, %s8020_s16  ;;  %v1781_v46 = vpop.permute.xlu2 %1780  ;;  %s5705_s2 = spop %4639 }
 0x12f   : > { %v1209_v10 = vsel %vm687_vm5, %v8026_v48, %v1208_v3  ;;  %v8027_v29 = vmov %v8026_v48  ;;  %1400 = vrot.lane.b32.xlu1 %v1381_v31, %s8020_s16  ;;  %v1144_v61 = vadd.f32 %v1127_v50, %v5519_v34  ;;  %v1289_v3 = vsel %vm764_vm6, %v1286_v30, %v1288_v43 }
 0x130   : > { %v1207_v26 = vsel %vm687_vm5, %v8028_v11, %v8027_v29  ;;  %v1287_v18 = vsel %vm764_vm6, %v1285_v23, %v1286_v30  ;;  %v1225_v60 = vadd.f32 %v1209_v10, %v1145_v35  ;;  %v1369_v27 = vsel %vm841_vm7, %v1366_v5, %v1368_v8 }
 0x131   : > { %v1224_v17 = vadd.f32 %v1207_v26, %v1144_v61  ;;  %v1367_v51 = vsel %vm841_vm7, %v1365_v57, %v1366_v5  ;;  %v1435_v50 = vstv %s4636_s4  ;;  %v1438_v43 = vstv %s5703_s15 }
 0x132   : > { %v1305_v25 = vadd.f32 %v1289_v3, %v1225_v60  ;;  %v1777_v22 = vpop.permute.xlu0 %1776  ;;  %v1446_v62 = vmul.f32 %v1435_v50, %v5417_v59  ;;  %v1447_v23 = vmul.f32 %v1435_v50, %v5420_v45  ;;  %v1441_v12 = vstv %s5705_s2 }
 0x133   : > { %v1304_v63 = vadd.f32 %v1287_v18, %v1224_v17  ;;  %4677 = vpush %v1777_v22  ;;  %v1448_v61 = vmul.f32 %v1438_v43, %v5431_v0  ;;  %v1449_v3 = vmul.f32 %v1438_v43, %v5391_v40 }
 0x134   : > { %v1385_v44 = vadd.f32 %v1369_v27, %v1305_v25  ;;  %4679 = vpush %v1779_v52  ;;  %s5709_s3 = spop %4641  ;;  %v1450_v27 = vmul.f32 %v1441_v12, %v5437_v53 }
 0x135   : > { %v1384_v34 = vadd.f32 %v1367_v51, %v1304_v63  ;;  %4681 = vpush %v1781_v46  ;;  %v1451_v51 = vmul.f32 %v1441_v12, %v5434_v1  ;;  %v1444_v52 = vstv %s5709_s3 }
 0x136   : > { %1408 = vrot.lane.b32.xlu2 %v1385_v44, %s8020_s16  ;;  %1854 = vrot.lane.b32.xlu0 %v5184_v36, %s8029_s18  ;;  %v1452_v50 = vmul.f32 %v1444_v52, %v5445_v4 }
 0x137   : > { %1406 = vrot.lane.b32.xlu1 %v1384_v34, %s8020_s16  ;;  %s4644_s16 = spop %4643 }
 0x138   : > { %s4646_s0 = spop %4645  ;;  %v1463_v13 = vstv %s4644_s16 }
 0x139   : > { %v1466_v24 = vstv %s4646_s0  ;;  %v1474_v33 = vmul.f32 %v1463_v13, %v5417_v59  ;;  %v1475_v16 = vmul.f32 %v1463_v13, %v5420_v45  ;;  %v1476_v14 = vmul.f32 %v1463_v13, %v5401_v42 }
 0x13a   : > { %v1477_v56 = vmul.f32 %v1466_v24, %v5431_v0  ;;  %v1478_v15 = vmul.f32 %v1466_v24, %v5391_v40  ;;  %v1479_v32 = vmul.f32 %v1466_v24, %v5394_v41 }
 0x13b   : > { %v1498_v31 = vrot.slane %v1474_v33, 1  ;;  %v1499_v48 = vrot.slane %v1475_v16, 1  ;;  %v1501_v10 = vrot.slane %v1476_v14, 1  ;;  %v1453_v33 = vmul.f32 %v1444_v52, %v5440_v2 }
 0x13c   : > { %s4648_s7 = spop %4647  ;;  %v1503_v57 = vrot.slane %v1477_v56, 1  ;;  %v1504_v8 = vrot.slane %v1478_v15, 1  ;;  %v1506_v25 = vrot.slane %v1479_v32, 1 }
 0x13d   : > { %s4650_s17 = spop %4649  ;;  %v1469_v30 = vstv %s4648_s7  ;;  %v1500_v63 = vsel %vm456_vm2, %v1498_v31, %v1499_v48  ;;  %v1502_v46 = vsel %vm456_vm2, %v1499_v48, %v1501_v10 }
 0x13e   : > { %1858 = vrot.lane.b32.xlu2 %v5196_v38, %s8029_s18  ;;  %1860 = vrot.lane.b32.xlu0 %v5209_v39, %s8029_s18  ;;  %v1472_v21 = vstv %s4650_s17  ;;  %v1480_v29 = vmul.f32 %v1469_v30, %v5437_v53  ;;  %v1481_v11 = vmul.f32 %v1469_v30, %v5434_v1  ;;  %v1482_v26 = vmul.f32 %v1469_v30, %v5404_v54  ;;  %s4652_s0 = spop %4651 }
 0x13f   : > { %1856 = vrot.lane.b32.xlu1 %v5188_v37, %s8029_s18  ;;  %v1483_v18 = vmul.f32 %v1472_v21, %v5445_v4  ;;  %v1484_v60 = vmul.f32 %v1472_v21, %v5440_v2  ;;  %v1485_v22 = vmul.f32 %v1472_v21, %v5426_v49  ;;  %v1543_v44 = vstv %s4652_s0 }
 0x140   : > { %v1505_v34 = vsel %vm456_vm2, %v1503_v57, %v1504_v8  ;;  %v1508_v13 = vrot.slane %v1480_v29, 1  ;;  %v1509_v24 = vrot.slane %v1481_v11, 1  ;;  %v5743_v56 = vadd.f32 %v1500_v63, %v1446_v62 }
 0x141   : > { %v1513_v16 = vrot.slane %v1483_v18, 1  ;;  %v1514_v14 = vrot.slane %v1484_v60, 1  ;;  %v5745_v15 = vadd.f32 %v1502_v46, %v1447_v23  ;;  %v1554_v30 = vmul.f32 %v1543_v44, %v5417_v59 }
 0x142   : > { %v1507_v12 = vsel %vm456_vm2, %v1504_v8, %v1506_v25  ;;  %v5749_v32 = vadd.f32 %v1505_v34, %v1448_v61  ;;  %v1516_v21 = vrot.slane %v1485_v22, 1  ;;  %v1510_v48 = vsel %vm456_vm2, %v1508_v13, %v1509_v24 }
 0x143   : > { %v1555_v57 = vmul.f32 %v1543_v44, %v5420_v45  ;;  %v1556_v62 = vmul.f32 %v1543_v44, %v5401_v42  ;;  %v1515_v23 = vsel %vm456_vm2, %v1513_v16, %v1514_v14  ;;  %v1529_v11 = vadd.f32 %v1507_v12, %v1449_v3 }
 0x144   : > { %s4654_s17 = spop %4653  ;;  %v1530_v18 = vadd.f32 %v1510_v48, %v1450_v27  ;;  %v1532_v25 = vadd.f32 %v1515_v23, %v1452_v50 }
 0x145   : > { %s4656_s7 = spop %4655  ;;  %v1546_v43 = vstv %s4654_s17  ;;  %v1579_v63 = vrot.slane %v1555_v57, 2  ;;  %v1581_v44 = vrot.slane %v1556_v62, 2 }
 0x146   : > { %v1549_v31 = vstv %s4656_s7  ;;  %s4658_s4 = spop %4657  ;;  %v1558_v29 = vmul.f32 %v1546_v43, %v5391_v40  ;;  %v1559_v8 = vmul.f32 %v1546_v43, %v5394_v41 }
 0x147   : > { %v1561_v61 = vmul.f32 %v1549_v31, %v5434_v1  ;;  %v1552_v52 = vstv %s4658_s4  ;;  %v1562_v46 = vmul.f32 %v1549_v31, %v5404_v54  ;;  %v1582_v48 = vsel %vm533_vm3, %v1579_v63, %v1581_v44 }
 0x148   : > { %v1584_v13 = vrot.slane %v1558_v29, 2  ;;  %v1586_v3 = vrot.slane %v1559_v8, 2  ;;  %v1563_v16 = vmul.f32 %v1552_v52, %v5445_v4  ;;  %v1564_v27 = vmul.f32 %v1552_v52, %v5440_v2 }
 0x14a   : > { %v1593_v8 = vrot.slane %v1563_v16, 2 }
 0x14c   : > { %s4660_s15 = spop %4659 }
 0x14d   : > { %s4662_s2 = spop %4661  ;;  %v1623_v22 = vstv %s4660_s15 }
 0x14e   : > { %s4664_s3 = spop %4663  ;;  %v1634_v50 = vmul.f32 %v1623_v22, %v5417_v59 }
 0x14f   : > { %v1629_v62 = vstv %s4664_s3 }
 0x154   : > { %s4666_s16 = spop %4665 }
 0x155   : > { %s4668_s0 = spop %4667 }
 0x156   : > { %s4670_s17 = spop %4669 }
 0x15c   : > { %s4672_s7 = spop %4671 }
 0x15d   : > { %s4674_s4 = spop %4673 }
 0x15e   : > { %s4676_s15 = spop %4675 }
 0x17f   : > { %v5695_v9 = vpop.permute.xlu2 %1396 }
 0x180   : > { %8030 = vst [vmem:[#allocation47_spill] sm:$0xff] %v5695_v9 }
 0x188   : > { %v5701_v7 = vpop.permute.xlu2 %1402 }
 0x189   : > { %8033 = vst [vmem:[#allocation50_spill] sm:$0xff] %v5701_v7 }
 0x190   : > { %v5713_v20 = vpop.permute.xlu2 %1408 }
 0x191   : > { %8036 = vst [vmem:[#allocation53_spill] sm:$0xff] %v5713_v20 }
 0x197   : > { %v5697_v47 = vpop.permute.xlu1 %1394 }
 0x198   : > { %8031 = vst [vmem:[#allocation48_spill] sm:$0xff] %v5697_v47  ;;  %v5699_v6 = vpop.permute.xlu0 %1398  ;;  %v1859_v5 = vpop.permute.xlu2 %1858 }
 0x199   : > { %8032 = vst [vmem:[#allocation49_spill] sm:$0xff] %v5699_v6 }
 0x1a0   : > { %v5711_v19 = vpop.permute.xlu0 %1404 }
 0x1a1   : > { %v5707_v58 = vpop.permute.xlu1 %1400  ;;  %8035 = vst [vmem:[#allocation52_spill] sm:$0xff] %v5711_v19 }
 0x1a2   : > { %8034 = vst [vmem:[#allocation51_spill] sm:$0xff] %v5707_v58 }
 0x1a8   : > { %v1855_v55 = vpop.permute.xlu0 %1854 }
 0x1a9   : > { %v5715_v28 = vpop.permute.xlu1 %1406  ;;  %4683 = vpush %v1855_v55  ;;  %v1511_v55 = vrot.slane %v1482_v26, 1  ;;  %v1578_v26 = vrot.slane %v1554_v30, 2  ;;  %v1626_v30 = vstv %s4662_s2  ;;  %s4678_s2 = spop %4677 }
 0x1aa   : > { %8037 = vst [vmem:[#allocation54_spill] sm:$0xff] %v5715_v28  ;;  %v1638_v57 = vmul.f32 %v1626_v30, %v5391_v40  ;;  %s4680_s3 = spop %4679 }
 0x1ab   : > { %v1512_v10 = vsel %vm456_vm2, %v1509_v24, %v1511_v55  ;;  %v1589_v55 = vrot.slane %v1561_v61, 2  ;;  %v1580_v12 = vsel %vm533_vm3, %v1578_v26, %v1579_v63  ;;  %v1658_v26 = vrot.slane %v1634_v50, 3 }
 0x1ac   : > { %v1531_v60 = vadd.f32 %v1512_v10, %v1451_v51  ;;  %v1565_v51 = vmul.f32 %v1552_v52, %v5426_v49  ;;  %v1637_v10 = vmul.f32 %v1626_v30, %v5431_v0  ;;  %v1639_v63 = vmul.f32 %v1626_v30, %v5394_v41 }
 0x1ad   : > { %v1664_v44 = vrot.slane %v1638_v57, 3  ;;  %v1703_v57 = vstv %s4668_s0 }
 0x1b0   : > { %v1861_v17 = vpop.permute.xlu0 %1860 }
 0x1b1   : > { %v1857_v35 = vpop.permute.xlu1 %1856 }
 0x1b2   : > { %4685 = vpush %v1857_v35  ;;  %v1560_v35 = vmul.f32 %v1549_v31, %v5437_v53  ;;  %v1636_v31 = vmul.f32 %v1623_v22, %v5401_v42 }
 0x1b3   : > { %4687 = vpush %v1859_v5  ;;  %v1557_v5 = vmul.f32 %v1546_v43, %v5431_v0 }
 0x1b4   : > { %4689 = vpush %v1861_v17  ;;  %v1517_v17 = vsel %vm456_vm2, %v1514_v14, %v1516_v21  ;;  %v1588_v24 = vrot.slane %v1560_v35, 2  ;;  %v1635_v14 = vmul.f32 %v1623_v22, %v5420_v45  ;;  %v1591_v21 = vrot.slane %v1562_v46, 2 }
 0x1b5   : > { %v1583_v34 = vrot.slane %v1557_v5, 2  ;;  %v1533_v43 = vadd.f32 %v1517_v17, %v1453_v33  ;;  %v1587_v5 = vsel %vm533_vm3, %v1584_v13, %v1586_v3  ;;  %v1594_v33 = vrot.slane %v1564_v27, 2 }
 0x1b6   : > { %v1590_v29 = vsel %vm533_vm3, %v1588_v24, %v1589_v55  ;;  %v1596_v35 = vrot.slane %v1565_v51, 2  ;;  %v1659_v61 = vrot.slane %v1635_v14, 3  ;;  %v1592_v17 = vsel %vm533_vm3, %v1589_v55, %v1591_v21 }
 0x1b7   : > { %v1585_v23 = vsel %vm533_vm3, %v1583_v34, %v1584_v13  ;;  %v1661_v52 = vrot.slane %v1636_v31, 3  ;;  %v1640_v46 = vmul.f32 %v1629_v62, %v5437_v53  ;;  %v1663_v22 = vrot.slane %v1637_v10, 3 }
 0x1b8   : > { %v1641_v34 = vmul.f32 %v1629_v62, %v5434_v1  ;;  %v1642_v13 = vmul.f32 %v1629_v62, %v5404_v54  ;;  %v1606_v3 = vadd.f32 %v1580_v12, %v5743_v56  ;;  %v1607_v24 = vadd.f32 %v1582_v48, %v5745_v15 }
 0x1b9   : > { %v1608_v16 = vadd.f32 %v1585_v23, %v5749_v32  ;;  %v1609_v27 = vadd.f32 %v1587_v5, %v1529_v11  ;;  %v1610_v55 = vadd.f32 %v1590_v29, %v1530_v18  ;;  %v1595_v30 = vsel %vm533_vm3, %v1593_v8, %v1594_v33 }
 0x1ba   : > { %v1597_v51 = vsel %vm533_vm3, %v1594_v33, %v1596_v35  ;;  %v1660_v50 = vsel %vm610_vm4, %v1658_v26, %v1659_v61  ;;  %v1611_v14 = vadd.f32 %v1592_v17, %v1531_v60  ;;  %v1662_v21 = vsel %vm610_vm4, %v1659_v61, %v1661_v52 }
 0x1bb   : > { %v1666_v31 = vrot.slane %v1639_v63, 3  ;;  %v1632_v10 = vstv %s4666_s16  ;;  %v1665_v56 = vsel %vm610_vm4, %v1663_v22, %v1664_v44  ;;  %v1668_v15 = vrot.slane %v1640_v46, 3  ;;  %s4682_s16 = spop %4681 }
 0x1bc   : > { %v1669_v12 = vrot.slane %v1641_v34, 3  ;;  %v1671_v32 = vrot.slane %v1642_v13, 3  ;;  %v5789_v11 = vadd.f32 %v1595_v30, %v1532_v25  ;;  %v5791_v18 = vadd.f32 %v1597_v51, %v1533_v43 }
 0x1bd   : > { %v5793_v48 = vadd.f32 %v1660_v50, %v1606_v3  ;;  %v5795_v62 = vadd.f32 %v1662_v21, %v1607_v24  ;;  %v1643_v60 = vmul.f32 %v1632_v10, %v5445_v4  ;;  %v1644_v23 = vmul.f32 %v1632_v10, %v5440_v2 }
 0x1be   : > { %v1706_v5 = vstv %s4670_s17  ;;  %v1667_v29 = vsel %vm610_vm4, %v1664_v44, %v1666_v31  ;;  %v5800_v8 = vadd.f32 %v1665_v56, %v1608_v16  ;;  %v1645_v33 = vmul.f32 %v1632_v10, %v5426_v49 }
 0x1bf   : > { %v1709_v25 = vstv %s4672_s7  ;;  %v1670_v43 = vsel %vm610_vm4, %v1668_v15, %v1669_v12  ;;  %v1672_v35 = vsel %vm610_vm4, %v1669_v12, %v1671_v32  ;;  %v1714_v26 = vmul.f32 %v1703_v57, %v5417_v59 }
 0x1c0   : > { %v1715_v61 = vmul.f32 %v1703_v57, %v5420_v45  ;;  %v1716_v17 = vmul.f32 %v1703_v57, %v5401_v42  ;;  %v1717_v52 = vmul.f32 %v1706_v5, %v5431_v0  ;;  %v1718_v63 = vmul.f32 %v1706_v5, %v5391_v40 }
 0x1c1   : > { %v1719_v46 = vmul.f32 %v1706_v5, %v5394_v41  ;;  %v1673_v22 = vrot.slane %v1643_v60, 3  ;;  %v1674_v44 = vrot.slane %v1644_v23, 3  ;;  %v1720_v34 = vmul.f32 %v1709_v25, %v5437_v53 }
 0x1c2   : > { %v5813_v13 = vmul.f32 %v1709_v25, %v5434_v1  ;;  %v5815_v3 = vadd.f32 %v1667_v29, %v1609_v27  ;;  %v5817_v24 = vadd.f32 %v1670_v43, %v1610_v55  ;;  %v5819_v16 = vadd.f32 %v1672_v35, %v1611_v14 }
 0x1c3   : > { %v1676_v30 = vrot.slane %v1645_v33, 3  ;;  %v1738_v51 = vrot.slane %v1714_v26, 4  ;;  %v1739_v50 = vrot.slane %v1715_v61, 4  ;;  %v1712_v21 = vstv %s4674_s4 }
 0x1c4   : > { %v1783_v31 = vstv %s4676_s15  ;;  %v1741_v10 = vrot.slane %v1716_v17, 4  ;;  %v1743_v56 = vrot.slane %v1717_v52, 4  ;;  %v1744_v15 = vrot.slane %v1718_v63, 4 }
 0x1c5   : > { %v1746_v12 = vrot.slane %v1719_v46, 4  ;;  %v5822_v32 = vsel %vm610_vm4, %v1673_v22, %v1674_v44  ;;  %v5825_v27 = vmul.f32 %v1709_v25, %v5404_v54  ;;  %v1748_v55 = vrot.slane %v1720_v34, 4 }
 0x1c6   : > { %v7888_v14 = vrot.slane %v5813_v13, 4  ;;  %v5829_v57 = vmul.f32 %v1712_v21, %v5445_v4  ;;  %v1795_v60 = vmul.f32 %v1783_v31, %v5420_v45  ;;  %v1796_v23 = vmul.f32 %v1783_v31, %v5401_v42 }
 0x1c7   : > { %v1786_v5 = vstv %s4678_s2  ;;  %v5834_v29 = vsel %vm610_vm4, %v1674_v44, %v1676_v30  ;;  %v5837_v33 = vmul.f32 %v1712_v21, %v5440_v2  ;;  %v5840_v25 = vmul.f32 %v1712_v21, %v5426_v49 }
 0x1c8   : > { %v1794_v43 = vmul.f32 %v1783_v31, %v5417_v59  ;;  %v1740_v35 = vsel %vm687_vm5, %v1738_v51, %v1739_v50  ;;  %v1742_v26 = vsel %vm687_vm5, %v1739_v50, %v1741_v10  ;;  %v1745_v61 = vsel %vm687_vm5, %v1743_v56, %v1744_v15 }
 0x1c9   : > { %v1747_v17 = vsel %vm687_vm5, %v1744_v15, %v1746_v12  ;;  %v1797_v63 = vmul.f32 %v1786_v5, %v5431_v0  ;;  %v1798_v46 = vmul.f32 %v1786_v5, %v5391_v40  ;;  %v1789_v22 = vstv %s4680_s3  ;;  %s4990_s3 = smov 125  }
 0x1ca   : > { %v1750_v44 = vsel %vm687_vm5, %v1748_v55, %v7888_v14  ;;  %v1819_v30 = vrot.slane %v1795_v60, 5  ;;  %v1821_v51 = vrot.slane %v1796_v23, 5  ;;  %v1818_v31 = vrot.slane %v1794_v43, 5 }
 0x1cb   : > { %v1792_v10 = vstv %s4682_s16  ;;  %v1799_v56 = vmul.f32 %v1786_v5, %v5394_v41  ;;  %v1800_v15 = vmul.f32 %v1789_v22, %v5437_v53  ;;  %v1767_v12 = vadd.f32 %v1742_v26, %v5795_v62 }
 0x1cc   : > { %v1766_v52 = vadd.f32 %v1740_v35, %v5793_v48  ;;  %v1823_v28 = vrot.slane %v1797_v63, 5  ;;  %v1824_v55 = vrot.slane %v1798_v46, 5  ;;  %v5861_v34 = vmul.f32 %v1789_v22, %v5434_v1 }
 0x1cd   : > { %v1768_v60 = vadd.f32 %v1745_v61, %v5800_v8  ;;  %v5865_v23 = vmul.f32 %v1789_v22, %v5404_v54  ;;  %v5868_v43 = vmul.f32 %v1792_v10, %v5445_v4  ;;  %v1822_v21 = vsel %vm764_vm6, %v1819_v30, %v1821_v51 }
 0x1ce   : > { %v1820_v26 = vsel %vm764_vm6, %v1818_v31, %v1819_v30  ;;  %v1826_v63 = vrot.slane %v1799_v56, 5  ;;  %v1828_v46 = vrot.slane %v1800_v15, 5  ;;  %v5876_v8 = vmul.f32 %v1792_v10, %v5440_v2 }
 0x1cf   : > { %v1769_v61 = vadd.f32 %v1747_v17, %v5815_v3  ;;  %v1829_v22 = vrot.slane %v5861_v34, 5  ;;  %v1805_v19 = vmul.f32 %v1792_v10, %v5426_v49  ;;  %v1847_v58 = vadd.f32 %v1822_v21, %v1767_v12 }
 0x1d0   : > { %v1846_v6 = vadd.f32 %v1820_v26, %v1766_v52  ;;  %v1831_v30 = vrot.slane %v5865_v23, 5  ;;  %v1833_v31 = vrot.slane %v5868_v43, 5  ;;  %v1834_v3 = vrot.slane %v5876_v8, 5 }
 0x1d1   : > { %v1830_v21 = vsel %vm764_vm6, %v1828_v46, %v1829_v22 }
 0x1da   : > { %s4684_s0 = spop %4683 }
 0x1db   : > { %v1863_v5 = vstv %s4684_s0 }
 0x1dc   : > { %v1874_v62 = vmul.f32 %v1863_v5, %v5417_v59  ;;  %v1875_v48 = vmul.f32 %v1863_v5, %v5420_v45  ;;  %v1876_v35 = vmul.f32 %v1863_v5, %v5401_v42  ;;  %v1825_v5 = vsel %vm764_vm6, %v1823_v28, %v1824_v55 }
 0x1dd   : > { %v1848_v52 = vadd.f32 %v1825_v5, %v1768_v60  ;;  %v1770_v28 = vadd.f32 %v1750_v44, %v5817_v24 }
 0x1de   : > { %v1898_v50 = vrot.slane %v1874_v62, 6  ;;  %v1899_v14 = vrot.slane %v1875_v48, 6  ;;  %v1901_v51 = vrot.slane %v1876_v35, 6  ;;  %v1827_v48 = vsel %vm764_vm6, %v1824_v55, %v1826_v63 }
 0x1df   : > { %v1849_v44 = vadd.f32 %v1827_v48, %v1769_v61 }
 0x1e0   : > { %v1902_v56 = vsel %vm841_vm7, %v1899_v14, %v1901_v51  ;;  %v1900_v15 = vsel %vm841_vm7, %v1898_v50, %v1899_v14 }
 0x1e1   : > { %v1927_v17 = vadd.f32 %v1902_v56, %v1847_v58  ;;  %v1926_v62 = vadd.f32 %v1900_v15, %v1846_v6  ;;  %v1850_v56 = vadd.f32 %v1830_v21, %v1770_v28 }
 0x1e3   : > { %s4686_s17 = spop %4685  ;;  %1944 = vrot.lane.b32.xlu2 %v1927_v17, %s8029_s18  ;;  %1942 = vrot.lane.b32.xlu1 %v1926_v62, %s8029_s18  ;;  %v1836_v17 = vrot.slane %v1805_v19, 5  ;;  %v8042_v19 = vrot.slane %v5840_v25, 4 }
 0x1e4   : > { %v1866_v10 = vstv %s4686_s17  ;;  %s4688_s7 = spop %4687 }
 0x1e5   : > { %v1877_v12 = vmul.f32 %v1866_v10, %v5431_v0  ;;  %v1878_v14 = vmul.f32 %v1866_v10, %v5391_v40  ;;  %v1879_v50 = vmul.f32 %v1866_v10, %v5394_v41  ;;  %v1869_v23 = vstv %s4688_s7  ;;  %s4690_s4 = spop %4689 }
 0x1e6   : > { %v1880_v6 = vmul.f32 %v1869_v23, %v5437_v53  ;;  %v1881_v58 = vmul.f32 %v1869_v23, %v5434_v1  ;;  %v1872_v24 = vstv %s4690_s4  ;;  %v1882_v35 = vmul.f32 %v1869_v23, %v5404_v54 }
 0x1e7   : > { %v1903_v55 = vrot.slane %v1877_v12, 6  ;;  %v1904_v60 = vrot.slane %v1878_v14, 6  ;;  %v1906_v43 = vrot.slane %v1879_v50, 6  ;;  %v1883_v46 = vmul.f32 %v1872_v24, %v5445_v4 }
 0x1e8   : > { %v1908_v26 = vrot.slane %v1880_v6, 6  ;;  %v1909_v63 = vrot.slane %v1881_v58, 6  ;;  %v1884_v8 = vmul.f32 %v1872_v24, %v5440_v2  ;;  %v1885_v51 = vmul.f32 %v1872_v24, %v5426_v49 }
 0x1e9   : > { %v1905_v5 = vsel %vm841_vm7, %v1903_v55, %v1904_v60  ;;  %v1907_v15 = vsel %vm841_vm7, %v1904_v60, %v1906_v43  ;;  %v8038_v10 = vrot.slane %v5825_v27, 4  ;;  %v8039_v12 = vrot.slane %v5813_v13, 4 }
 0x1ea   : > { %v1928_v61 = vadd.f32 %v1905_v5, %v1848_v52  ;;  %v1910_v62 = vsel %vm841_vm7, %v1908_v26, %v1909_v63  ;;  %v1929_v48 = vadd.f32 %v1907_v15, %v1849_v44  ;;  %v8040_v50 = vrot.slane %v5837_v33, 4  ;;  %v8046_v5 = vld [vmem:[#allocation8_spill] sm:$0xff]  ;;  %v8048_v15 = vld [vmem:[#allocation10_spill] sm:$0xff] }
 0x1eb   : > { %v1752_v14 = vsel %vm687_vm5, %v8039_v12, %v8038_v10  ;;  %v8041_v23 = vrot.slane %v5829_v57, 4  ;;  %v1911_v28 = vrot.slane %v1882_v35, 6  ;;  %v1930_v21 = vadd.f32 %v1910_v62, %v1850_v56  ;;  %v8047_v56 = vld [vmem:[#allocation9_spill] sm:$0xff]  ;;  %v8051_v62 = vld [vmem:[#allocation12_spill] sm:$0xff]  ;;  %v8054_v12 = vld [vmem:[#allocation15_spill] sm:$0xff] }
 0x1ec   : > { %v8043_v52 = vmov %v8040_v50  ;;  %v1913_v24 = vrot.slane %v1883_v46, 6  ;;  %v1914_v27 = vrot.slane %v1884_v8, 6  ;;  %v1916_v44 = vrot.slane %v1885_v51, 6  ;;  %1946 = vrot.lane.b32.xlu0 %v1928_v61, %s8029_s18  ;;  %1948 = vrot.lane.b32.xlu1 %v1929_v48, %s8029_s18  ;;  %v8045_v51 = vld [vmem:[#allocation7_spill] sm:$0xff]  ;;  %v8050_v61 = vld [vmem:[#allocation13_spill] sm:$0xff]  ;;  %v8052_v48 = vld [vmem:[#allocation14_spill] sm:$0xff] }
 0x1ed   : > { %v1755_v6 = vsel %vm687_vm5, %v8041_v23, %v8040_v50  ;;  %v1757_v58 = vsel %vm687_vm5, %v8043_v52, %v8042_v19  ;;  %v1692_v13 = vadd.f32 %v5822_v32, %v5789_v11  ;;  %v1693_v57 = vadd.f32 %v5834_v29, %v5791_v18  ;;  %1950 = vrot.lane.b32.xlu2 %v1930_v21, %s8029_s18  ;;  %v8053_v10 = vld [vmem:[#allocation16_spill] sm:$0xff]  ;;  %v8056_v50 = vld [vmem:[#allocation18_spill] sm:$0xff]  ;;  %v8057_v23 = vld [vmem:[#allocation19_spill] sm:$0xff] }
 0x1ee   : > { %v1832_v33 = vsel %vm764_vm6, %v1829_v22, %v1831_v30  ;;  %v1771_v25 = vadd.f32 %v1752_v14, %v5819_v16  ;;  %v1837_v55 = vsel %vm764_vm6, %v1834_v3, %v1836_v17  ;;  %v1835_v60 = vsel %vm764_vm6, %v1833_v31, %v1834_v3  ;;  %v5943_v16 = vld [vmem:[%s7834_s1] sm:$0x7f]  ;;  %v5950_v30 = vld [vmem:[%s7834_s1 + $0x8] sm:$0x7f]  ;;  %v5957_v31 = vld [vmem:[%s7834_s1 + $0x10] sm:$0x7f] }
 0x1ef   : > { %v1912_v43 = vsel %vm841_vm7, %v1909_v63, %v1911_v28  ;;  %v1773_v11 = vadd.f32 %v1757_v58, %v1693_v57  ;;  %v1772_v32 = vadd.f32 %v1755_v6, %v1692_v13  ;;  %v1917_v18 = vsel %vm841_vm7, %v1914_v27, %v1916_v44  ;;  %v5964_v3 = vld [vmem:[%s7834_s1 + $0x18] sm:$0x7f]  ;;  %v8044_v63 = vld [vmem:[#allocation6_spill] sm:$0xff]  ;;  %v8049_v17 = vld [vmem:[#allocation11_spill] sm:$0xff] }
 0x1f0   : > { %v1851_v35 = vadd.f32 %v1832_v33, %v1771_v25  ;;  %v1915_v29 = vsel %vm841_vm7, %v1913_v24, %v1914_v27  ;;  %v8055_v14 = vld [vmem:[#allocation17_spill] sm:$0xff]  ;;  %v8058_v6 = vld [vmem:[#allocation20_spill] sm:$0xff]  ;;  %v8060_v21 = vld [vmem:[#allocation22_spill] sm:$0xff] }
 0x1f1   : > { %v1853_v26 = vadd.f32 %v1837_v55, %v1773_v11  ;;  %v1852_v46 = vadd.f32 %v1835_v60, %v1772_v32  ;;  %v8059_v28 = vld [vmem:[#allocation21_spill] sm:$0xff]  ;;  %v8061_v19 = vld [vmem:[#allocation23_spill] sm:$0xff]  ;;  %v8062_v52 = vld [vmem:[#allocation24_spill] sm:$0xff] }
 0x1f2   : > { %v1931_v34 = vadd.f32 %v1912_v43, %v1851_v35  ;;  %v8063_v58 = vld [vmem:[#allocation25_spill] sm:$0xff] }
 0x1f3   : > { %v1933_v8 = vadd.f32 %v1917_v18, %v1853_v26  ;;  %v1932_v22 = vadd.f32 %v1915_v29, %v1852_v46 }
 0x1f4   : > { %1952 = vrot.lane.b32.xlu0 %v1931_v34, %s8029_s18 }
 0x1f5   : > { %1956 = vrot.lane.b32.xlu2 %v1933_v8, %s8029_s18  ;;  %1954 = vrot.lane.b32.xlu1 %v1932_v22, %s8029_s18 }
 0x1fc   : > { %1974 = vrot.lane.b32.xlu0 %v5943_v16, %s4990_s3 }
 0x1fd   : > { %1976 = vrot.lane.b32.xlu1 %v5950_v30, %s4990_s3  ;;  %1978 = vrot.lane.b32.xlu2 %v5957_v31, %s4990_s3 }
 0x204   : > { %1980 = vrot.lane.b32.xlu0 %v5964_v3, %s4990_s3 }
 0x205   : > { %2002 = vrot.lane.b32.xlu1 %v8044_v63, %s4990_s3  ;;  %2004 = vrot.lane.b32.xlu2 %v8045_v51, %s4990_s3 }
 0x20c   : > { %2006 = vrot.lane.b32.xlu0 %v8046_v5, %s4990_s3 }
 0x20d   : > { %2008 = vrot.lane.b32.xlu1 %v8047_v56, %s4990_s3  ;;  %2082 = vrot.lane.b32.xlu2 %v8048_v15, %s4990_s3 }
 0x214   : > { %2084 = vrot.lane.b32.xlu0 %v8049_v17, %s4990_s3 }
 0x215   : > { %2086 = vrot.lane.b32.xlu1 %v8050_v61, %s4990_s3  ;;  %2088 = vrot.lane.b32.xlu2 %v8051_v62, %s4990_s3 }
 0x21c   : > { %2162 = vrot.lane.b32.xlu0 %v8052_v48, %s4990_s3 }
 0x21d   : > { %2164 = vrot.lane.b32.xlu1 %v8053_v10, %s4990_s3  ;;  %2166 = vrot.lane.b32.xlu2 %v8054_v12, %s4990_s3 }
 0x224   : > { %2168 = vrot.lane.b32.xlu0 %v8055_v14, %s4990_s3 }
 0x225   : > { %2242 = vrot.lane.b32.xlu1 %v8056_v50, %s4990_s3  ;;  %2244 = vrot.lane.b32.xlu2 %v8057_v23, %s4990_s3 }
 0x22c   : > { %2246 = vrot.lane.b32.xlu0 %v8058_v6, %s4990_s3 }
 0x22d   : > { %2248 = vrot.lane.b32.xlu1 %v8059_v28, %s4990_s3  ;;  %2322 = vrot.lane.b32.xlu2 %v8060_v21, %s4990_s3 }
 0x234   : > { %2324 = vrot.lane.b32.xlu0 %v8061_v19, %s4990_s3 }
 0x235   : > { %2326 = vrot.lane.b32.xlu1 %v8062_v52, %s4990_s3  ;;  %2328 = vrot.lane.b32.xlu2 %v8063_v58, %s4990_s3 }
 0x23c   : > { %2402 = vrot.lane.b32.xlu0 %v5184_v36, %s4990_s3 }
 0x23d   : > { %2404 = vrot.lane.b32.xlu1 %v5188_v37, %s4990_s3  ;;  %2406 = vrot.lane.b32.xlu2 %v5196_v38, %s4990_s3  ;;  %v6014_v24 = vpop.permute.xlu2 %1944 }
 0x23e   : > { %8064 = vst [vmem:[#allocation55_spill] sm:$0xff] %v6014_v24 }
 0x244   : > { %2408 = vrot.lane.b32.xlu0 %v5209_v39, %s4990_s3 }
 0x247   : > { %v6018_v27 = vpop.permute.xlu2 %1950 }
 0x248   : > { %8065 = vst [vmem:[#allocation56_spill] sm:$0xff] %v6018_v27 }
 0x24f   : > { %v6020_v44 = vpop.permute.xlu2 %1956 }
 0x250   : > { %8066 = vst [vmem:[#allocation57_spill] sm:$0xff] %v6020_v44 }
 0x255   : > { %v6022_v13 = vpop.permute.xlu1 %1942 }
 0x256   : > { %8067 = vst [vmem:[#allocation58_spill] sm:$0xff] %v6022_v13 }
 0x257   : > { %v1979_v33 = vpop.permute.xlu2 %1978 }
 0x25e   : > { %v6024_v57 = vpop.permute.xlu0 %1946  ;;  %v6026_v25 = vpop.permute.xlu1 %1948 }
 0x25f   : > { %8068 = vst [vmem:[#allocation59_spill] sm:$0xff] %v6024_v57  ;;  %v2005_v43 = vpop.permute.xlu2 %2004 }
 0x260   : > { %8069 = vst [vmem:[#allocation60_spill] sm:$0xff] %v6026_v25 }
 0x266   : > { %v6028_v55 = vpop.permute.xlu0 %1952 }
 0x267   : > { %8070 = vst [vmem:[#allocation61_spill] sm:$0xff] %v6028_v55  ;;  %v6030_v60 = vpop.permute.xlu1 %1954  ;;  %v2083_v35 = vpop.permute.xlu2 %2082 }
 0x268   : > { %8071 = vst [vmem:[#allocation62_spill] sm:$0xff] %v6030_v60 }
 0x26e   : > { %v1975_v11 = vpop.permute.xlu0 %1974 }
 0x26f   : > { %v1977_v32 = vpop.permute.xlu1 %1976  ;;  %4691 = vpush %v1975_v11  ;;  %v2089_v26 = vpop.permute.xlu2 %2088 }
 0x270   : > { %4693 = vpush %v1977_v32 }
 0x271   : > { %4695 = vpush %v1979_v33 }
 0x276   : > { %v1981_v18 = vpop.permute.xlu0 %1980 }
 0x277   : > { %v2003_v29 = vpop.permute.xlu1 %2002  ;;  %4697 = vpush %v1981_v18  ;;  %v2167_v22 = vpop.permute.xlu2 %2166 }
 0x278   : > { %4699 = vpush %v2003_v29 }
 0x279   : > { %4701 = vpush %v2005_v43 }
 0x27e   : > { %v2007_v46 = vpop.permute.xlu0 %2006 }
 0x27f   : > { %v2009_v34 = vpop.permute.xlu1 %2008  ;;  %4703 = vpush %v2007_v46  ;;  %v2245_v32 = vpop.permute.xlu2 %2244 }
 0x280   : > { %4705 = vpush %v2009_v34 }
 0x281   : > { %4707 = vpush %v2083_v35 }
 0x286   : > { %v2085_v8 = vpop.permute.xlu0 %2084 }
 0x287   : > { %v2087_v60 = vpop.permute.xlu1 %2086  ;;  %4709 = vpush %v2085_v8  ;;  %v2323_v29 = vpop.permute.xlu2 %2322 }
 0x288   : > { %4711 = vpush %v2087_v60 }
 0x289   : > { %4713 = vpush %v2089_v26 }
 0x28e   : > { %v2163_v11 = vpop.permute.xlu0 %2162 }
 0x28f   : > { %v2165_v33 = vpop.permute.xlu1 %2164  ;;  %4715 = vpush %v2163_v11  ;;  %v2329_v60 = vpop.permute.xlu2 %2328 }
 0x290   : > { %4717 = vpush %v2165_v33 }
 0x291   : > { %4719 = vpush %v2167_v22 }
 0x296   : > { %v2169_v18 = vpop.permute.xlu0 %2168 }
 0x297   : > { %v2243_v43 = vpop.permute.xlu1 %2242  ;;  %4721 = vpush %v2169_v18  ;;  %v2407_v33 = vpop.permute.xlu2 %2406 }
 0x298   : > { %4723 = vpush %v2243_v43 }
 0x299   : > { %4725 = vpush %v2245_v32 }
 0x29e   : > { %v2247_v46 = vpop.permute.xlu0 %2246 }
 0x29f   : > { %v2249_v35 = vpop.permute.xlu1 %2248  ;;  %4727 = vpush %v2247_v46 }
 0x2a0   : > { %4729 = vpush %v2249_v35  ;;  %s4692_s15 = spop %4691 }
 0x2a1   : > { %4731 = vpush %v2323_v29  ;;  %s6032_s2 = spop %4693  ;;  %v1983_v8 = vstv %s4692_s15 }
 0x2a2   : > { %s6034_s16 = spop %4695  ;;  %v1986_v22 = vstv %s6032_s2  ;;  %v1994_v29 = vmul.f32 %v1983_v8, %v5417_v59  ;;  %v1995_v46 = vmul.f32 %v1983_v8, %v5420_v45 }
 0x2a3   : > { %v6042_v35 = vmul.f32 %v1986_v22, %v5431_v0 }
 0x2a6   : > { %v2325_v26 = vpop.permute.xlu0 %2324 }
 0x2a7   : > { %v2327_v34 = vpop.permute.xlu1 %2326  ;;  %4733 = vpush %v2325_v26  ;;  %v1989_v26 = vstv %s6034_s16 }
 0x2a8   : > { %4735 = vpush %v2327_v34  ;;  %s6036_s0 = spop %4697  ;;  %v1999_v28 = vmul.f32 %v1989_v26, %v5434_v1 }
 0x2a9   : > { %4737 = vpush %v2329_v60  ;;  %s4700_s17 = spop %4699  ;;  %v1992_v24 = vstv %s6036_s0 }
 0x2aa   : > { %s4702_s7 = spop %4701  ;;  %v2011_v11 = vstv %s4700_s17 }
 0x2ab   : > { %v2014_v18 = vstv %s4702_s7  ;;  %v2022_v60 = vmul.f32 %v2011_v11, %v5417_v59  ;;  %v2023_v34 = vmul.f32 %v2011_v11, %v5420_v45  ;;  %v2024_v55 = vmul.f32 %v2011_v11, %v5401_v42 }
 0x2ac   : > { %v2026_v8 = vmul.f32 %v2014_v18, %v5391_v40  ;;  %v2027_v57 = vmul.f32 %v2014_v18, %v5394_v41 }
 0x2ad   : > { %v2046_v9 = vrot.slane %v2022_v60, 1  ;;  %v2049_v39 = vrot.slane %v2024_v55, 1  ;;  %v2000_v55 = vmul.f32 %v1992_v24, %v5445_v4 }
 0x2ae   : > { %v2403_v32 = vpop.permute.xlu0 %2402  ;;  %v2052_v37 = vrot.slane %v2026_v8, 1 }
 0x2af   : > { %v2405_v43 = vpop.permute.xlu1 %2404  ;;  %4739 = vpush %v2403_v32  ;;  %v2025_v32 = vmul.f32 %v2014_v18, %v5431_v0  ;;  %v2047_v18 = vrot.slane %v2023_v34, 1 }
 0x2b0   : > { %4741 = vpush %v2405_v43  ;;  %s4704_s18 = spop %4703  ;;  %v1997_v43 = vmul.f32 %v1986_v22, %v5391_v40  ;;  %v2054_v22 = vrot.slane %v2027_v57, 1  ;;  %v2001_v57 = vmul.f32 %v1992_v24, %v5440_v2 }
 0x2b1   : > { %4743 = vpush %v2407_v33  ;;  %v2017_v25 = vstv %s4704_s18  ;;  %s4706_s4 = spop %4705  ;;  %v1998_v33 = vmul.f32 %v1989_v26, %v5437_v53  ;;  %v2051_v38 = vrot.slane %v2025_v32, 1 }
 0x2b2   : > { %v2020_v13 = vstv %s4706_s4  ;;  %s4708_s15 = spop %4707  ;;  %v2028_v47 = vmul.f32 %v2017_v25, %v5437_v53  ;;  %v2029_v44 = vmul.f32 %v2017_v25, %v5434_v1  ;;  %v2030_v11 = vmul.f32 %v2017_v25, %v5404_v54 }
 0x2b3   : > { %v2031_v20 = vmul.f32 %v2020_v13, %v5445_v4  ;;  %v2032_v27 = vmul.f32 %v2020_v13, %v5440_v2  ;;  %v2091_v7 = vstv %s4708_s15  ;;  %v2033_v36 = vmul.f32 %v2020_v13, %v5426_v49 }
 0x2b4   : > { %v2056_v52 = vrot.slane %v2028_v47, 1  ;;  %v2057_v19 = vrot.slane %v2029_v44, 1  ;;  %v2059_v25 = vrot.slane %v2030_v11, 1  ;;  %v2102_v21 = vmul.f32 %v2091_v7, %v5417_v59 }
 0x2b5   : > { %v2061_v6 = vrot.slane %v2031_v20, 1  ;;  %v2062_v23 = vrot.slane %v2032_v27, 1  ;;  %v2103_v60 = vmul.f32 %v2091_v7, %v5420_v45  ;;  %v2048_v13 = vsel %vm456_vm2, %v2046_v9, %v2047_v18 }
 0x2b6   : > { %v2409_v58 = vpop.permute.xlu0 %2408  ;;  %v2050_v47 = vsel %vm456_vm2, %v2047_v18, %v2049_v39  ;;  %v2053_v44 = vsel %vm456_vm2, %v2051_v38, %v2052_v37  ;;  %v2064_v32 = vrot.slane %v2033_v36, 1  ;;  %v2058_v20 = vsel %vm456_vm2, %v2056_v52, %v2057_v19 }
 0x2b7   : > { %4745 = vpush %v2409_v58  ;;  %v2055_v58 = vsel %vm456_vm2, %v2052_v37, %v2054_v22  ;;  %v2060_v27 = vsel %vm456_vm2, %v2057_v19, %v2059_v25  ;;  %v2104_v26 = vmul.f32 %v2091_v7, %v5401_v42  ;;  %v2126_v8 = vrot.slane %v2102_v21, 2 }
 0x2b8   : > { %s4710_s2 = spop %4709  ;;  %v2063_v24 = vsel %vm456_vm2, %v2061_v6, %v2062_v23  ;;  %v2127_v11 = vrot.slane %v2103_v60, 2  ;;  %v2074_v38 = vadd.f32 %v2048_v13, %v1994_v29  ;;  %v2075_v18 = vadd.f32 %v2050_v47, %v1995_v46 }
 0x2b9   : > { %v2094_v34 = vstv %s4710_s2  ;;  %s4712_s16 = spop %4711  ;;  %v2076_v52 = vadd.f32 %v2053_v44, %v6042_v35  ;;  %v2077_v22 = vadd.f32 %v2055_v58, %v1997_v43  ;;  %v6077_v19 = vadd.f32 %v2058_v20, %v1998_v33 }
 0x2ba   : > { %v2105_v9 = vmul.f32 %v2094_v34, %v5431_v0  ;;  %v2106_v39 = vmul.f32 %v2094_v34, %v5391_v40  ;;  %s4714_s0 = spop %4713  ;;  %v2107_v36 = vmul.f32 %v2094_v34, %v5394_v41  ;;  %v2097_v37 = vstv %s4712_s16 }
 0x2bb   : > { %v6079_v7 = vadd.f32 %v2060_v27, %v1999_v28  ;;  %v2065_v6 = vsel %vm456_vm2, %v2062_v23, %v2064_v32  ;;  %v6082_v21 = vadd.f32 %v2063_v24, %v2000_v55  ;;  %v2129_v25 = vrot.slane %v2104_v26, 2 }
 0x2bc   : > { %v2100_v60 = vstv %s4714_s0  ;;  %v2128_v50 = vsel %vm533_vm3, %v2126_v8, %v2127_v11  ;;  %v2131_v29 = vrot.slane %v2105_v9, 2  ;;  %v2132_v46 = vrot.slane %v2106_v39, 2 }
 0x2bd   : > { %v2108_v13 = vmul.f32 %v2097_v37, %v5437_v53  ;;  %v2134_v34 = vrot.slane %v2107_v36, 2  ;;  %v2109_v35 = vmul.f32 %v2097_v37, %v5434_v1  ;;  %v2110_v43 = vmul.f32 %v2097_v37, %v5404_v54 }
 0x2be   : > { %v2111_v23 = vmul.f32 %v2100_v60, %v5445_v4  ;;  %v2112_v33 = vmul.f32 %v2100_v60, %v5440_v2  ;;  %v2113_v55 = vmul.f32 %v2100_v60, %v5426_v49  ;;  %v2081_v44 = vadd.f32 %v2065_v6, %v2001_v57 }
 0x2bf   : > { %v2130_v58 = vsel %vm533_vm3, %v2127_v11, %v2129_v25  ;;  %v2154_v27 = vadd.f32 %v2128_v50, %v2074_v38  ;;  %v2133_v26 = vsel %vm533_vm3, %v2131_v29, %v2132_v46  ;;  %v2136_v8 = vrot.slane %v2108_v13, 2 }
 0x2c0   : > { %s4716_s17 = spop %4715  ;;  %v2135_v9 = vsel %vm533_vm3, %v2132_v46, %v2134_v34  ;;  %v2137_v39 = vrot.slane %v2109_v35, 2  ;;  %v2139_v36 = vrot.slane %v2110_v43, 2  ;;  %v2141_v60 = vrot.slane %v2111_v23, 2 }
 0x2c1   : > { %v2171_v28 = vstv %s4716_s17  ;;  %s4718_s7 = spop %4717  ;;  %v2142_v14 = vrot.slane %v2112_v33, 2  ;;  %v2144_v12 = vrot.slane %v2113_v55, 2  ;;  %v2155_v50 = vadd.f32 %v2130_v58, %v2075_v18 }
 0x2c2   : > { %v2182_v47 = vmul.f32 %v2171_v28, %v5417_v59  ;;  %s4720_s18 = spop %4719  ;;  %v2183_v32 = vmul.f32 %v2171_v28, %v5420_v45  ;;  %v2184_v20 = vmul.f32 %v2171_v28, %v5401_v42  ;;  %v2174_v24 = vstv %s4718_s7 }
 0x2c3   : > { %v2177_v37 = vstv %s4720_s18  ;;  %v2185_v25 = vmul.f32 %v2174_v24, %v5431_v0  ;;  %v2186_v28 = vmul.f32 %v2174_v24, %v5391_v40  ;;  %v2187_v38 = vmul.f32 %v2174_v24, %v5394_v41 }
 0x2c4   : > { %v2206_v57 = vrot.slane %v2182_v47, 3  ;;  %v2207_v6 = vrot.slane %v2183_v32, 3  ;;  %v2209_v11 = vrot.slane %v2184_v20, 3  ;;  %v2188_v29 = vmul.f32 %v2177_v37, %v5437_v53 }
 0x2c5   : > { %v2189_v46 = vmul.f32 %v2177_v37, %v5434_v1  ;;  %v2156_v13 = vadd.f32 %v2133_v26, %v2076_v52  ;;  %v2157_v34 = vadd.f32 %v2135_v9, %v2077_v22  ;;  %v2138_v35 = vsel %vm533_vm3, %v2136_v8, %v2137_v39 }
 0x2c6   : > { %v2140_v43 = vsel %vm533_vm3, %v2137_v39, %v2139_v36  ;;  %v2143_v23 = vsel %vm533_vm3, %v2141_v60, %v2142_v14  ;;  %v2145_v33 = vsel %vm533_vm3, %v2142_v14, %v2144_v12  ;;  %v2190_v18 = vmul.f32 %v2177_v37, %v5404_v54 }
 0x2c7   : > { %v2208_v47 = vsel %vm610_vm4, %v2206_v57, %v2207_v6  ;;  %v2210_v58 = vsel %vm610_vm4, %v2207_v6, %v2209_v11  ;;  %v2211_v32 = vrot.slane %v2185_v25, 3  ;;  %v2212_v20 = vrot.slane %v2186_v28, 3 }
 0x2c8   : > { %s4722_s4 = spop %4721  ;;  %v2214_v52 = vrot.slane %v2187_v38, 3  ;;  %v2216_v22 = vrot.slane %v2188_v29, 3  ;;  %v2217_v26 = vrot.slane %v2189_v46, 3  ;;  %v2158_v24 = vadd.f32 %v2138_v35, %v6077_v19 }
 0x2c9   : > { %s4724_s15 = spop %4723  ;;  %v2180_v55 = vstv %s4722_s4  ;;  %v2159_v9 = vadd.f32 %v2140_v43, %v6079_v7  ;;  %v6116_v39 = vadd.f32 %v2143_v23, %v6082_v21  ;;  %v2219_v36 = vrot.slane %v2190_v18, 3 }
 0x2ca   : > { %v2251_v8 = vstv %s4724_s15  ;;  %s4726_s2 = spop %4725  ;;  %v2191_v12 = vmul.f32 %v2180_v55, %v5445_v4  ;;  %v6113_v14 = vmul.f32 %v2180_v55, %v5440_v2  ;;  %v6120_v57 = vadd.f32 %v2145_v33, %v2081_v44 }
 0x2cb   : > { %v2262_v37 = vmul.f32 %v2251_v8, %v5417_v59  ;;  %v2263_v60 = vmul.f32 %v2251_v8, %v5420_v45  ;;  %v6122_v6 = vadd.f32 %v2208_v47, %v2154_v27  ;;  %v6124_v19 = vadd.f32 %v2210_v58, %v2155_v50 }
 0x2cc   : > { %v2254_v7 = vstv %s4726_s2  ;;  %v2213_v11 = vsel %vm610_vm4, %v2211_v32, %v2212_v20  ;;  %v2215_v25 = vsel %vm610_vm4, %v2212_v20, %v2214_v52  ;;  %v2218_v28 = vsel %vm610_vm4, %v2216_v22, %v2217_v26 }
 0x2cd   : > { %v2264_v21 = vmul.f32 %v2251_v8, %v5401_v42  ;;  %v6131_v38 = vmul.f32 %v2180_v55, %v5426_v49  ;;  %v2221_v29 = vrot.slane %v2191_v12, 3  ;;  %v7897_v44 = vrot.slane %v6113_v14, 3 }
 0x2ce   : > { %v2220_v50 = vsel %vm610_vm4, %v2217_v26, %v2219_v36  ;;  %v2286_v46 = vrot.slane %v2262_v37, 4  ;;  %v2287_v35 = vrot.slane %v2263_v60, 4  ;;  %v2265_v43 = vmul.f32 %v2254_v7, %v5431_v0 }
 0x2cf   : > { %v2236_v23 = vadd.f32 %v2213_v11, %v2156_v13  ;;  %v6136_v33 = vadd.f32 %v2215_v25, %v2157_v34  ;;  %v2266_v18 = vmul.f32 %v2254_v7, %v5391_v40  ;;  %v2267_v47 = vmul.f32 %v2254_v7, %v5394_v41 }
 0x2d0   : > { %s4728_s16 = spop %4727  ;;  %v6140_v55 = vadd.f32 %v2218_v28, %v2158_v24  ;;  %v2289_v58 = vrot.slane %v2264_v21, 4  ;;  %v6144_v52 = vadd.f32 %v2220_v50, %v2159_v9  ;;  %v6149_v13 = vsel %vm610_vm4, %v2221_v29, %v7897_v44 }
 0x2d1   : > { %v2257_v27 = vstv %s4728_s16  ;;  %s4730_s0 = spop %4729  ;;  %v2288_v26 = vsel %vm687_vm5, %v2286_v46, %v2287_v35  ;;  %v2291_v8 = vrot.slane %v2265_v43, 4  ;;  %v2292_v36 = vrot.slane %v2266_v18, 4 }
 0x2d2   : > { %s4732_s17 = spop %4731  ;;  %v2268_v32 = vmul.f32 %v2257_v27, %v5437_v53  ;;  %v2269_v20 = vmul.f32 %v2257_v27, %v5434_v1  ;;  %v2270_v22 = vmul.f32 %v2257_v27, %v5404_v54  ;;  %v2260_v24 = vstv %s4730_s0 }
 0x2d3   : > { %v2331_v12 = vstv %s4732_s17  ;;  %v2294_v37 = vrot.slane %v2267_v47, 4  ;;  %v2290_v7 = vsel %vm687_vm5, %v2287_v35, %v2289_v58  ;;  %v6159_v29 = vmul.f32 %v2260_v24, %v5445_v4  ;;  %s4991_s17 = smov 124  }
 0x2d4   : > { %v2342_v60 = vmul.f32 %v2331_v12, %v5417_v59  ;;  %v2343_v9 = vmul.f32 %v2331_v12, %v5420_v45  ;;  %v2296_v11 = vrot.slane %v2268_v32, 4  ;;  %v2297_v25 = vrot.slane %v2269_v20, 4 }
 0x2d5   : > { %v2344_v28 = vmul.f32 %v2331_v12, %v5401_v42  ;;  %v2299_v21 = vrot.slane %v2270_v22, 4  ;;  %v6162_v27 = vmul.f32 %v2260_v24, %v5440_v2  ;;  %v2293_v47 = vsel %vm687_vm5, %v2291_v8, %v2292_v36 }
 0x2d6   : > { %v2367_v46 = vrot.slane %v2343_v9, 5  ;;  %v6170_v58 = vsel %vm687_vm5, %v2292_v36, %v2294_v37  ;;  %v2366_v32 = vrot.slane %v2342_v60, 5  ;;  %v6183_v8 = vmul.f32 %v2260_v24, %v5426_v49 }
 0x2d7   : > { %v2369_v43 = vrot.slane %v2344_v28, 5  ;;  %v6180_v28 = vsel %vm687_vm5, %v2296_v11, %v2297_v25  ;;  %v2300_v60 = vsel %vm687_vm5, %v2297_v25, %v2299_v21  ;;  %v2316_v11 = vadd.f32 %v2293_v47, %v2236_v23 }
 0x2d8   : > { %s4734_s7 = spop %4733  ;;  %v2315_v48 = vadd.f32 %v2290_v7, %v6124_v19  ;;  %v2314_v24 = vadd.f32 %v2288_v26, %v6122_v6  ;;  %v2368_v25 = vsel %vm764_vm6, %v2366_v32, %v2367_v46 }
 0x2d9   : > { %v2334_v50 = vstv %s4734_s7  ;;  %s4736_s18 = spop %4735  ;;  %v2370_v34 = vsel %vm764_vm6, %v2367_v46, %v2369_v43 }
 0x2da   : > { %v2345_v18 = vmul.f32 %v2334_v50, %v5431_v0  ;;  %v6166_v35 = vmul.f32 %v2334_v50, %v5391_v40  ;;  %v2337_v20 = vstv %s4736_s18  ;;  %v6173_v22 = vmul.f32 %v2334_v50, %v5394_v41  ;;  %s4738_s4 = spop %4737 }
 0x2db   : > { %v6177_v9 = vmul.f32 %v2337_v20, %v5437_v53  ;;  %v2349_v36 = vmul.f32 %v2337_v20, %v5434_v1  ;;  %v2350_v37 = vmul.f32 %v2337_v20, %v5404_v54  ;;  %v2340_v10 = vstv %s4738_s4 }
 0x2dc   : > { %v2371_v12 = vrot.slane %v2345_v18, 5  ;;  %v7898_v44 = vrot.slane %v6166_v35, 5  ;;  %v2374_v62 = vrot.slane %v6173_v22, 5 }
 0x2dd   : > { %v2376_v20 = vrot.slane %v6177_v9, 5  ;;  %v2377_v61 = vrot.slane %v2349_v36, 5  ;;  %v2379_v21 = vrot.slane %v2350_v37, 5 }
 0x2de   : > { %v2373_v18 = vsel %vm764_vm6, %v2371_v12, %v7898_v44  ;;  %v2395_v44 = vadd.f32 %v2370_v34, %v2315_v48 }
 0x2df   : > { %v2396_v12 = vadd.f32 %v2373_v18, %v2316_v11  ;;  %v2394_v18 = vadd.f32 %v2368_v25, %v2314_v24  ;;  %v2351_v24 = vmul.f32 %v2340_v10, %v5445_v4  ;;  %v2352_v25 = vmul.f32 %v2340_v10, %v5440_v2 }
 0x2e0   : > { %s4740_s15 = spop %4739 }
 0x2e1   : > { %v2411_v50 = vstv %s4740_s15  ;;  %s4742_s2 = spop %4741 }
 0x2e2   : > { %v2422_v43 = vmul.f32 %v2411_v50, %v5417_v59  ;;  %v2423_v23 = vmul.f32 %v2411_v50, %v5420_v45  ;;  %v2424_v19 = vmul.f32 %v2411_v50, %v5401_v42  ;;  %v2414_v6 = vstv %s4742_s2  ;;  %s4744_s16 = spop %4743 }
 0x2e3   : > { %v2425_v26 = vmul.f32 %v2414_v6, %v5431_v0  ;;  %v2426_v7 = vmul.f32 %v2414_v6, %v5391_v40  ;;  %v2427_v47 = vmul.f32 %v2414_v6, %v5394_v41  ;;  %v2417_v46 = vstv %s4744_s16 }
 0x2e4   : > { %v2446_v32 = vrot.slane %v2422_v43, 6  ;;  %v2447_v22 = vrot.slane %v2423_v23, 6  ;;  %v2449_v9 = vrot.slane %v2424_v19, 6  ;;  %v2428_v48 = vmul.f32 %v2417_v46, %v5437_v53 }
 0x2e5   : > { %v2451_v34 = vrot.slane %v2425_v26, 6  ;;  %v2452_v36 = vrot.slane %v2426_v7, 6  ;;  %v2429_v37 = vmul.f32 %v2417_v46, %v5434_v1  ;;  %v2430_v50 = vmul.f32 %v2417_v46, %v5404_v54 }
 0x2e6   : > { %v2456_v11 = vrot.slane %v2428_v48, 6  ;;  %v2450_v0 = vsel %vm841_vm7, %v2447_v22, %v2449_v9  ;;  %v2448_v40 = vsel %vm841_vm7, %v2446_v32, %v2447_v22  ;;  %v2302_v19 = vrot.slane %v6162_v27, 4 }
 0x2e7   : > { %v2457_v42 = vrot.slane %v2429_v37, 6  ;;  %v2453_v6 = vsel %vm841_vm7, %v2451_v34, %v2452_v36  ;;  %v2475_v43 = vadd.f32 %v2450_v0, %v2395_v44  ;;  %v2474_v23 = vadd.f32 %v2448_v40, %v2394_v18 }
 0x2e8   : > { %v2304_v26 = vrot.slane %v6183_v8, 4  ;;  %v2454_v7 = vrot.slane %v2427_v47, 6  ;;  %s4746_s0 = spop %4745  ;;  %v2476_v1 = vadd.f32 %v2453_v6, %v2396_v12  ;;  %v2459_v46 = vrot.slane %v2430_v50, 6 }
 0x2e9   : > { %v2420_v9 = vstv %s4746_s0  ;;  %2492 = vrot.lane.b32.xlu2 %v2475_v43, %s4990_s3  ;;  %2490 = vrot.lane.b32.xlu1 %v2474_v23, %s4990_s3  ;;  %v2353_v0 = vmul.f32 %v2340_v10, %v5426_v49  ;;  %v2319_v40 = vadd.f32 %v2300_v60, %v6144_v52  ;;  %v2380_v44 = vsel %vm764_vm6, %v2377_v61, %v2379_v21 }
 0x2ea   : > { %2494 = vrot.lane.b32.xlu0 %v2476_v1, %s4990_s3  ;;  %v2378_v27 = vsel %vm764_vm6, %v2376_v20, %v2377_v61  ;;  %v2318_v8 = vadd.f32 %v6180_v28, %v6140_v55  ;;  %v2458_v12 = vsel %vm841_vm7, %v2456_v11, %v2457_v42  ;;  %v2317_v47 = vadd.f32 %v6170_v58, %v6136_v33 }
 0x2eb   : > { %v8072_v32 = vrot.slane %v6166_v35, 5  ;;  %v2431_v1 = vmul.f32 %v2420_v9, %v5445_v4  ;;  %v2432_v52 = vmul.f32 %v2420_v9, %v5440_v2  ;;  %v2433_v60 = vmul.f32 %v2420_v9, %v5426_v49  ;;  %v8081_v9 = vld [vmem:[#allocation17_spill] sm:$0xff] }
 0x2ec   : > { %v2455_v61 = vsel %vm841_vm7, %v2452_v36, %v2454_v7  ;;  %v8073_v20 = vrot.slane %v6131_v38, 3  ;;  %v8074_v55 = vrot.slane %v6113_v14, 3  ;;  %v2460_v33 = vsel %vm841_vm7, %v2457_v42, %v2459_v46  ;;  %v8080_v46 = vld [vmem:[#allocation15_spill] sm:$0xff] }
 0x2ed   : > { %v2375_v10 = vsel %vm764_vm6, %v8072_v32, %v2374_v62  ;;  %v2398_v58 = vadd.f32 %v2378_v27, %v2318_v8  ;;  %v2381_v21 = vrot.slane %v2351_v24, 5  ;;  %v2382_v62 = vrot.slane %v2352_v25, 5  ;;  %v8085_v27 = vld [vmem:[#allocation21_spill] sm:$0xff]  ;;  %v8086_v8 = vld [vmem:[#allocation22_spill] sm:$0xff] }
 0x2ee   : > { %v2225_v28 = vsel %vm610_vm4, %v8074_v55, %v8073_v20  ;;  %v2397_v35 = vadd.f32 %v2375_v10, %v2317_v47  ;;  %v2384_v22 = vrot.slane %v2353_v0, 5  ;;  %v2399_v48 = vadd.f32 %v2380_v44, %v2319_v40  ;;  %v8082_v0 = vld [vmem:[#allocation18_spill] sm:$0xff]  ;;  %v8083_v40 = vld [vmem:[#allocation19_spill] sm:$0xff]  ;;  %v8084_v44 = vld [vmem:[#allocation20_spill] sm:$0xff] }
 0x2ef   : > { %v8075_v34 = vrot.slane %v6159_v29, 4  ;;  %v2305_v36 = vsel %vm687_vm5, %v2302_v19, %v2304_v26  ;;  %v2478_v18 = vadd.f32 %v2458_v12, %v2398_v58  ;;  %v2461_v50 = vrot.slane %v2431_v1, 6  ;;  %v8087_v12 = vld [vmem:[#allocation23_spill] sm:$0xff]  ;;  %v8088_v47 = vld [vmem:[#allocation24_spill] sm:$0xff]  ;;  %v8089_v32 = vld [vmem:[#allocation25_spill] sm:$0xff] }
 0x2f0   : > { %v2477_v38 = vadd.f32 %v2455_v61, %v2397_v35  ;;  %v2462_v14 = vrot.slane %v2432_v52, 6  ;;  %v2464_v11 = vrot.slane %v2433_v60, 6  ;;  %v2479_v6 = vadd.f32 %v2460_v33, %v2399_v48  ;;  %v8090_v10 = vld [vmem:[#allocation26_spill] sm:$0xff]  ;;  %v8091_v1 = vld [vmem:[#allocation27_spill] sm:$0xff]  ;;  %v8092_v52 = vld [vmem:[#allocation28_spill] sm:$0xff] }
 0x2f1   : > { %v2303_v37 = vsel %vm687_vm5, %v8075_v34, %v2302_v19  ;;  %v2240_v42 = vadd.f32 %v6149_v13, %v6116_v39  ;;  %v2241_v43 = vadd.f32 %v2225_v28, %v6120_v57  ;;  %2498 = vrot.lane.b32.xlu2 %v2478_v18, %s4990_s3  ;;  %v2385_v29 = vsel %vm764_vm6, %v2382_v62, %v2384_v22  ;;  %v8093_v60 = vld [vmem:[#allocation29_spill] sm:$0xff] }
 0x2f2   : > { %2496 = vrot.lane.b32.xlu1 %v2477_v38, %s4990_s3  ;;  %2500 = vrot.lane.b32.xlu0 %v2479_v6, %s4990_s3  ;;  %v2383_v23 = vsel %vm764_vm6, %v2381_v21, %v2382_v62  ;;  %v2465_v7 = vsel %vm841_vm7, %v2462_v14, %v2464_v11  ;;  %v2463_v24 = vsel %vm841_vm7, %v2461_v50, %v2462_v14 }
 0x2f3   : > { %v2321_v19 = vadd.f32 %v2305_v36, %v2241_v43  ;;  %v2320_v26 = vadd.f32 %v2303_v37, %v2240_v42 }
 0x2f5   : > { %v2401_v25 = vadd.f32 %v2385_v29, %v2321_v19  ;;  %v2400_v39 = vadd.f32 %v2383_v23, %v2320_v26 }
 0x2f7   : > { %v2481_v13 = vadd.f32 %v2465_v7, %v2401_v25  ;;  %v2480_v57 = vadd.f32 %v2463_v24, %v2400_v39 }
 0x2f9   : > { %2504 = vrot.lane.b32.xlu2 %v2481_v13, %s4990_s3 }
 0x2fa   : > { %2502 = vrot.lane.b32.xlu1 %v2480_v57, %s4990_s3  ;;  %2522 = vrot.lane.b32.xlu0 %v5943_v16, %s4991_s17  ;;  %v8076_v16 = vld [vmem:[#allocation13_spill] sm:$0xff] }
 0x301   : > { %2526 = vrot.lane.b32.xlu2 %v5957_v31, %s4991_s17  ;;  %v8078_v31 = vld [vmem:[#allocation14_spill] sm:$0xff] }
 0x302   : > { %2524 = vrot.lane.b32.xlu1 %v5950_v30, %s4991_s17  ;;  %2528 = vrot.lane.b32.xlu0 %v5964_v3, %s4991_s17  ;;  %v8077_v30 = vld [vmem:[#allocation12_spill] sm:$0xff] }
 0x303   : > { %v8079_v3 = vld [vmem:[#allocation16_spill] sm:$0xff] }
 0x309   : > { %2552 = vrot.lane.b32.xlu2 %v8045_v51, %s4991_s17 }
 0x30a   : > { %2550 = vrot.lane.b32.xlu1 %v8044_v63, %s4991_s17  ;;  %2554 = vrot.lane.b32.xlu0 %v8046_v5, %s4991_s17 }
 0x311   : > { %2630 = vrot.lane.b32.xlu2 %v8048_v15, %s4991_s17 }
 0x312   : > { %2556 = vrot.lane.b32.xlu1 %v8047_v56, %s4991_s17  ;;  %2632 = vrot.lane.b32.xlu0 %v8049_v17, %s4991_s17 }
 0x319   : > { %2636 = vrot.lane.b32.xlu2 %v8077_v30, %s4991_s17 }
 0x31a   : > { %2634 = vrot.lane.b32.xlu1 %v8076_v16, %s4991_s17  ;;  %2710 = vrot.lane.b32.xlu0 %v8078_v31, %s4991_s17 }
 0x321   : > { %2714 = vrot.lane.b32.xlu2 %v8080_v46, %s4991_s17 }
 0x322   : > { %2712 = vrot.lane.b32.xlu1 %v8079_v3, %s4991_s17  ;;  %2716 = vrot.lane.b32.xlu0 %v8081_v9, %s4991_s17 }
 0x329   : > { %2792 = vrot.lane.b32.xlu2 %v8083_v40, %s4991_s17 }
 0x32a   : > { %2790 = vrot.lane.b32.xlu1 %v8082_v0, %s4991_s17  ;;  %2794 = vrot.lane.b32.xlu0 %v8084_v44, %s4991_s17 }
 0x331   : > { %2870 = vrot.lane.b32.xlu2 %v8086_v8, %s4991_s17 }
 0x332   : > { %2796 = vrot.lane.b32.xlu1 %v8085_v27, %s4991_s17  ;;  %2872 = vrot.lane.b32.xlu0 %v8087_v12, %s4991_s17 }
 0x339   : > { %2876 = vrot.lane.b32.xlu2 %v8089_v32, %s4991_s17 }
 0x33a   : > { %2874 = vrot.lane.b32.xlu1 %v8088_v47, %s4991_s17  ;;  %2950 = vrot.lane.b32.xlu0 %v8090_v10, %s4991_s17 }
 0x341   : > { %2954 = vrot.lane.b32.xlu2 %v8092_v52, %s4991_s17 }
 0x342   : > { %2952 = vrot.lane.b32.xlu1 %v8091_v1, %s4991_s17  ;;  %2956 = vrot.lane.b32.xlu0 %v8093_v60, %s4991_s17 }
 0x343   : > { %v6311_v61 = vpop.permute.xlu2 %2492 }
 0x344   : > { %8094 = vst [vmem:[#allocation63_spill] sm:$0xff] %v6311_v61 }
 0x34b   : > { %v6313_v20 = vpop.permute.xlu2 %2498 }
 0x34c   : > { %8095 = vst [vmem:[#allocation64_spill] sm:$0xff] %v6313_v20 }
 0x353   : > { %v6315_v55 = vpop.permute.xlu2 %2504 }
 0x354   : > { %8096 = vst [vmem:[#allocation65_spill] sm:$0xff] %v6315_v55 }
 0x35b   : > { %v6317_v28 = vpop.permute.xlu1 %2490  ;;  %v2527_v58 = vpop.permute.xlu2 %2526 }
 0x35c   : > { %8097 = vst [vmem:[#allocation66_spill] sm:$0xff] %v6317_v28  ;;  %v6319_v33 = vpop.permute.xlu0 %2494 }
 0x35d   : > { %8098 = vst [vmem:[#allocation67_spill] sm:$0xff] %v6319_v33 }
 0x363   : > { %v2553_v48 = vpop.permute.xlu2 %2552 }
 0x364   : > { %v6321_v35 = vpop.permute.xlu1 %2496  ;;  %v6323_v21 = vpop.permute.xlu0 %2500 }
 0x365   : > { %8099 = vst [vmem:[#allocation68_spill] sm:$0xff] %v6321_v35 }
 0x366   : > { %8100 = vst [vmem:[#allocation69_spill] sm:$0xff] %v6323_v21 }
 0x36b   : > { %v2631_v36 = vpop.permute.xlu2 %2630 }
 0x36c   : > { %v6325_v62 = vpop.permute.xlu1 %2502  ;;  %v2523_v22 = vpop.permute.xlu0 %2522 }
 0x36d   : > { %8101 = vst [vmem:[#allocation70_spill] sm:$0xff] %v6325_v62 }
 0x36e   : > { %4747 = vpush %v2523_v22 }
 0x373   : > { %v2637_v50 = vpop.permute.xlu2 %2636 }
 0x374   : > { %v2525_v34 = vpop.permute.xlu1 %2524  ;;  %v2529_v37 = vpop.permute.xlu0 %2528 }
 0x375   : > { %4749 = vpush %v2525_v34 }
 0x376   : > { %4751 = vpush %v2527_v58 }
 0x377   : > { %4753 = vpush %v2529_v37 }
 0x37b   : > { %v2715_v6 = vpop.permute.xlu2 %2714 }
 0x37c   : > { %v2551_v18 = vpop.permute.xlu1 %2550  ;;  %v2555_v38 = vpop.permute.xlu0 %2554 }
 0x37d   : > { %4755 = vpush %v2551_v18 }
 0x37e   : > { %4757 = vpush %v2553_v48 }
 0x37f   : > { %4759 = vpush %v2555_v38 }
 0x383   : > { %v2793_v19 = vpop.permute.xlu2 %2792 }
 0x384   : > { %v2557_v14 = vpop.permute.xlu1 %2556  ;;  %v2633_v11 = vpop.permute.xlu0 %2632 }
 0x385   : > { %4761 = vpush %v2557_v14  ;;  %v8102_v14 = vld [vmem:[#allocation39_spill] sm:$0xff] }
 0x386   : > { %4763 = vpush %v2631_v36 }
 0x387   : > { %4765 = vpush %v2633_v11 }
 0x38b   : > { %v2871_v24 = vpop.permute.xlu2 %2870 }
 0x38c   : > { %v2635_v42 = vpop.permute.xlu1 %2634  ;;  %v2711_v43 = vpop.permute.xlu0 %2710 }
 0x38d   : > { %4767 = vpush %v2635_v42 }
 0x38e   : > { %4769 = vpush %v2637_v50 }
 0x38f   : > { %4771 = vpush %v2711_v43  ;;  %v8104_v43 = vld [vmem:[#allocation37_spill] sm:$0xff] }
 0x393   : > { %v2877_v13 = vpop.permute.xlu2 %2876 }
 0x394   : > { %v2713_v29 = vpop.permute.xlu1 %2712  ;;  %v2717_v23 = vpop.permute.xlu0 %2716 }
 0x395   : > { %4773 = vpush %v2713_v29 }
 0x396   : > { %4775 = vpush %v2715_v6  ;;  %v8103_v6 = vld [vmem:[#allocation43_spill] sm:$0xff] }
 0x397   : > { %4777 = vpush %v2717_v23 }
 0x39b   : > { %v2955_v22 = vpop.permute.xlu2 %2954 }
 0x39c   : > { %v2791_v26 = vpop.permute.xlu1 %2790  ;;  %v2795_v7 = vpop.permute.xlu0 %2794 }
 0x39d   : > { %4779 = vpush %v2791_v26 }
 0x39e   : > { %4781 = vpush %v2793_v19 }
 0x39f   : > { %4783 = vpush %v2795_v7  ;;  %s4748_s3 = spop %4747 }
 0x3a0   : > { %v2531_v18 = vstv %s4748_s3 }
 0x3a1   : > { %v2542_v23 = vmul.f32 %v2531_v18, %v5417_v59  ;;  %v2543_v26 = vmul.f32 %v2531_v18, %v5420_v45 }
 0x3a4   : > { %v2797_v25 = vpop.permute.xlu1 %2796  ;;  %v2873_v39 = vpop.permute.xlu0 %2872 }
 0x3a5   : > { %4785 = vpush %v2797_v25 }
 0x3a6   : > { %4787 = vpush %v2871_v24  ;;  %s6327_s7 = spop %4749 }
 0x3a7   : > { %4789 = vpush %v2873_v39  ;;  %s6329_s18 = spop %4751  ;;  %v2534_v7 = vstv %s6327_s7 }
 0x3a8   : > { %s6331_s4 = spop %4753  ;;  %v2537_v24 = vstv %s6329_s18  ;;  %v2544_v21 = vmul.f32 %v2534_v7, %v8103_v6 }
 0x3ac   : > { %v2875_v57 = vpop.permute.xlu1 %2874  ;;  %v2951_v58 = vpop.permute.xlu0 %2950 }
 0x3ad   : > { %4791 = vpush %v2875_v57 }
 0x3ae   : > { %4793 = vpush %v2877_v13  ;;  %s4756_s15 = spop %4755 }
 0x3af   : > { %4795 = vpush %v2951_v58  ;;  %s4758_s2 = spop %4757  ;;  %v2559_v34 = vstv %s4756_s15 }
 0x3b0   : > { %v2562_v36 = vstv %s4758_s2  ;;  %s4760_s16 = spop %4759  ;;  %v2570_v38 = vmul.f32 %v2559_v34, %v5417_v59  ;;  %v2571_v50 = vmul.f32 %v2559_v34, %v5420_v45  ;;  %v2572_v11 = vmul.f32 %v2559_v34, %v8102_v14 }
 0x3b1   : > { %v2573_v42 = vmul.f32 %v2562_v36, %v8103_v6  ;;  %v2574_v29 = vmul.f32 %v2562_v36, %v8104_v43  ;;  %v2565_v19 = vstv %s4760_s16  ;;  %v2575_v58 = vmul.f32 %v2562_v36, %v5394_v41 }
 0x3b2   : > { %v2594_v39 = vrot.slane %v2570_v38, 1  ;;  %v2595_v13 = vrot.slane %v2571_v50, 1  ;;  %v2597_v57 = vrot.slane %v2572_v11, 1  ;;  %v2576_v34 = vmul.f32 %v2565_v19, %v5437_v53 }
 0x3b3   : > { %v2578_v18 = vmul.f32 %v2565_v19, %v5404_v54  ;;  %v2545_v50 = vmul.f32 %v2534_v7, %v8104_v43  ;;  %v2546_v36 = vmul.f32 %v2537_v24, %v5437_v53  ;;  %v2602_v28 = vrot.slane %v2575_v58, 1 }
 0x3b4   : > { %v2953_v48 = vpop.permute.xlu1 %2952  ;;  %v2957_v37 = vpop.permute.xlu0 %2956  ;;  %v2598_v33 = vsel %vm456_vm2, %v2595_v13, %v2597_v57  ;;  %v2604_v20 = vrot.slane %v2576_v34, 1 }
 0x3b5   : > { %4797 = vpush %v2953_v48  ;;  %v2600_v48 = vrot.slane %v2574_v29, 1  ;;  %v2596_v29 = vsel %vm456_vm2, %v2594_v39, %v2595_v13  ;;  %v2607_v61 = vrot.slane %v2578_v18, 1 }
 0x3b6   : > { %4799 = vpush %v2955_v22  ;;  %s4762_s0 = spop %4761  ;;  %v2599_v22 = vrot.slane %v2573_v42, 1  ;;  %v2540_v42 = vstv %s6331_s4 }
 0x3b7   : > { %4801 = vpush %v2957_v37  ;;  %v2568_v25 = vstv %s4762_s0  ;;  %s4764_s3 = spop %4763  ;;  %v8105_v37 = vld [vmem:[#allocation44_spill] sm:$0xff]  ;;  %v2549_v58 = vmul.f32 %v2540_v42, %v5440_v2 }
 0x3b8   : > { %v2577_v62 = vmul.f32 %v2565_v19, %v8105_v37  ;;  %v2579_v35 = vmul.f32 %v2568_v25, %v5445_v4  ;;  %v2580_v38 = vmul.f32 %v2568_v25, %v5440_v2  ;;  %s4766_s7 = spop %4765  ;;  %v2547_v11 = vmul.f32 %v2537_v24, %v8105_v37 }
 0x3b9   : > { %v2639_v55 = vstv %s4764_s3  ;;  %v2601_v19 = vsel %vm456_vm2, %v2599_v22, %v2600_v48  ;;  %v2642_v1 = vstv %s4766_s7  ;;  %v2581_v7 = vmul.f32 %v2568_v25, %v5426_v49 }
 0x3ba   : > { %v2605_v60 = vrot.slane %v2577_v62, 1  ;;  %v2609_v52 = vrot.slane %v2579_v35, 1  ;;  %v2610_v10 = vrot.slane %v2580_v38, 1  ;;  %v2548_v24 = vmul.f32 %v2540_v42, %v5445_v4 }
 0x3bb   : > { %v2650_v39 = vmul.f32 %v2639_v55, %v5417_v59  ;;  %v2651_v13 = vmul.f32 %v2639_v55, %v5420_v45  ;;  %v2652_v57 = vmul.f32 %v2639_v55, %v8102_v14  ;;  %v2622_v22 = vadd.f32 %v2596_v29, %v2542_v23 }
 0x3bc   : > { %v2653_v62 = vmul.f32 %v2642_v1, %v8103_v6  ;;  %v2654_v34 = vmul.f32 %v2642_v1, %v8104_v43  ;;  %v2623_v35 = vadd.f32 %v2598_v33, %v2543_v26  ;;  %v2603_v25 = vsel %vm456_vm2, %v2600_v48, %v2602_v28 }
 0x3bd   : > { %v2624_v18 = vadd.f32 %v2601_v19, %v2544_v21  ;;  %v2606_v47 = vsel %vm456_vm2, %v2604_v20, %v2605_v60  ;;  %v2608_v32 = vsel %vm456_vm2, %v2605_v60, %v2607_v61  ;;  %v2611_v12 = vsel %vm456_vm2, %v2609_v52, %v2610_v10 }
 0x3be   : > { %s4768_s18 = spop %4767  ;;  %v2612_v55 = vrot.slane %v2581_v7, 1  ;;  %v2674_v42 = vrot.slane %v2650_v39, 2  ;;  %v2675_v23 = vrot.slane %v2651_v13, 2  ;;  %v2677_v29 = vrot.slane %v2652_v57, 2 }
 0x3bf   : > { %s6357_s15 = spop %4769  ;;  %v2645_v38 = vstv %s4768_s18  ;;  %v2655_v8 = vmul.f32 %v2642_v1, %v5394_v41  ;;  %v2679_v44 = vrot.slane %v2653_v62, 2  ;;  %v2680_v33 = vrot.slane %v2654_v34, 2 }
 0x3c0   : > { %s4772_s4 = spop %4771  ;;  %v2656_v28 = vmul.f32 %v2645_v38, %v5437_v53  ;;  %v2625_v21 = vadd.f32 %v2603_v25, %v2545_v50  ;;  %v2626_v26 = vadd.f32 %v2606_v47, %v2546_v36  ;;  %v2657_v20 = vmul.f32 %v2645_v38, %v8105_v37 }
 0x3c1   : > { %v2719_v27 = vstv %s4772_s4  ;;  %v2658_v60 = vmul.f32 %v2645_v38, %v5404_v54  ;;  %v2627_v52 = vadd.f32 %v2608_v32, %v2547_v11  ;;  %v2648_v61 = vstv %s6357_s15 }
 0x3c2   : > { %v2730_v48 = vmul.f32 %v2719_v27, %v5417_v59  ;;  %v2731_v19 = vmul.f32 %v2719_v27, %v5420_v45  ;;  %v2613_v7 = vsel %vm456_vm2, %v2610_v10, %v2612_v55  ;;  %v6378_v1 = vadd.f32 %v2611_v12, %v2548_v24 }
 0x3c3   : > { %v2676_v39 = vsel %vm533_vm3, %v2674_v42, %v2675_v23  ;;  %v2678_v50 = vsel %vm533_vm3, %v2675_v23, %v2677_v29  ;;  %v2681_v47 = vsel %vm533_vm3, %v2679_v44, %v2680_v33  ;;  %v2682_v36 = vrot.slane %v2655_v8, 2 }
 0x3c4   : > { %v2684_v13 = vrot.slane %v2656_v28, 2  ;;  %v2685_v62 = vrot.slane %v2657_v20, 2  ;;  %v2687_v32 = vrot.slane %v2658_v60, 2  ;;  %v2659_v11 = vmul.f32 %v2648_v61, %v5445_v4 }
 0x3c5   : > { %v2660_v34 = vmul.f32 %v2648_v61, %v5440_v2  ;;  %v2661_v10 = vmul.f32 %v2648_v61, %v5426_v49  ;;  %v2732_v12 = vmul.f32 %v2719_v27, %v8102_v14  ;;  %v2754_v24 = vrot.slane %v2730_v48, 3 }
 0x3c6   : > { %s4774_s2 = spop %4773  ;;  %v2755_v25 = vrot.slane %v2731_v19, 3  ;;  %v6387_v38 = vadd.f32 %v2613_v7, %v2549_v58  ;;  %v2702_v55 = vadd.f32 %v2676_v39, %v2622_v22  ;;  %v2703_v42 = vadd.f32 %v2678_v50, %v2623_v35 }
 0x3c7   : > { %v2722_v57 = vstv %s4774_s2  ;;  %s4776_s16 = spop %4775  ;;  %v2683_v23 = vsel %vm533_vm3, %v2680_v33, %v2682_v36  ;;  %v2704_v20 = vadd.f32 %v2681_v47, %v2624_v18  ;;  %v2686_v60 = vsel %vm533_vm3, %v2684_v13, %v2685_v62 }
 0x3c8   : > { %v2733_v44 = vmul.f32 %v2722_v57, %v8103_v6  ;;  %v2734_v8 = vmul.f32 %v2722_v57, %v8104_v43  ;;  %v2735_v29 = vmul.f32 %v2722_v57, %v5394_v41  ;;  %v2725_v28 = vstv %s4776_s16  ;;  %s4778_s0 = spop %4777 }
 0x3c9   : > { %v2689_v27 = vrot.slane %v2659_v11, 2  ;;  %v2690_v61 = vrot.slane %v2660_v34, 2  ;;  %v2688_v58 = vsel %vm533_vm3, %v2685_v62, %v2687_v32  ;;  %v2692_v22 = vrot.slane %v2661_v10, 2 }
 0x3ca   : > { %v2756_v48 = vsel %vm610_vm4, %v2754_v24, %v2755_v25  ;;  %v2757_v19 = vrot.slane %v2732_v12, 3  ;;  %v2759_v7 = vrot.slane %v2733_v44, 3  ;;  %v2760_v35 = vrot.slane %v2734_v8, 3 }
 0x3cb   : > { %v2736_v33 = vmul.f32 %v2725_v28, %v5437_v53  ;;  %v2737_v39 = vmul.f32 %v2725_v28, %v8105_v37  ;;  %v2705_v50 = vadd.f32 %v2683_v23, %v2625_v21  ;;  %v2706_v18 = vadd.f32 %v2686_v60, %v2626_v26 }
 0x3cc   : > { %v2762_v47 = vrot.slane %v2735_v29, 3  ;;  %v2728_v36 = vstv %s4778_s0  ;;  %v2707_v13 = vadd.f32 %v2688_v58, %v2627_v52  ;;  %v6399_v57 = vsel %vm533_vm3, %v2689_v27, %v2690_v61 }
 0x3cd   : > { %v2738_v62 = vmul.f32 %v2725_v28, %v5404_v54  ;;  %v6403_v11 = vsel %vm533_vm3, %v2690_v61, %v2692_v22  ;;  %v2758_v34 = vsel %vm610_vm4, %v2755_v25, %v2757_v19  ;;  %v2782_v10 = vadd.f32 %v2756_v48, %v2702_v55 }
 0x3ce   : > { %s4780_s3 = spop %4779  ;;  %v2761_v21 = vsel %vm610_vm4, %v2759_v7, %v2760_v35  ;;  %v2764_v26 = vrot.slane %v2736_v33, 3  ;;  %v2765_v24 = vrot.slane %v2737_v39, 3  ;;  %v6408_v52 = vmul.f32 %v2728_v36, %v5440_v2 }
 0x3cf   : > { %s4782_s7 = spop %4781  ;;  %v2799_v32 = vstv %s4780_s3  ;;  %v2763_v44 = vsel %vm610_vm4, %v2760_v35, %v2762_v47  ;;  %v2741_v8 = vmul.f32 %v2728_v36, %v5426_v49  ;;  %v2767_v55 = vrot.slane %v2738_v62, 3 }
 0x3d0   : > { %v2802_v12 = vstv %s4782_s7  ;;  %s4784_s18 = spop %4783  ;;  %v2810_v23 = vmul.f32 %v2799_v32, %v5417_v59  ;;  %v2811_v25 = vmul.f32 %v2799_v32, %v5420_v45  ;;  %v2812_v29 = vmul.f32 %v2799_v32, %v8102_v14 }
 0x3d1   : > { %v2813_v28 = vmul.f32 %v2802_v12, %v8103_v6  ;;  %v2814_v60 = vmul.f32 %v2802_v12, %v8104_v43  ;;  %v2783_v27 = vadd.f32 %v2758_v34, %v2703_v42  ;;  %v2784_v61 = vadd.f32 %v2761_v21, %v2704_v20 }
 0x3d2   : > { %v6420_v58 = vmul.f32 %v2728_v36, %v5445_v4  ;;  %v2815_v22 = vmul.f32 %v2802_v12, %v5394_v41  ;;  %v2785_v48 = vadd.f32 %v2763_v44, %v2705_v50  ;;  %v2766_v19 = vsel %vm610_vm4, %v2764_v26, %v2765_v24 }
 0x3d3   : > { %v7907_v7 = vrot.slane %v6408_v52, 3  ;;  %v2805_v35 = vstv %s4784_s18  ;;  %v2772_v33 = vrot.slane %v2741_v8, 3  ;;  %v2834_v39 = vrot.slane %v2810_v23, 4 }
 0x3d4   : > { %v2835_v47 = vrot.slane %v2811_v25, 4  ;;  %v2768_v32 = vsel %vm610_vm4, %v2765_v24, %v2767_v55  ;;  %v2837_v42 = vrot.slane %v2812_v29, 4  ;;  %v2839_v20 = vrot.slane %v2813_v28, 4 }
 0x3d5   : > { %v2840_v36 = vrot.slane %v2814_v60, 4  ;;  %v6426_v34 = vadd.f32 %v2766_v19, %v2706_v18  ;;  %v2842_v12 = vrot.slane %v2815_v22, 4  ;;  %v2816_v21 = vmul.f32 %v2805_v35, %v5437_v53 }
 0x3d6   : > { %s6410_s15 = spop %4785  ;;  %v6431_v26 = vmul.f32 %v2805_v35, %v8105_v37  ;;  %v6435_v24 = vadd.f32 %v2768_v32, %v2707_v13  ;;  %v6440_v18 = vsel %vm610_vm4, %v7907_v7, %v2772_v33  ;;  %v2836_v25 = vsel %vm687_vm5, %v2834_v39, %v2835_v47 }
 0x3d7   : > { %s4788_s4 = spop %4787  ;;  %v2808_v55 = vstv %s6410_s15  ;;  %v2838_v29 = vsel %vm687_vm5, %v2835_v47, %v2837_v42  ;;  %v2841_v28 = vsel %vm687_vm5, %v2839_v20, %v2840_v36  ;;  %v6447_v60 = vmul.f32 %v2805_v35, %v5404_v54 }
 0x3d8   : > { %v2879_v62 = vstv %s4788_s4  ;;  %s4790_s2 = spop %4789  ;;  %v2843_v13 = vsel %vm687_vm5, %v2840_v36, %v2842_v12  ;;  %v2844_v19 = vrot.slane %v2816_v21, 4  ;;  %v2845_v39 = vrot.slane %v6431_v26, 4 }
 0x3d9   : > { %v2890_v44 = vmul.f32 %v2879_v62, %v5417_v59  ;;  %v2891_v8 = vmul.f32 %v2879_v62, %v5420_v45  ;;  %v2882_v23 = vstv %s4790_s2  ;;  %v2892_v22 = vmul.f32 %v2879_v62, %v8102_v14 }
 0x3da   : > { %v2893_v33 = vmul.f32 %v2882_v23, %v8103_v6  ;;  %v6455_v32 = vmul.f32 %v2882_v23, %v8104_v43  ;;  %v6459_v47 = vmul.f32 %v2808_v55, %v5440_v2  ;;  %v2862_v20 = vadd.f32 %v2836_v25, %v2782_v10 }
 0x3db   : > { %v2914_v42 = vrot.slane %v2890_v44, 5  ;;  %v2915_v35 = vrot.slane %v2891_v8, 5  ;;  %v2863_v62 = vadd.f32 %v2838_v29, %v2783_v27  ;;  %v2864_v50 = vadd.f32 %v2841_v28, %v2784_v61 }
 0x3dc   : > { %v6462_v7 = vmul.f32 %v2808_v55, %v5445_v4  ;;  %v6464_v36 = vadd.f32 %v2843_v13, %v2785_v48  ;;  %v2847_v12 = vrot.slane %v6447_v60, 4  ;;  %v2917_v21 = vrot.slane %v2892_v22, 5 }
 0x3dd   : > { %v6468_v26 = vmul.f32 %v2808_v55, %v5426_v49  ;;  %v2919_v40 = vrot.slane %v2893_v33, 5  ;;  %v2920_v44 = vrot.slane %v6455_v32, 5  ;;  %v2846_v10 = vsel %vm687_vm5, %v2844_v19, %v2845_v39 }
 0x3de   : > { %s4792_s16 = spop %4791  ;;  %v2916_v61 = vsel %vm764_vm6, %v2914_v42, %v2915_v35  ;;  %v2895_v48 = vmul.f32 %v2882_v23, %v5394_v41  ;;  %v2918_v60 = vsel %vm764_vm6, %v2915_v35, %v2917_v21 }
 0x3df   : > { %s6450_s0 = spop %4793  ;;  %v2885_v0 = vstv %s4792_s16  ;;  %v2942_v33 = vadd.f32 %v2916_v61, %v2862_v20  ;;  %v2921_v32 = vsel %vm764_vm6, %v2919_v40, %v2920_v44  ;;  %s4992_s16 = smov 123  }
 0x3e0   : > { %s4796_s3 = spop %4795  ;;  %v2896_v25 = vmul.f32 %v2885_v0, %v5437_v53  ;;  %v2897_v22 = vmul.f32 %v2885_v0, %v8105_v37  ;;  %v2898_v27 = vmul.f32 %v2885_v0, %v5404_v54  ;;  %v2922_v0 = vrot.slane %v2895_v48, 5 }
 0x3e1   : > { %v2959_v8 = vstv %s4796_s3  ;;  %v2888_v31 = vstv %s6450_s0  ;;  %v2866_v48 = vadd.f32 %v2846_v10, %v6426_v34 }
 0x3e2   : > { %v2970_v29 = vmul.f32 %v2959_v8, %v5417_v59  ;;  %v2971_v55 = vmul.f32 %v2959_v8, %v5420_v45  ;;  %v2972_v28 = vmul.f32 %v2959_v8, %v8102_v14  ;;  %v2924_v46 = vrot.slane %v2896_v25, 5 }
 0x3e3   : > { %v2925_v20 = vrot.slane %v2897_v22, 5  ;;  %v2944_v45 = vadd.f32 %v2921_v32, %v2864_v50  ;;  %v2852_v32 = vrot.slane %v6468_v26, 4 }
 0x3e4   : > { %v2994_v42 = vrot.slane %v2970_v29, 6  ;;  %v2995_v23 = vrot.slane %v2971_v55, 6  ;;  %v2997_v9 = vrot.slane %v2972_v28, 6  ;;  %v2943_v55 = vadd.f32 %v2918_v60, %v2863_v62 }
 0x3e5   : > { %v2923_v60 = vsel %vm764_vm6, %v2920_v44, %v2922_v0 }
 0x3e6   : > { %s4798_s7 = spop %4797  ;;  %v2998_v40 = vsel %vm841_vm7, %v2995_v23, %v2997_v9  ;;  %v2996_v28 = vsel %vm841_vm7, %v2994_v42, %v2995_v23  ;;  %v2848_v9 = vsel %vm687_vm5, %v2845_v39, %v2847_v12  ;;  %v2901_v42 = vmul.f32 %v2888_v31, %v5426_v49 }
 0x3e7   : > { %s4800_s18 = spop %4799  ;;  %v2962_v13 = vstv %s4798_s7  ;;  %v3023_v22 = vadd.f32 %v2998_v40, %v2943_v55  ;;  %v2867_v12 = vadd.f32 %v2848_v9, %v6435_v24  ;;  %v2945_v26 = vadd.f32 %v2923_v60, %v6464_v36  ;;  %v4959_v60 = vld [vmem:[%s7834_s1 + $0x10] sm:$0x7f] }
 0x3e8   : > { %v2965_v19 = vstv %s4800_s18  ;;  %v2973_v59 = vmul.f32 %v2962_v13, %v8103_v6  ;;  %v2974_v3 = vmul.f32 %v2962_v13, %v8104_v43  ;;  %v2975_v8 = vmul.f32 %v2962_v13, %v5394_v41  ;;  %s4802_s15 = spop %4801 }
 0x3e9   : > { %v2976_v35 = vmul.f32 %v2965_v19, %v5437_v53  ;;  %v2977_v21 = vmul.f32 %v2965_v19, %v8105_v37  ;;  %v2978_v6 = vmul.f32 %v2965_v19, %v5404_v54  ;;  %v2927_v53 = vrot.slane %v2898_v27, 5  ;;  %3040 = vrot.lane.b32.xlu2 %v3023_v22, %s4991_s17 }
 0x3ea   : > { %v2999_v61 = vrot.slane %v2973_v59, 6  ;;  %v3000_v29 = vrot.slane %v2974_v3, 6  ;;  %v3002_v37 = vrot.slane %v2975_v8, 6  ;;  %v2926_v59 = vsel %vm764_vm6, %v2924_v46, %v2925_v20 }
 0x3eb   : > { %v3004_v13 = vrot.slane %v2976_v35, 6  ;;  %v3005_v14 = vrot.slane %v2977_v21, 6  ;;  %v3022_v3 = vadd.f32 %v2996_v28, %v2942_v33  ;;  %v3007_v50 = vrot.slane %v2978_v6, 6 }
 0x3ec   : > { %v3001_v25 = vsel %vm841_vm7, %v2999_v61, %v3000_v29  ;;  %v2968_v19 = vstv %s4802_s15  ;;  %v2900_v27 = vmul.f32 %v2888_v31, %v5440_v2  ;;  %v2946_v46 = vadd.f32 %v2926_v59, %v2866_v48  ;;  %v6542_v48 = vld [vmem:[%s7834_s1] sm:$0x7f] }
 0x3ed   : > { %v3024_v62 = vadd.f32 %v3001_v25, %v2944_v45  ;;  %v3006_v39 = vsel %vm841_vm7, %v3004_v13, %v3005_v14  ;;  %3038 = vrot.lane.b32.xlu1 %v3022_v3, %s4991_s17  ;;  %v2928_v45 = vsel %vm764_vm6, %v2925_v20, %v2927_v53  ;;  %v2899_v6 = vmul.f32 %v2888_v31, %v5445_v4 }
 0x3ee   : > { %v3003_v34 = vsel %vm841_vm7, %v3000_v29, %v3002_v37  ;;  %v2980_v44 = vmul.f32 %v2968_v19, %v5440_v2  ;;  %v2981_v10 = vmul.f32 %v2968_v19, %v5426_v49  ;;  %v2849_v33 = vrot.slane %v6462_v7, 4 }
 0x3ef   : > { %3042 = vrot.lane.b32.xlu0 %v3024_v62, %s4991_s17  ;;  %v3008_v23 = vsel %vm841_vm7, %v3005_v14, %v3007_v50  ;;  %v2979_v8 = vmul.f32 %v2968_v19, %v5445_v4  ;;  %v3026_v53 = vadd.f32 %v3006_v39, %v2946_v46  ;;  %v2947_v35 = vadd.f32 %v2928_v45, %v2867_v12  ;;  %v6553_v50 = vld [vmem:[%s7834_s1 + $0x8] sm:$0x7f]  ;;  %v6560_v19 = vld [vmem:[%s7834_s1 + $0x18] sm:$0x7f] }
 0x3f0   : > { %v2930_v21 = vrot.slane %v2900_v27, 5  ;;  %v2932_v31 = vrot.slane %v2901_v42, 5  ;;  %v3025_v20 = vadd.f32 %v3003_v34, %v2945_v26  ;;  %v2708_v37 = vadd.f32 %v6399_v57, %v6378_v1  ;;  %8110 = vst [vmem:[#allocation71_spill] sm:$0xff] %v6553_v50 }
 0x3f1   : > { %v2709_v24 = vadd.f32 %v6403_v11, %v6387_v38  ;;  %v8106_v36 = vrot.slane %v6408_v52, 3  ;;  %v8107_v40 = vrot.slane %v6420_v58, 3  ;;  %v2929_v14 = vrot.slane %v2899_v6, 5  ;;  %3046 = vrot.lane.b32.xlu2 %v3026_v53, %s4991_s17  ;;  %8111 = vst [vmem:[#allocation72_spill] sm:$0xff] %v6560_v19 }
 0x3f2   : > { %v8108_v61 = vrot.slane %v6459_v47, 4  ;;  %v3010_v55 = vrot.slane %v2980_v44, 6  ;;  %v3012_v0 = vrot.slane %v2981_v10, 6  ;;  %v3027_v28 = vadd.f32 %v3008_v23, %v2947_v35 }
 0x3f3   : > { %v2771_v7 = vsel %vm610_vm4, %v8107_v40, %v8106_v36  ;;  %v2789_v25 = vadd.f32 %v6440_v18, %v2709_v24  ;;  %v3009_v57 = vrot.slane %v2979_v8, 6  ;;  %v2933_v52 = vsel %vm764_vm6, %v2930_v21, %v2932_v31 }
 0x3f4   : > { %v2853_v29 = vsel %vm687_vm5, %v8108_v61, %v2852_v32  ;;  %v8109_v1 = vmov %v8108_v61  ;;  %v2788_v11 = vadd.f32 %v2771_v7, %v2708_v37  ;;  %v2931_v13 = vsel %vm764_vm6, %v2929_v14, %v2930_v21 }
 0x3f5   : > { %v2851_v38 = vsel %vm687_vm5, %v2849_v33, %v8109_v1  ;;  %3044 = vrot.lane.b32.xlu1 %v3025_v20, %s4991_s17  ;;  %v2869_v58 = vadd.f32 %v2853_v29, %v2789_v25  ;;  %v3013_v18 = vsel %vm841_vm7, %v3010_v55, %v3012_v0  ;;  %v3011_v47 = vsel %vm841_vm7, %v3009_v57, %v3010_v55  ;;  %v8117_v25 = vld [vmem:[#allocation14_spill] sm:$0xff] }
 0x3f6   : > { %v2868_v22 = vadd.f32 %v2851_v38, %v2788_v11  ;;  %v6571_v32 = vstv %s5320_s13  ;;  %v7918_v42 = vstv %s5306_s9  ;;  %v6582_v39 = vstv %s5334_s21  ;;  %s8115_s13 = sld [smem:[#allocation30_spill]]  ;;  %v8136_v38 = vld [vmem:[#allocation17_spill] sm:$0xff] }
 0x3f7   : > { %3048 = vrot.lane.b32.xlu0 %v3027_v28, %s4991_s17  ;;  %v2949_v9 = vadd.f32 %v2933_v52, %v2869_v58  ;;  %v6586_v45 = vmul.f32 %v6571_v32, %v8104_v43  ;;  %v437_v46 = vmul.f32 %v6571_v32, %v5394_v41  ;;  %v6591_v6 = vstv %s5344_s25  ;;  %s8146_s21 = sld [smem:[#allocation36_spill]] }
 0x3f8   : > { %v2948_v59 = vadd.f32 %v2931_v13, %v2868_v22  ;;  %v6594_v34 = vstv %s5352_s29  ;;  %v6599_v44 = vstv %s5318_s12  ;;  %v6602_v10 = vstv %s5332_s20  ;;  %s8113_s12 = sld [smem:[#allocation34_spill]] }
 0x3f9   : > { %v3029_v3 = vadd.f32 %v3013_v18, %v2949_v9  ;;  %v6605_v33 = vstv %s5322_s14  ;;  %v6608_v23 = vstv %s5326_s19  ;;  %v6611_v8 = vstv %s5336_s22  ;;  %s8119_s14 = sld [smem:[#allocation32_spill]]  ;;  %v8122_v18 = vld [vmem:[#allocation39_spill] sm:$0xff] }
 0x3fa   : > { %v3028_v62 = vadd.f32 %v3011_v47, %v2948_v59  ;;  %v6614_v53 = vstv %s5340_s23  ;;  %v6618_v35 = vmul.f32 %v6582_v39, %v8104_v43  ;;  %v6621_v21 = vstv %s5342_s24  ;;  %s8121_s19 = sld [smem:[#allocation33_spill]] }
 0x3fb   : > { %3052 = vrot.lane.b32.xlu2 %v3029_v3, %s4991_s17  ;;  %v6625_v31 = vmul.f32 %v6591_v6, %v8104_v43  ;;  %v6629_v20 = vmul.f32 %v6594_v34, %v8104_v43  ;;  %v7917_v37 = vrot.slane %v6586_v45, 1  ;;  %v465_v24 = vrot.slane %v437_v46, 1  ;;  %v8125_v3 = vld [vmem:[#allocation42_spill] sm:$0xff]  ;;  %s8128_s20 = sld [smem:[#allocation35_spill]] }
 0x3fc   : > { %v514_v36 = vmul.f32 %v6582_v39, %v5394_v41  ;;  %v6635_v40 = vstv %s5360_s6  ;;  %v6638_v7 = vstv %s5346_s26  ;;  %v6641_v14 = vstv %s5348_s27  ;;  %s8116_s6 = sld [smem:[#allocation31_spill]] }
 0x3fd   : > { %3050 = vrot.lane.b32.xlu1 %v3028_v62, %s4991_s17  ;;  %8112 = vst [vmem:[#allocation73_spill] sm:$0xff] %v6629_v20  ;;  %v6644_v61 = vstv %s5350_s28  ;;  %v411_v29 = vmul.f32 %v7918_v42, %v8104_v43  ;;  %v591_v55 = vmul.f32 %v6591_v6, %v5394_v41  ;;  %v6654_v0 = vstv %s5354_s30 }
 0x3fe   : > { %8114 = vst [vmem:[#allocation74_spill] sm:$0xff] %v6641_v14  ;;  %v6657_v28 = vstv %s5356_s5  ;;  %v7920_v1 = vrot.slane %v6618_v35, 2  ;;  %v6667_v57 = vmul.f32 %v6635_v40, %v8104_v43  ;;  %v6670_v11 = vstv %s8113_s12 }
 0x3ff   : > { %3070 = vrot.lane.b32.xlu0 %v6542_v48, %s4992_s16  ;;  %8120 = vst [vmem:[#allocation76_spill] sm:$0xff] %v6670_v11  ;;  %v466_v52 = vsel %vm456_vm2, %v7917_v37, %v465_v24  ;;  %v542_v58 = vrot.slane %v514_v36, 2  ;;  %v6677_v22 = vstv %s8115_s13  ;;  %v434_v9 = vmul.f32 %v6599_v44, %v8122_v18 }
 0x400   : > { %8118 = vst [vmem:[#allocation75_spill] sm:$0xff] %v6667_v57  ;;  %v6683_v47 = vmul.f32 %v6594_v34, %v5394_v41  ;;  %v6687_v59 = vmul.f32 %v6635_v40, %v5394_v41  ;;  %v6691_v62 = vmul.f32 %v6599_v44, %v8125_v3  ;;  %v6698_v24 = vmul.f32 %v6670_v11, %v8104_v43 }
 0x401   : > { %v6702_v36 = vmul.f32 %v6670_v11, %v5394_v41  ;;  %v488_v13 = vadd.f32 %v466_v52, %v411_v29  ;;  %v6706_v26 = vstv %s8119_s14  ;;  %v6709_v42 = vstv %s8121_s19 }
 0x402   : > { %8123 = vst [vmem:[#allocation77_spill] sm:$0xff] %v6683_v47  ;;  %v6694_v46 = vstv %s8116_s6  ;;  %v6716_v12 = vmul.f32 %v6605_v33, %v5404_v54  ;;  %v6720_v27 = vmul.f32 %v6611_v8, %v5404_v54  ;;  %v6724_v29 = vmul.f32 %v6638_v7, %v5404_v54 }
 0x403   : > { %3074 = vrot.lane.b32.xlu2 %v4959_v60, %s4992_s16  ;;  %8124 = vst [vmem:[#allocation78_spill] sm:$0xff] %v6687_v59  ;;  %v619_v60 = vrot.slane %v591_v55, 3  ;;  %v543_v55 = vsel %vm533_vm3, %v7920_v1, %v542_v58  ;;  %v460_v52 = vrot.slane %v434_v9, 1  ;;  %v8132_v58 = vld [vmem:[#allocation15_spill] sm:$0xff]  ;;  %v8133_v1 = vrot.slane %v6625_v31, 3  ;;  %v8135_v9 = vld [vmem:[#allocation16_spill] sm:$0xff] }
 0x404   : > { %8126 = vst [vmem:[#allocation79_spill] sm:$0xff] %v6698_v24  ;;  %v6739_v43 = vstv %s8128_s20  ;;  %v511_v37 = vmul.f32 %v6602_v10, %v8122_v18  ;;  %v6759_v41 = vmul.f32 %v6694_v46, %v5404_v54  ;;  %v8158_v20 = vstv %s5306_s9 }
 0x405   : > { %3072 = vrot.lane.b32.xlu1 %v6553_v50, %s4992_s16  ;;  %8127 = vst [vmem:[#allocation80_spill] sm:$0xff] %v6702_v36  ;;  %v6792_v36 = vmul.f32 %v6621_v21, %v8125_v3 }
 0x406   : > { %8129 = vst [vmem:[#allocation81_spill] sm:$0xff] %v6709_v42 }
 0x407   : > { %3076 = vrot.lane.b32.xlu0 %v6560_v19, %s4992_s16  ;;  %8130 = vst [vmem:[#allocation82_spill] sm:$0xff] %v6720_v27 }
 0x408   : > { %8131 = vst [vmem:[#allocation83_spill] sm:$0xff] %v6724_v29 }
 0x409   : > { %8139 = vst [vmem:[#allocation87_spill] sm:$0xff] %v6759_v41 }
 0x40b   : > { %3100 = vrot.lane.b32.xlu2 %v8045_v51, %s4992_s16  ;;  %v537_v51 = vrot.slane %v511_v37, 2 }
 0x40d   : > { %3098 = vrot.lane.b32.xlu1 %v8044_v63, %s4992_s16  ;;  %v8150_v63 = vld [vmem:[#allocation20_spill] sm:$0xff] }
 0x40f   : > { %3102 = vrot.lane.b32.xlu0 %v8046_v5, %s4992_s16 }
 0x413   : > { %3178 = vrot.lane.b32.xlu2 %v8048_v15, %s4992_s16  ;;  %v6734_v15 = vsel %vm610_vm4, %v8133_v1, %v619_v60  ;;  %v6751_v1 = vmul.f32 %v6602_v10, %v8125_v3  ;;  %v6755_v60 = vmul.f32 %v6654_v0, %v5404_v54 }
 0x414   : > { %8134 = vst [vmem:[#allocation84_spill] sm:$0xff] %v6734_v15  ;;  %v443_v15 = vmul.f32 %v6608_v23, %v5426_v49 }
 0x415   : > { %3104 = vrot.lane.b32.xlu1 %v8047_v56, %s4992_s16  ;;  %8138 = vst [vmem:[#allocation86_spill] sm:$0xff] %v6755_v60  ;;  %v8143_v56 = vld [vmem:[#allocation45_spill] sm:$0xff] }
 0x416   : > { %v438_v5 = vmul.f32 %v6605_v33, %v8143_v56  ;;  %v592_v57 = vmul.f32 %v6638_v7, %v8143_v56 }
 0x417   : > { %3180 = vrot.lane.b32.xlu0 %v8049_v17, %s4992_s16 }
 0x41b   : > { %3184 = vrot.lane.b32.xlu2 %v8077_v30, %s4992_s16  ;;  %v6747_v30 = vadd.f32 %v543_v55, %v488_v13  ;;  %v8140_v55 = vld [vmem:[#allocation41_spill] sm:$0xff] }
 0x41c   : > { %v6783_v13 = vmul.f32 %v6621_v21, %v8140_v55  ;;  %v6803_v54 = vmul.f32 %v6644_v61, %v8140_v55 }
 0x41d   : > { %3182 = vrot.lane.b32.xlu1 %v8076_v16, %s4992_s16  ;;  %8137 = vst [vmem:[#allocation85_spill] sm:$0xff] %v6747_v30  ;;  %v8142_v16 = vld [vmem:[#allocation44_spill] sm:$0xff] }
 0x41e   : > { %v6773_v17 = vmul.f32 %v6605_v33, %v8142_v16  ;;  %v467_v33 = vrot.slane %v438_v5, 1  ;;  %v8151_v5 = vrot.slane %v6751_v1, 2 }
 0x41f   : > { %3258 = vrot.lane.b32.xlu0 %v8117_v25, %s4992_s16 }
 0x423   : > { %3262 = vrot.lane.b32.xlu2 %v8132_v58, %s4992_s16  ;;  %v6779_v58 = vmul.f32 %v6602_v10, %v8140_v55  ;;  %v538_v10 = vsel %vm533_vm3, %v8151_v5, %v537_v51  ;;  %v8153_v5 = vrot.slane %v6773_v17, 1 }
 0x425   : > { %3260 = vrot.lane.b32.xlu1 %v8135_v9, %s4992_s16  ;;  %v8141_v9 = vrot.slane %v6691_v62, 1  ;;  %v469_v60 = vsel %vm456_vm2, %v467_v33, %v8153_v5  ;;  %v8156_v5 = vrot.slane %v6792_v36, 3 }
 0x427   : > { %3264 = vrot.lane.b32.xlu0 %v8136_v38, %s4992_s16  ;;  %v6766_v38 = vmul.f32 %v6599_v44, %v8140_v55  ;;  %v461_v25 = vsel %vm456_vm2, %v8141_v9, %v460_v52  ;;  %v588_v44 = vmul.f32 %v6621_v21, %v8122_v18  ;;  %v8144_v52 = vstv %s5304_s8  ;;  %s4993_s8 = smov 122  }
 0x428   : > { %v409_v9 = vmul.f32 %v8144_v52, %v8125_v3  ;;  %v8145_v59 = vmov %v8144_v52  ;;  %v665_v52 = vmul.f32 %v6644_v61, %v8122_v18  ;;  %v6810_v21 = vmul.f32 %v6677_v22, %v8122_v18 }
 0x429   : > { %v6799_v24 = vmul.f32 %v8145_v59, %v8140_v55  ;;  %v8147_v59 = vld [vmem:[#allocation19_spill] sm:$0xff]  ;;  %v614_v47 = vrot.slane %v588_v44, 3  ;;  %v6831_v44 = vmul.f32 %v6611_v8, %v8142_v16 }
 0x42a   : > { %v486_v37 = vadd.f32 %v461_v25, %v409_v9  ;;  %v6819_v25 = vmul.f32 %v6644_v61, %v8125_v3  ;;  %v8149_v9 = vld [vmem:[#allocation18_spill] sm:$0xff]  ;;  %v515_v61 = vmul.f32 %v6611_v8, %v8143_v56  ;;  %v691_v19 = vrot.slane %v665_v52, 4 }
 0x42b   : > { %3340 = vrot.lane.b32.xlu2 %v8147_v59, %s4992_s16  ;;  %8152 = vst [vmem:[#allocation44_spill] sm:$0xff] %v6831_v44  ;;  %v6837_v59 = vmul.f32 %v6709_v42, %v8122_v18  ;;  %v768_v51 = vrot.slane %v6810_v21, 5  ;;  %v6850_v8 = vmul.f32 %v6608_v23, %v5440_v2  ;;  %v6854_v52 = vmul.f32 %v6677_v22, %v8125_v3 }
 0x42c   : > { %8148 = vst [vmem:[#allocation41_spill] sm:$0xff] %v6819_v25  ;;  %v8155_v21 = vstv %s5308_s10  ;;  %v615_v18 = vsel %vm610_vm4, %v8156_v5, %v614_v47  ;;  %v7952_v30 = vrot.slane %v6831_v44, 2  ;;  %v544_v41 = vrot.slane %v515_v61, 2  ;;  %v8160_v61 = vld [vmem:[#allocation22_spill] sm:$0xff] }
 0x42d   : > { %3338 = vrot.lane.b32.xlu1 %v8149_v9, %s4992_s16  ;;  %v6840_v9 = vstv %s8146_s21  ;;  %v412_v33 = vmul.f32 %v8155_v21, %v8143_v56  ;;  %v845_v29 = vrot.slane %v6837_v59, 6  ;;  %v6878_v21 = vmul.f32 %v6709_v42, %v8125_v3 }
 0x42e   : > { %v520_v47 = vmul.f32 %v6614_v53, %v5426_v49  ;;  %v475_v5 = vrot.slane %v443_v15, 1  ;;  %v8162_v15 = vld [vmem:[#allocation23_spill] sm:$0xff]  ;;  %v621_v59 = vrot.slane %v592_v57, 3 }
 0x42f   : > { %3342 = vrot.lane.b32.xlu0 %v8150_v63, %s4992_s16  ;;  %v563_v63 = vadd.f32 %v538_v10, %v486_v37  ;;  %v6859_v37 = vmul.f32 %v6638_v7, %v8142_v16  ;;  %v8157_v10 = vld [vmem:[#allocation43_spill] sm:$0xff]  ;;  %v489_v50 = vadd.f32 %v469_v60, %v412_v33  ;;  %v8161_v60 = vld [vmem:[#allocation21_spill] sm:$0xff]  ;;  %v546_v33 = vsel %vm533_vm3, %v544_v41, %v7952_v30 }
 0x430   : > { %v6874_v11 = vmul.f32 %v8158_v20, %v8157_v10  ;;  %8159 = vst [vmem:[#allocation43_spill] sm:$0xff] %v6878_v21  ;;  %v6888_v20 = vmul.f32 %v6654_v0, %v8142_v16  ;;  %v6902_v7 = vmul.f32 %v6614_v53, %v5440_v2  ;;  %v597_v41 = vmul.f32 %v6641_v14, %v5426_v49 }
 0x431   : > { %8154 = vst [vmem:[#allocation88_spill] sm:$0xff] %v6859_v37  ;;  %v640_v27 = vadd.f32 %v615_v18, %v563_v63  ;;  %v669_v18 = vmul.f32 %v6654_v0, %v8143_v56  ;;  %v8163_v63 = vrot.slane %v6819_v25, 4  ;;  %v435_v0 = vmul.f32 %v6571_v32, %v8157_v10 }
 0x432   : > { %v566_v3 = vadd.f32 %v546_v33, %v489_v50  ;;  %v552_v57 = vrot.slane %v520_v47, 2  ;;  %v8165_v30 = vrot.slane %v6850_v8, 1  ;;  %v746_v32 = vmul.f32 %v6694_v46, %v8143_v56 }
 0x433   : > { %3418 = vrot.lane.b32.xlu2 %v8160_v61, %s4992_s16  ;;  %v692_v61 = vsel %vm687_vm5, %v8163_v63, %v691_v19  ;;  %v6920_v19 = vmul.f32 %v6694_v46, %v8142_v16  ;;  %v6930_v47 = vmul.f32 %v6641_v14, %v5440_v2  ;;  %v512_v33 = vmul.f32 %v6582_v39, %v8157_v10 }
 0x434   : > { %v717_v42 = vadd.f32 %v692_v61, %v640_v27  ;;  %v476_v25 = vsel %vm456_vm2, %v8165_v30, %v475_v5  ;;  %v698_v27 = vrot.slane %v669_v18, 4  ;;  %v8166_v61 = vrot.slane %v6859_v37, 3  ;;  %v8168_v37 = vld [vmem:[#allocation25_spill] sm:$0xff] }
 0x435   : > { %3344 = vrot.lane.b32.xlu1 %v8161_v60, %s4992_s16  ;;  %v8164_v60 = vstv %s5316_s11  ;;  %v7956_v30 = vrot.slane %v6902_v7, 2  ;;  %v8167_v5 = vrot.slane %v6854_v52, 5  ;;  %v462_v44 = vrot.slane %v435_v0, 1 }
 0x436   : > { %v623_v63 = vsel %vm610_vm4, %v621_v59, %v8166_v61  ;;  %v674_v59 = vmul.f32 %v6657_v28, %v5426_v49  ;;  %v629_v61 = vrot.slane %v597_v41, 3  ;;  %v823_v39 = vmul.f32 %v6739_v43, %v8143_v56 }
 0x437   : > { %3420 = vrot.lane.b32.xlu0 %v8162_v15, %s4992_s16  ;;  %v415_v15 = vmul.f32 %v8164_v60, %v5440_v2  ;;  %v769_v60 = vsel %vm764_vm6, %v8167_v5, %v768_v51  ;;  %v643_v18 = vadd.f32 %v623_v63, %v566_v3  ;;  %v553_v14 = vsel %vm533_vm3, %v7956_v30, %v552_v57  ;;  %v8169_v3 = vld [vmem:[#allocation24_spill] sm:$0xff] }
 0x438   : > { %v794_v46 = vadd.f32 %v769_v60, %v717_v42  ;;  %v775_v5 = vrot.slane %v746_v32, 5  ;;  %v6950_v42 = vmul.f32 %v6739_v43, %v8142_v16  ;;  %v8171_v41 = vrot.slane %v6878_v21, 6 }
 0x439   : > { %v492_v50 = vadd.f32 %v476_v25, %v415_v15  ;;  %v8170_v25 = vld [vmem:[#allocation26_spill] sm:$0xff]  ;;  %v6958_v15 = vmul.f32 %v6657_v28, %v5440_v2  ;;  %v8172_v32 = vrot.slane %v6888_v20, 4  ;;  %v589_v60 = vmul.f32 %v6591_v6, %v8157_v10 }
 0x43a   : > { %v846_v57 = vsel %vm841_vm7, %v8171_v41, %v845_v29  ;;  %v8173_v56 = vrot.slane %v6586_v45, 1  ;;  %v751_v0 = vmul.f32 %v6706_v26, %v5426_v49  ;;  %v8174_v29 = vrot.slane %v6930_v47, 3 }
 0x43b   : > { %3424 = vrot.lane.b32.xlu2 %v8168_v37, %s4992_s16  ;;  %v700_v63 = vsel %vm687_vm5, %v698_v27, %v8172_v32  ;;  %v569_v30 = vadd.f32 %v553_v14, %v492_v50  ;;  %v871_v51 = vadd.f32 %v846_v57, %v794_v46  ;;  %v539_v21 = vrot.slane %v512_v33, 2  ;;  %v8177_v46 = vld [vmem:[#allocation47_spill] sm:$0xff] }
 0x43c   : > { %v720_v37 = vadd.f32 %v700_v63, %v643_v18  ;;  %v630_v41 = vsel %vm610_vm4, %v8174_v29, %v629_v61  ;;  %v8175_v27 = vrot.slane %v6691_v62, 1  ;;  %v8176_v6 = vrot.slane %v6766_v38, 1  ;;  %v8179_v57 = vld [vmem:[#allocation55_spill] sm:$0xff] }
 0x43d   : > { %3422 = vrot.lane.b32.xlu1 %v8169_v3, %s4992_s16  ;;  %v706_v3 = vrot.slane %v674_v59, 4  ;;  %v852_v50 = vrot.slane %v823_v39, 6  ;;  %v1419_v45 = vadd.f32 %v8177_v46, %v871_v51  ;;  %v704_v18 = vrot.slane %v6958_v15, 4 }
 0x43e   : > { %v459_v14 = vsel %vm456_vm2, %v8176_v6, %v8175_v27  ;;  %v8178_v59 = vrot.slane %v6920_v19, 5  ;;  %v646_v61 = vadd.f32 %v630_v41, %v569_v30  ;;  %v666_v51 = vmul.f32 %v6594_v34, %v8157_v10  ;;  %v8180_v27 = vld [vmem:[#allocation28_spill] sm:$0xff]  ;;  %v8185_v41 = vld [vmem:[#allocation27_spill] sm:$0xff] }
 0x43f   : > { %3498 = vrot.lane.b32.xlu0 %v8170_v25, %s4992_s16  ;;  %v464_v25 = vsel %vm456_vm2, %v462_v44, %v8173_v56  ;;  %v853_v56 = vrot.slane %v6950_v42, 6  ;;  %v6986_v44 = vmul.f32 %v6706_v26, %v5440_v2  ;;  %v1967_v39 = vadd.f32 %v8179_v57, %v1419_v45 }
 0x440   : > { %v777_v33 = vsel %vm764_vm6, %v775_v5, %v8178_v59  ;;  %v487_v62 = vadd.f32 %v464_v25, %v6874_v11  ;;  %v485_v32 = vadd.f32 %v459_v14, %v6799_v24  ;;  %v783_v63 = vrot.slane %v751_v0, 5  ;;  %v8184_v25 = vld [vmem:[#allocation63_spill] sm:$0xff] }
 0x441   : > { %v797_v38 = vadd.f32 %v777_v33, %v720_v37  ;;  %v707_v29 = vsel %vm687_vm5, %v704_v18, %v706_v3  ;;  %v616_v5 = vrot.slane %v589_v60, 3  ;;  %v8181_v11 = vrot.slane %v6751_v1, 2  ;;  %v8186_v3 = vld [vmem:[#allocation29_spill] sm:$0xff] }
 0x442   : > { %v8182_v37 = vrot.slane %v6779_v58, 2  ;;  %v8183_v34 = vrot.slane %v6618_v35, 2  ;;  %v2515_v0 = vadd.f32 %v8184_v25, %v1967_v39  ;;  %v441_v1 = vmul.f32 %v6608_v23, %v5445_v4 }
 0x443   : > { %3502 = vrot.lane.b32.xlu2 %v8180_v27, %s4992_s16  ;;  %v781_v58 = vrot.slane %v6986_v44, 5  ;;  %v828_v60 = vmul.f32 %v6840_v9, %v5426_v49  ;;  %v854_v35 = vsel %vm841_vm7, %v852_v50, %v853_v56  ;;  %v723_v46 = vadd.f32 %v707_v29, %v646_v61  ;;  %v8191_v29 = vld [vmem:[#allocation50_spill] sm:$0xff] }
 0x444   : > { %v536_v30 = vsel %vm533_vm3, %v8182_v37, %v8181_v11  ;;  %v541_v24 = vsel %vm533_vm3, %v539_v21, %v8183_v34  ;;  %v3041_v21 = vpop.permute.xlu2 %3040  ;;  %v874_v14 = vadd.f32 %v854_v35, %v797_v38  ;;  %v8188_v33 = vstv %s5308_s10 }
 0x445   : > { %3500 = vrot.lane.b32.xlu1 %v8185_v41, %s4992_s16  ;;  %v564_v6 = vadd.f32 %v541_v24, %v487_v62  ;;  %v7023_v45 = vadd.f32 %v3041_v21, %v2515_v0  ;;  %v562_v59 = vadd.f32 %v536_v30, %v485_v32  ;;  %v413_v57 = vmul.f32 %v8188_v33, %v8142_v16  ;;  %v8195_v0 = vld [vmem:[#allocation56_spill] sm:$0xff] }
 0x446   : > { %v7030_v23 = vmul.f32 %v6840_v9, %v5440_v2  ;;  %v784_v39 = vsel %vm764_vm6, %v781_v58, %v783_v63  ;;  %v688_v50 = vrot.slane %v6803_v54, 4  ;;  %v740_v62 = vmul.f32 %v6677_v22, %v8140_v55 }
 0x447   : > { %3504 = vrot.lane.b32.xlu0 %v8186_v3, %s4992_s16  ;;  %8187 = vst [vmem:[#allocation47_spill] sm:$0xff] %v7023_v45  ;;  %v8189_v38 = vrot.slane %v6716_v12, 1  ;;  %v8190_v61 = vrot.slane %v6773_v17, 1  ;;  %v1422_v11 = vadd.f32 %v8191_v29, %v874_v14  ;;  %v743_v37 = vmul.f32 %v6635_v40, %v8157_v10 }
 0x448   : > { %v693_v30 = vrot.slane %v666_v51, 4  ;;  %v472_v34 = vrot.slane %v441_v1, 1  ;;  %v860_v24 = vrot.slane %v828_v60, 6  ;;  %v8192_v63 = vrot.slane %v6792_v36, 3  ;;  %v8196_v36 = vld [vmem:[#allocation81_spill] sm:$0xff]  ;;  %v8197_v1 = vld [vmem:[#allocation82_spill] sm:$0xff] }
 0x449   : > { %v471_v32 = vsel %vm456_vm2, %v8190_v61, %v8189_v38  ;;  %v8193_v54 = vrot.slane %v6783_v13, 3  ;;  %v8194_v12 = vrot.slane %v6625_v31, 3  ;;  %v800_v25 = vadd.f32 %v784_v39, %v723_v46  ;;  %v8199_v60 = vld [vmem:[#allocation44_spill] sm:$0xff] }
 0x44a   : > { %v1970_v35 = vadd.f32 %v8195_v0, %v1422_v11  ;;  %v490_v21 = vadd.f32 %v471_v32, %v413_v57  ;;  %v858_v14 = vrot.slane %v7030_v23, 6  ;;  %v817_v13 = vmul.f32 %v8196_v36, %v8140_v55  ;;  %v8201_v57 = vld [vmem:[#allocation64_spill] sm:$0xff]  ;;  %v8271_v23 = vld [vmem:[#allocation70_spill] sm:$0xff] }
 0x44b   : > { %v613_v22 = vsel %vm610_vm4, %v8193_v54, %v8192_v63  ;;  %v618_v17 = vsel %vm610_vm4, %v616_v5, %v8194_v12  ;;  %3618 = vrot.lane.b32.xlu2 %v6542_v48, %s4993_s8  ;;  %v8198_v31 = vrot.slane %v8197_v1, 2  ;;  %v8200_v5 = vrot.slane %v8199_v60, 2  ;;  %v8203_v48 = vld [vmem:[#allocation76_spill] sm:$0xff]  ;;  %v8207_v12 = vld [vmem:[#allocation73_spill] sm:$0xff] }
 0x44c   : > { %v639_v40 = vadd.f32 %v613_v22, %v562_v59  ;;  %v641_v51 = vadd.f32 %v618_v17, %v564_v6  ;;  %v518_v33 = vmul.f32 %v6614_v53, %v5445_v4  ;;  %v2518_v59 = vadd.f32 %v8201_v57, %v1970_v35  ;;  %v8202_v6 = vld [vmem:[#allocation71_spill] sm:$0xff]  ;;  %v3047_v11 = vpop.permute.xlu2 %3046  ;;  %v8205_v53 = vld [vmem:[#allocation41_spill] sm:$0xff] }
 0x44d   : > { %v548_v46 = vsel %vm533_vm3, %v8200_v5, %v8198_v31  ;;  %v770_v39 = vrot.slane %v743_v37, 5  ;;  %v820_v38 = vmul.f32 %v8203_v48, %v8157_v10  ;;  %v8204_v61 = vrot.slane %v6850_v8, 1 }
 0x44e   : > { %v861_v29 = vsel %vm841_vm7, %v858_v14, %v860_v24  ;;  %v8206_v54 = vrot.slane %v8205_v53, 4  ;;  %v8208_v17 = vrot.slane %v8207_v12, 4  ;;  %v7084_v0 = vadd.f32 %v3047_v11, %v2518_v59  ;;  %v8211_v24 = vld [vmem:[#allocation83_spill] sm:$0xff] }
 0x44f   : > { %3620 = vrot.lane.b32.xlu0 %v8202_v6, %s4993_s8  ;;  %v474_v32 = vsel %vm456_vm2, %v472_v34, %v8204_v61  ;;  %v877_v63 = vadd.f32 %v861_v29, %v800_v25  ;;  %v567_v35 = vadd.f32 %v548_v46, %v490_v21  ;;  %v8210_v8 = vstv %s5316_s11  ;;  %v8213_v25 = vld [vmem:[#allocation88_spill] sm:$0xff]  ;;  %v8215_v6 = vld [vmem:[#allocation53_spill] sm:$0xff]  ;;  %v8217_v21 = vld [vmem:[#allocation74_spill] sm:$0xff] }
 0x450   : > { %v690_v22 = vsel %vm687_vm5, %v688_v50, %v8206_v54  ;;  %v695_v37 = vsel %vm687_vm5, %v693_v30, %v8208_v17  ;;  %8209 = vst [vmem:[#allocation55_spill] sm:$0xff] %v7084_v0  ;;  %v414_v34 = vmul.f32 %v8210_v8, %v5445_v4  ;;  %v765_v31 = vrot.slane %v740_v62, 5  ;;  %v8216_v30 = vld [vmem:[#allocation87_spill] sm:$0xff]  ;;  %v8221_v54 = vld [vmem:[#allocation85_spill] sm:$0xff] }
 0x451   : > { %v716_v36 = vadd.f32 %v690_v22, %v639_v40  ;;  %v718_v1 = vadd.f32 %v695_v37, %v641_v51  ;;  %v8212_v60 = vrot.slane %v8211_v24, 3  ;;  %v8214_v5 = vrot.slane %v8213_v25, 3  ;;  %v8219_v51 = vld [vmem:[#allocation75_spill] sm:$0xff]  ;;  %v8222_v22 = vld [vmem:[#allocation84_spill] sm:$0xff]  ;;  %v8223_v17 = vld [vmem:[#allocation57_spill] sm:$0xff] }
 0x452   : > { %v549_v50 = vrot.slane %v518_v33, 2  ;;  %v1425_v48 = vadd.f32 %v8215_v6, %v877_v63  ;;  %v847_v61 = vrot.slane %v820_v38, 6  ;;  %v778_v59 = vrot.slane %v8216_v30, 5  ;;  %v8224_v8 = vld [vmem:[#allocation77_spill] sm:$0xff] }
 0x453   : > { %v625_v57 = vsel %vm610_vm4, %v8214_v5, %v8212_v60  ;;  %v595_v46 = vmul.f32 %v8217_v21, %v5445_v4  ;;  %v491_v29 = vadd.f32 %v474_v32, %v414_v34  ;;  %v8218_v40 = vrot.slane %v6854_v52, 5  ;;  %v8227_v34 = vld [vmem:[#allocation72_spill] sm:$0xff]  ;;  %v8229_v5 = vld [vmem:[#allocation86_spill] sm:$0xff] }
 0x454   : > { %v8220_v11 = vrot.slane %v8219_v51, 5  ;;  %v642_v33 = vadd.f32 %v8222_v22, %v8221_v54  ;;  %v1973_v63 = vadd.f32 %v8223_v17, %v1425_v48  ;;  %v8225_v24 = vrot.slane %v8224_v8, 4  ;;  %3624 = vrot.lane.b32.xlu2 %v8227_v34, %s4993_s8  ;;  %v8232_v48 = vld [vmem:[#allocation65_spill] sm:$0xff] }
 0x455   : > { %v767_v62 = vsel %vm764_vm6, %v765_v31, %v8218_v40  ;;  %v8226_v60 = vrot.slane %v8207_v12, 4  ;;  %v644_v52 = vadd.f32 %v625_v57, %v567_v35  ;;  %v842_v31 = vrot.slane %v817_v13, 6  ;;  %v8233_v12 = vld [vmem:[#allocation6_spill] sm:$0xff]  ;;  %v8234_v35 = vld [vmem:[#allocation40_spill] sm:$0xff]  ;;  %v8235_v40 = vld [vmem:[#allocation43_spill] sm:$0xff] }
 0x456   : > { %v772_v53 = vsel %vm764_vm6, %v770_v39, %v8220_v11  ;;  %v793_v38 = vadd.f32 %v767_v62, %v716_v36  ;;  %v8228_v39 = vrot.slane %v6902_v7, 2  ;;  %v8230_v6 = vrot.slane %v8229_v5, 4  ;;  %v8237_v11 = vld [vmem:[#allocation79_spill] sm:$0xff] }
 0x457   : > { %v795_v37 = vadd.f32 %v772_v53, %v718_v1  ;;  %v697_v32 = vsel %vm687_vm5, %v8226_v60, %v8225_v24  ;;  %v8231_v36 = vrot.slane %v6888_v20, 4  ;;  %v2521_v30 = vadd.f32 %v8232_v48, %v1973_v63  ;;  %3646 = vrot.lane.b32.xlu0 %v8233_v12, %s4993_s8  ;;  %v8250_v48 = vld [vmem:[#allocation58_spill] sm:$0xff] }
 0x458   : > { %v551_v25 = vsel %vm533_vm3, %v549_v50, %v8228_v39  ;;  %v825_v57 = vmul.f32 %v6739_v43, %v8234_v35  ;;  %v672_v13 = vmul.f32 %v6657_v28, %v5445_v4  ;;  %v626_v21 = vrot.slane %v595_v46, 3  ;;  %v3053_v50 = vpop.permute.xlu2 %3052  ;;  %v8240_v43 = vld [vmem:[#allocation78_spill] sm:$0xff]  ;;  %v8245_v39 = vld [vmem:[#allocation49_spill] sm:$0xff] }
 0x459   : > { %v702_v1 = vsel %vm687_vm5, %v8231_v36, %v8230_v6  ;;  %v568_v7 = vadd.f32 %v551_v25, %v491_v29  ;;  %v8236_v62 = vrot.slane %v8235_v40, 6  ;;  %v8238_v53 = vrot.slane %v8237_v11, 6  ;;  %v8247_v6 = vld [vmem:[#allocation80_spill] sm:$0xff]  ;;  %v8255_v40 = vld [vmem:[#allocation67_spill] sm:$0xff] }
 0x45a   : > { %v719_v22 = vadd.f32 %v697_v32, %v642_v33  ;;  %v7135_v17 = vadd.f32 %v3053_v50, %v2521_v30  ;;  %v8241_v24 = vrot.slane %v8240_v43, 5  ;;  %v8242_v28 = vrot.slane %v8219_v51, 5  ;;  %v8244_v33 = vld [vmem:[#allocation48_spill] sm:$0xff]  ;;  %v8251_v30 = vld [vmem:[#allocation59_spill] sm:$0xff] }
 0x45b   : > { %v844_v20 = vsel %vm841_vm7, %v842_v31, %v8236_v62  ;;  %v849_v54 = vsel %vm841_vm7, %v847_v61, %v8238_v53  ;;  %v721_v29 = vadd.f32 %v702_v1, %v644_v52  ;;  %v8243_v60 = vrot.slane %v6920_v19, 5 }
 0x45c   : > { %8239 = vst [vmem:[#allocation28_spill] sm:$0xff] %v7135_v17  ;;  %v870_v63 = vadd.f32 %v844_v20, %v793_v38  ;;  %v872_v8 = vadd.f32 %v849_v54, %v795_v37  ;;  %v774_v46 = vsel %vm764_vm6, %v8242_v28, %v8241_v24  ;;  %v855_v31 = vrot.slane %v825_v57, 6  ;;  %v8252_v57 = vld [vmem:[#allocation8_spill] sm:$0xff] }
 0x45d   : > { %v779_v34 = vsel %vm764_vm6, %v8243_v60, %v778_v59  ;;  %v749_v61 = vmul.f32 %v6706_v26, %v5445_v4  ;;  %v8246_v37 = vrot.slane %v6930_v47, 3  ;;  %v703_v51 = vrot.slane %v672_v13, 4  ;;  %3650 = vrot.lane.b32.xlu2 %v8252_v57, %s4993_s8  ;;  %v8253_v47 = vld [vmem:[#allocation9_spill] sm:$0xff] }
 0x45e   : > { %v1418_v32 = vadd.f32 %v8244_v33, %v870_v63  ;;  %v1420_v38 = vadd.f32 %v8245_v39, %v872_v8  ;;  %v796_v5 = vadd.f32 %v774_v46, %v719_v22  ;;  %v8248_v52 = vrot.slane %v8247_v6, 6  ;;  %v8257_v46 = vld [vmem:[#allocation51_spill] sm:$0xff]  ;;  %v8261_v33 = vld [vmem:[#allocation11_spill] sm:$0xff]  ;;  %v8263_v39 = vld [vmem:[#allocation68_spill] sm:$0xff] }
 0x45f   : > { %v628_v25 = vsel %vm610_vm4, %v626_v21, %v8246_v37  ;;  %v8249_v19 = vmov %v8238_v53  ;;  %v798_v36 = vadd.f32 %v779_v34, %v721_v29  ;;  %3652 = vrot.lane.b32.xlu0 %v8253_v47, %s4993_s8  ;;  %v780_v13 = vrot.slane %v749_v61, 5  ;;  %v8254_v21 = vld [vmem:[#allocation66_spill] sm:$0xff]  ;;  %v3039_v22 = vpop.permute.xlu1 %3038  ;;  %v8264_v37 = vld [vmem:[#allocation69_spill] sm:$0xff] }
 0x460   : > { %v851_v59 = vsel %vm841_vm7, %v8249_v19, %v8248_v52  ;;  %v645_v1 = vadd.f32 %v628_v25, %v568_v7  ;;  %v1966_v26 = vadd.f32 %v8250_v48, %v1418_v32  ;;  %v1968_v12 = vadd.f32 %v8251_v30, %v1420_v38  ;;  %v3075_v20 = vpop.permute.xlu2 %3074  ;;  %v8262_v32 = vld [vmem:[#allocation13_spill] sm:$0xff]  ;;  %v8270_v30 = vld [vmem:[#allocation16_spill] sm:$0xff] }
 0x461   : > { %v826_v11 = vmul.f32 %v6840_v9, %v5445_v4  ;;  %v873_v7 = vadd.f32 %v851_v59, %v796_v5  ;;  %v856_v53 = vsel %vm841_vm7, %v853_v56, %v855_v31  ;;  %v705_v54 = vsel %vm687_vm5, %v703_v51, %v704_v18  ;;  %v3043_v63 = vpop.permute.xlu0 %3042  ;;  %v8258_v9 = vld [vmem:[#allocation52_spill] sm:$0xff]  ;;  %v8260_v31 = vld [vmem:[#allocation61_spill] sm:$0xff]  ;;  %v8267_v59 = vld [vmem:[#allocation54_spill] sm:$0xff] }
 0x462   : > { %v2514_v50 = vadd.f32 %v8254_v21, %v1966_v26  ;;  %v2516_v62 = vadd.f32 %v8255_v40, %v1968_v12  ;;  %v875_v8 = vadd.f32 %v856_v53, %v798_v36  ;;  %v722_v43 = vadd.f32 %v705_v54, %v645_v1  ;;  %v8259_v56 = vld [vmem:[#allocation60_spill] sm:$0xff]  ;;  %v8268_v1 = vld [vmem:[#allocation62_spill] sm:$0xff]  ;;  %v8269_v26 = vld [vmem:[#allocation14_spill] sm:$0xff] }
 0x463   : > { %v1421_v29 = vadd.f32 %v8257_v46, %v873_v7  ;;  %v857_v34 = vrot.slane %v826_v11, 6  ;;  %v782_v42 = vsel %vm764_vm6, %v780_v13, %v781_v58  ;;  %v8273_v21 = vld [vmem:[#allocation17_spill] sm:$0xff]  ;;  %v8275_v7 = vld [vmem:[#allocation20_spill] sm:$0xff] }
 0x464   : > { %v7173_v24 = vadd.f32 %v3039_v22, %v2514_v50  ;;  %v7175_v28 = vadd.f32 %v3043_v63, %v2516_v62  ;;  %v1423_v60 = vadd.f32 %v8258_v9, %v875_v8  ;;  %v799_v15 = vadd.f32 %v782_v42, %v722_v43  ;;  %v8274_v50 = vld [vmem:[#allocation18_spill] sm:$0xff]  ;;  %v8276_v53 = vld [vmem:[#allocation21_spill] sm:$0xff]  ;;  %v8277_v63 = vld [vmem:[#allocation23_spill] sm:$0xff] }
 0x465   : > { %v1969_v18 = vadd.f32 %v8259_v56, %v1421_v29  ;;  %3728 = vrot.lane.b32.xlu2 %v8261_v33, %s4993_s8  ;;  %v859_v44 = vsel %vm841_vm7, %v857_v34, %v858_v14  ;;  %v8278_v8 = vld [vmem:[#allocation24_spill] sm:$0xff]  ;;  %v8279_v29 = vld [vmem:[#allocation26_spill] sm:$0xff] }
 0x466   : > { %8256 = vst [vmem:[#allocation63_spill] sm:$0xff] %v7175_v28  ;;  %v1971_v61 = vadd.f32 %v8260_v31, %v1423_v60  ;;  %v876_v5 = vadd.f32 %v859_v44, %v799_v15  ;;  %v8280_v44 = vld [vmem:[#allocation37_spill] sm:$0xff] }
 0x467   : > { %3730 = vrot.lane.b32.xlu0 %v8262_v32, %s4993_s8  ;;  %v2517_v38 = vadd.f32 %v8263_v39, %v1969_v18  ;;  %v3045_v58 = vpop.permute.xlu1 %3044 }
 0x468   : > { %v2519_v25 = vadd.f32 %v8264_v37, %v1971_v61  ;;  %v3101_v19 = vpop.permute.xlu2 %3100  ;;  %v1424_v36 = vadd.f32 %v8267_v59, %v876_v5 }
 0x469   : > { %v3049_v51 = vpop.permute.xlu0 %3048  ;;  %v7193_v6 = vadd.f32 %v3045_v58, %v2517_v38 }
 0x46a   : > { %v7195_v52 = vadd.f32 %v3049_v51, %v2519_v25  ;;  %v1972_v48 = vadd.f32 %v8268_v1, %v1424_v36 }
 0x46b   : > { %8265 = vst [vmem:[#allocation27_spill] sm:$0xff] %v7193_v6 }
 0x46c   : > { %8266 = vst [vmem:[#allocation29_spill] sm:$0xff] %v7195_v52  ;;  %v2520_v14 = vadd.f32 %v8271_v23, %v1972_v48 }
 0x46d   : > { %3806 = vrot.lane.b32.xlu2 %v8269_v26, %s4993_s8 }
 0x46f   : > { %3808 = vrot.lane.b32.xlu0 %v8270_v30, %s4993_s8  ;;  %v3051_v12 = vpop.permute.xlu1 %3050 }
 0x470   : > { %v7204_v47 = vadd.f32 %v3051_v12, %v2520_v14  ;;  %v3179_v13 = vpop.permute.xlu2 %3178 }
 0x471   : > { %v3071_v57 = vpop.permute.xlu0 %3070 }
 0x472   : > { %8272 = vst [vmem:[#allocation50_spill] sm:$0xff] %v7204_v47 }
 0x473   : > { %4803 = vpush %v3071_v57 }
 0x475   : > { %3812 = vrot.lane.b32.xlu2 %v8273_v21, %s4993_s8 }
 0x477   : > { %3886 = vrot.lane.b32.xlu0 %v8274_v50, %s4993_s8  ;;  %v3073_v40 = vpop.permute.xlu1 %3072 }
 0x478   : > { %4805 = vpush %v3073_v40  ;;  %v3185_v11 = vpop.permute.xlu2 %3184 }
 0x479   : > { %v3077_v62 = vpop.permute.xlu0 %3076  ;;  %4807 = vpush %v3075_v20 }
 0x47a   : > { %4809 = vpush %v3077_v62 }
 0x47d   : > { %3890 = vrot.lane.b32.xlu2 %v8275_v7, %s4993_s8 }
 0x47f   : > { %3892 = vrot.lane.b32.xlu0 %v8276_v53, %s4993_s8  ;;  %v3099_v54 = vpop.permute.xlu1 %3098  ;;  %v8281_v53 = vld [vmem:[#allocation42_spill] sm:$0xff] }
 0x480   : > { %4811 = vpush %v3099_v54  ;;  %v3263_v20 = vpop.permute.xlu2 %3262 }
 0x481   : > { %v3103_v22 = vpop.permute.xlu0 %3102  ;;  %4813 = vpush %v3101_v19 }
 0x482   : > { %4815 = vpush %v3103_v22 }
 0x485   : > { %3968 = vrot.lane.b32.xlu2 %v8277_v63, %s4993_s8  ;;  %v8282_v63 = vld [vmem:[#allocation39_spill] sm:$0xff] }
 0x487   : > { %3970 = vrot.lane.b32.xlu0 %v8278_v8, %s4993_s8  ;;  %v3105_v43 = vpop.permute.xlu1 %3104 }
 0x488   : > { %4817 = vpush %v3105_v43  ;;  %v3341_v34 = vpop.permute.xlu2 %3340 }
 0x489   : > { %v3181_v46 = vpop.permute.xlu0 %3180  ;;  %4819 = vpush %v3179_v13 }
 0x48a   : > { %4821 = vpush %v3181_v46  ;;  %v8284_v46 = vld [vmem:[#allocation45_spill] sm:$0xff] }
 0x48d   : > { %4046 = vrot.lane.b32.xlu2 %v8279_v29, %s4993_s8 }
 0x48f   : > { %4048 = vrot.lane.b32.xlu0 %v8185_v41, %s4993_s8  ;;  %v3183_v9 = vpop.permute.xlu1 %3182 }
 0x490   : > { %4823 = vpush %v3183_v9  ;;  %v3419_v56 = vpop.permute.xlu2 %3418 }
 0x491   : > { %v3259_v60 = vpop.permute.xlu0 %3258  ;;  %4825 = vpush %v3185_v11 }
 0x492   : > { %4827 = vpush %v3259_v60 }
 0x495   : > { %4052 = vrot.lane.b32.xlu2 %v8186_v3, %s4993_s8 }
 0x497   : > { %v3261_v42 = vpop.permute.xlu1 %3260 }
 0x498   : > { %4829 = vpush %v3261_v42  ;;  %v3425_v41 = vpop.permute.xlu2 %3424 }
 0x499   : > { %v3265_v15 = vpop.permute.xlu0 %3264  ;;  %4831 = vpush %v3263_v20  ;;  %v8283_v20 = vld [vmem:[#allocation38_spill] sm:$0xff] }
 0x49a   : > { %4833 = vpush %v3265_v15 }
 0x49f   : > { %v3339_v18 = vpop.permute.xlu1 %3338 }
 0x4a0   : > { %4835 = vpush %v3339_v18  ;;  %v3503_v3 = vpop.permute.xlu2 %3502 }
 0x4a1   : > { %v3343_v31 = vpop.permute.xlu0 %3342  ;;  %4837 = vpush %v3341_v34 }
 0x4a2   : > { %4839 = vpush %v3343_v31 }
 0x4a4   : > { %s7224_s9 = spop %4803 }
 0x4a5   : > { %v3079_v11 = vstv %s7224_s9 }
 0x4a6   : > { %v3090_v34 = vmul.f32 %v3079_v11, %v8140_v55  ;;  %v3091_v42 = vmul.f32 %v3079_v11, %v8281_v53 }
 0x4a7   : > { %v3345_v61 = vpop.permute.xlu1 %3344 }
 0x4a8   : > { %4841 = vpush %v3345_v61  ;;  %v3619_v14 = vpop.permute.xlu2 %3618 }
 0x4a9   : > { %v3421_v33 = vpop.permute.xlu0 %3420  ;;  %4843 = vpush %v3419_v56  ;;  %s7226_s10 = spop %4805 }
 0x4aa   : > { %4845 = vpush %v3421_v33  ;;  %s7228_s11 = spop %4807  ;;  %v3082_v37 = vstv %s7226_s10 }
 0x4ab   : > { %s7230_s22 = spop %4809  ;;  %v3092_v36 = vmul.f32 %v3082_v37, %v8157_v10  ;;  %v3085_v1 = vstv %s7228_s11 }
 0x4ac   : > { %v3095_v21 = vmul.f32 %v3085_v1, %v8142_v16  ;;  %v7959_v56 = vstv %s7230_s22 }
 0x4ad   : > { %v3096_v11 = vmul.f32 %v7959_v56, %v5445_v4 }
 0x4af   : > { %v3423_v32 = vpop.permute.xlu1 %3422 }
 0x4b0   : > { %4847 = vpush %v3423_v32 }
 0x4b1   : > { %v3499_v39 = vpop.permute.xlu0 %3498  ;;  %4849 = vpush %v3425_v41  ;;  %s4812_s23 = spop %4811 }
 0x4b2   : > { %s4814_s24 = spop %4813  ;;  %4851 = vpush %v3499_v39  ;;  %v3107_v50 = vstv %s4812_s23 }
 0x4b3   : > { %v3110_v38 = vstv %s4814_s24  ;;  %s4816_s25 = spop %4815  ;;  %v3118_v7 = vmul.f32 %v3107_v50, %v8140_v55  ;;  %v3119_v54 = vmul.f32 %v3107_v50, %v8281_v53  ;;  %v3120_v8 = vmul.f32 %v3107_v50, %v8282_v63 }
 0x4b4   : > { %v3121_v25 = vmul.f32 %v3110_v38, %v8157_v10  ;;  %v7235_v58 = vmul.f32 %v3110_v38, %v8280_v44  ;;  %v3113_v51 = vstv %s4816_s25  ;;  %v3123_v43 = vmul.f32 %v3110_v38, %v8283_v20 }
 0x4b5   : > { %v7239_v59 = vmul.f32 %v3113_v51, %v8142_v16  ;;  %v3126_v26 = vmul.f32 %v3113_v51, %v8234_v35  ;;  %v3124_v29 = vmul.f32 %v3113_v51, %v8284_v46  ;;  %v3142_v18 = vrot.slane %v3118_v7, 1 }
 0x4b6   : > { %v3147_v5 = vrot.slane %v3121_v25, 1  ;;  %v3148_v19 = vrot.slane %v7235_v58, 1  ;;  %v3143_v61 = vrot.slane %v3119_v54, 1  ;;  %v3145_v39 = vrot.slane %v3120_v8, 1 }
 0x4b7   : > { %v3501_v48 = vpop.permute.xlu1 %3500  ;;  %v3153_v57 = vrot.slane %v7239_v59, 1  ;;  %v3155_v13 = vrot.slane %v3126_v26, 1  ;;  %v3150_v38 = vrot.slane %v3123_v43, 1  ;;  %v3152_v25 = vrot.slane %v3124_v29, 1 }
 0x4b8   : > { %v3149_v23 = vsel %vm456_vm2, %v3147_v5, %v3148_v19  ;;  %4853 = vpush %v3501_v48  ;;  %v3093_v26 = vmul.f32 %v3082_v37, %v8280_v44  ;;  %v3146_v7 = vsel %vm456_vm2, %v3143_v61, %v3145_v39 }
 0x4b9   : > { %v3505_v30 = vpop.permute.xlu0 %3504  ;;  %v3172_v12 = vadd.f32 %v3149_v23, %v3092_v36  ;;  %4855 = vpush %v3503_v3  ;;  %s4818_s26 = spop %4817  ;;  %v3156_v40 = vsel %vm456_vm2, %v3153_v57, %v3155_v13  ;;  %v3094_v13 = vmul.f32 %v3085_v1, %v8284_v46  ;;  %v3151_v37 = vsel %vm456_vm2, %v3148_v19, %v3150_v38 }
 0x4ba   : > { %s4820_s27 = spop %4819  ;;  %4857 = vpush %v3505_v30  ;;  %v3175_v62 = vadd.f32 %v3156_v40, %v3095_v21  ;;  %v3116_v31 = vstv %s4818_s26  ;;  %v3144_v21 = vsel %vm456_vm2, %v3142_v18, %v3143_v61  ;;  %v3173_v61 = vadd.f32 %v3151_v37, %v3093_v26 }
 0x4bb   : > { %4859 = vpush %v3619_v14  ;;  %s4822_s28 = spop %4821  ;;  %v3187_v33 = vstv %s4820_s27  ;;  %v3127_v5 = vmul.f32 %v3116_v31, %v5445_v4  ;;  %v7269_v59 = vmul.f32 %v3116_v31, %v5440_v2  ;;  %v7290_v1 = vmul.f32 %v3116_v31, %v5426_v49 }
 0x4bc   : > { %v3190_v22 = vstv %s4822_s28  ;;  %v3198_v30 = vmul.f32 %v3187_v33, %v8140_v55  ;;  %v3199_v50 = vmul.f32 %v3187_v33, %v8281_v53  ;;  %v3170_v29 = vadd.f32 %v3144_v21, %v3090_v34 }
 0x4bd   : > { %v3201_v9 = vmul.f32 %v3190_v22, %v8157_v10  ;;  %v7260_v15 = vmul.f32 %v3190_v22, %v8280_v44  ;;  %v3157_v54 = vrot.slane %v3127_v5, 1  ;;  %v7961_v8 = vrot.slane %v7269_v59, 1 }
 0x4be   : > { %v3223_v58 = vrot.slane %v3199_v50, 2  ;;  %v3203_v19 = vmul.f32 %v3190_v22, %v8283_v20  ;;  %v3171_v31 = vadd.f32 %v3146_v7, %v3091_v42 }
 0x4bf   : > { %v3227_v41 = vrot.slane %v3201_v9, 2  ;;  %v3228_v3 = vrot.slane %v7260_v15, 2  ;;  %v3200_v9 = vmul.f32 %v3187_v33, %v8282_v63  ;;  %v3159_v34 = vsel %vm456_vm2, %v3157_v54, %v7961_v8 }
 0x4c1   : > { %v3621_v60 = vpop.permute.xlu0 %3620  ;;  %s4824_s29 = spop %4823  ;;  %v3229_v36 = vsel %vm533_vm3, %v3227_v41, %v3228_v3  ;;  %v3225_v22 = vrot.slane %v3200_v9, 2 }
 0x4c2   : > { %4861 = vpush %v3621_v60  ;;  %v3193_v32 = vstv %s4824_s29  ;;  %v3252_v23 = vadd.f32 %v3229_v36, %v3172_v12  ;;  %s4826_s30 = spop %4825  ;;  %v3154_v12 = vsel %vm456_vm2, %v3152_v25, %v3153_v57  ;;  %v3222_v60 = vrot.slane %v3198_v30, 2 }
 0x4c3   : > { %v7265_v51 = vmul.f32 %v3193_v32, %v8142_v16  ;;  %v3206_v48 = vmul.f32 %v3193_v32, %v8234_v35  ;;  %s4828_s5 = spop %4827  ;;  %v3204_v57 = vmul.f32 %v3193_v32, %v8284_v46  ;;  %v3174_v39 = vadd.f32 %v3154_v12, %v3094_v13 }
 0x4c4   : > { %v3224_v42 = vsel %vm533_vm3, %v3222_v60, %v3223_v58  ;;  %v3230_v36 = vrot.slane %v3203_v19, 2  ;;  %v3226_v54 = vsel %vm533_vm3, %v3223_v58, %v3225_v22 }
 0x4c5   : > { %v3233_v14 = vrot.slane %v7265_v51, 2  ;;  %v3235_v40 = vrot.slane %v3206_v48, 2  ;;  %v3267_v51 = vstv %s4828_s5  ;;  %v3232_v48 = vrot.slane %v3204_v57, 2 }
 0x4c6   : > { %v3278_v7 = vmul.f32 %v3267_v51, %v8140_v55  ;;  %v3279_v37 = vmul.f32 %v3267_v51, %v8281_v53  ;;  %v3250_v19 = vadd.f32 %v3224_v42, %v3170_v29  ;;  %v3251_v42 = vadd.f32 %v3226_v54, %v3171_v31 }
 0x4c7   : > { %v3236_v43 = vsel %vm533_vm3, %v3233_v14, %v3235_v40  ;;  %v3176_v40 = vadd.f32 %v3159_v34, %v3096_v11  ;;  %v3231_v11 = vsel %vm533_vm3, %v3228_v3, %v3230_v36  ;;  %v3234_v57 = vsel %vm533_vm3, %v3232_v48, %v3233_v14 }
 0x4c8   : > { %v3255_v18 = vadd.f32 %v3236_v43, %v3175_v62  ;;  %v3196_v62 = vstv %s4826_s30  ;;  %v3302_v58 = vrot.slane %v3278_v7, 3  ;;  %v3303_v22 = vrot.slane %v3279_v37, 3 }
 0x4c9   : > { %s4830_s4 = spop %4829  ;;  %v3207_v30 = vmul.f32 %v3196_v62, %v5445_v4  ;;  %v7309_v13 = vmul.f32 %v3196_v62, %v5440_v2  ;;  %v3253_v3 = vadd.f32 %v3231_v11, %v3173_v61  ;;  %v7341_v7 = vmul.f32 %v3196_v62, %v5426_v49 }
 0x4ca   : > { %v3270_v41 = vstv %s4830_s4  ;;  %s4832_s2 = spop %4831  ;;  %v3304_v31 = vsel %vm610_vm4, %v3302_v58, %v3303_v22 }
 0x4cb   : > { %v3281_v38 = vmul.f32 %v3270_v41, %v8157_v10  ;;  %v7303_v25 = vmul.f32 %v3270_v41, %v8280_v44  ;;  %v3273_v5 = vstv %s4832_s2  ;;  %s4834_s0 = spop %4833  ;;  %v3237_v34 = vrot.slane %v3207_v30, 2 }
 0x4cc   : > { %v7312_v21 = vmul.f32 %v3273_v5, %v8142_v16  ;;  %v3286_v50 = vmul.f32 %v3273_v5, %v8234_v35  ;;  %v7960_v56 = vrot.slane %v7309_v13, 2  ;;  %v3283_v29 = vmul.f32 %v3270_v41, %v8283_v20 }
 0x4cd   : > { %v3307_v32 = vrot.slane %v3281_v38, 3  ;;  %v3308_v26 = vrot.slane %v7303_v25, 3  ;;  %v3276_v38 = vstv %s4834_s0  ;;  %v3330_v8 = vadd.f32 %v3304_v31, %v3250_v19 }
 0x4ce   : > { %v3313_v9 = vrot.slane %v7312_v21, 3  ;;  %v3315_v60 = vrot.slane %v3286_v50, 3  ;;  %v3287_v14 = vmul.f32 %v3276_v38, %v5445_v4  ;;  %v7334_v48 = vmul.f32 %v3276_v38, %v5440_v2 }
 0x4cf   : > { %v3309_v12 = vsel %vm610_vm4, %v3307_v32, %v3308_v26  ;;  %v3280_v32 = vmul.f32 %v3267_v51, %v8282_v63  ;;  %v3310_v61 = vrot.slane %v3283_v29, 3  ;;  %v7373_v31 = vmul.f32 %v3276_v38, %v5426_v49 }
 0x4d0   : > { %v3332_v43 = vadd.f32 %v3309_v12, %v3252_v23  ;;  %v3316_v23 = vsel %vm610_vm4, %v3313_v9, %v3315_v60  ;;  %v7338_v12 = vadd.f32 %v3234_v57, %v3174_v39  ;;  %v3284_v60 = vmul.f32 %v3273_v5, %v8284_v46 }
 0x4d1   : > { %s4836_s3 = spop %4835  ;;  %v3335_v15 = vadd.f32 %v3316_v23, %v3255_v18  ;;  %v3239_v18 = vsel %vm533_vm3, %v3237_v34, %v7960_v56  ;;  %v3305_v41 = vrot.slane %v3280_v32, 3  ;;  %v3317_v11 = vrot.slane %v3287_v14, 3 }
 0x4d2   : > { %s4838_s7 = spop %4837  ;;  %v3347_v30 = vstv %s4836_s3  ;;  %v7962_v62 = vrot.slane %v7334_v48, 3 }
 0x4d3   : > { %v3350_v36 = vstv %s4838_s7  ;;  %s4840_s17 = spop %4839  ;;  %v3358_v23 = vmul.f32 %v3347_v30, %v8140_v55  ;;  %v3359_v57 = vmul.f32 %v3347_v30, %v8281_v53  ;;  %v3360_v34 = vmul.f32 %v3347_v30, %v8282_v63 }
 0x4d4   : > { %v3361_v51 = vmul.f32 %v3350_v36, %v8157_v10  ;;  %v3362_v50 = vmul.f32 %v3350_v36, %v8280_v44  ;;  %v3353_v39 = vstv %s4840_s17  ;;  %v3363_v58 = vmul.f32 %v3350_v36, %v8283_v20 }
 0x4d5   : > { %v3366_v5 = vmul.f32 %v3353_v39, %v8234_v35  ;;  %v3306_v56 = vsel %vm610_vm4, %v3303_v22, %v3305_v41  ;;  %v3311_v30 = vsel %vm610_vm4, %v3308_v26, %v3310_v61  ;;  %v3382_v33 = vrot.slane %v3358_v23, 4 }
 0x4d6   : > { %v3387_v37 = vrot.slane %v3361_v51, 4  ;;  %v3388_v54 = vrot.slane %v3362_v50, 4  ;;  %v7357_v51 = vmul.f32 %v3353_v39, %v8142_v16  ;;  %v3256_v50 = vadd.f32 %v3239_v18, %v3176_v40 }
 0x4d7   : > { %v3395_v36 = vrot.slane %v3366_v5, 4  ;;  %v3383_v14 = vrot.slane %v3359_v57, 4  ;;  %v3385_v18 = vrot.slane %v3360_v34, 4  ;;  %v3390_v22 = vrot.slane %v3363_v58, 4 }
 0x4d8   : > { %v3389_v32 = vsel %vm687_vm5, %v3387_v37, %v3388_v54  ;;  %v3312_v37 = vrot.slane %v3284_v60, 3  ;;  %v3331_v26 = vadd.f32 %v3306_v56, %v3251_v42  ;;  %v3333_v41 = vadd.f32 %v3311_v30, %v3253_v3 }
 0x4d9   : > { %s7349_s18 = spop %4841  ;;  %v3412_v29 = vadd.f32 %v3389_v32, %v3332_v43  ;;  %v7963_v43 = vrot.slane %v7357_v51, 4  ;;  %v3319_v32 = vsel %vm610_vm4, %v3317_v11, %v7962_v62  ;;  %v3384_v34 = vsel %vm687_vm5, %v3382_v33, %v3383_v14 }
 0x4da   : > { %s4844_s15 = spop %4843  ;;  %v7378_v60 = vsel %vm610_vm4, %v3312_v37, %v3313_v9  ;;  %v7380_v11 = vadd.f32 %v3319_v32, %v3256_v50  ;;  %v7383_v23 = vstv %s7349_s18  ;;  %v3386_v21 = vsel %vm687_vm5, %v3383_v14, %v3385_v18 }
 0x4db   : > { %s4846_s12 = spop %4845  ;;  %v3427_v40 = vstv %s4844_s15  ;;  %v3396_v25 = vsel %vm687_vm5, %v7963_v43, %v3395_v36  ;;  %v3391_v9 = vsel %vm687_vm5, %v3388_v54, %v3390_v22  ;;  %v7393_v42 = vmul.f32 %v3353_v39, %v8284_v46 }
 0x4dc   : > { %v3430_v19 = vstv %s4846_s12  ;;  %v3415_v61 = vadd.f32 %v3396_v25, %v3335_v15  ;;  %v3438_v57 = vmul.f32 %v3427_v40, %v8140_v55  ;;  %v3439_v56 = vmul.f32 %v3427_v40, %v8281_v53 }
 0x4dd   : > { %v3441_v38 = vmul.f32 %v3430_v19, %v8157_v10  ;;  %v3442_v15 = vmul.f32 %v3430_v19, %v8280_v44  ;;  %v7397_v58 = vmul.f32 %v7383_v23, %v5445_v4  ;;  %v3440_v33 = vmul.f32 %v3427_v40, %v8282_v63 }
 0x4de   : > { %v7402_v30 = vmul.f32 %v7383_v23, %v5440_v2  ;;  %v3462_v14 = vrot.slane %v3438_v57, 5  ;;  %v3443_v54 = vmul.f32 %v3430_v19, %v8283_v20  ;;  %v3463_v37 = vrot.slane %v3439_v56, 5 }
 0x4df   : > { %v3467_v5 = vrot.slane %v3441_v38, 5  ;;  %v3468_v50 = vrot.slane %v3442_v15, 5  ;;  %v3410_v40 = vadd.f32 %v3384_v34, %v3330_v8  ;;  %v3411_v22 = vadd.f32 %v3386_v21, %v3331_v26 }
 0x4e0   : > { %v3413_v57 = vadd.f32 %v3391_v9, %v3333_v41  ;;  %v3392_v19 = vrot.slane %v7393_v42, 4  ;;  %v3465_v15 = vrot.slane %v3440_v33, 5  ;;  %v3397_v56 = vrot.slane %v7397_v58, 4 }
 0x4e1   : > { %s4848_s13 = spop %4847  ;;  %v3469_v36 = vsel %vm764_vm6, %v3467_v5, %v3468_v50  ;;  %v3470_v43 = vrot.slane %v3443_v54, 5 }
 0x4e2   : > { %v3433_v3 = vstv %s4848_s13  ;;  %s4850_s6 = spop %4849  ;;  %v7412_v25 = vadd.f32 %v3469_v36, %v3412_v29  ;;  %v3464_v29 = vsel %vm764_vm6, %v3462_v14, %v3463_v37  ;;  %v3466_v58 = vsel %vm764_vm6, %v3463_v37, %v3465_v15 }
 0x4e3   : > { %v7406_v39 = vmul.f32 %v3433_v3, %v8142_v16  ;;  %v3446_v32 = vmul.f32 %v3433_v3, %v8234_v35  ;;  %v7410_v18 = vstv %s4850_s6  ;;  %s4852_s14 = spop %4851  ;;  %v3444_v33 = vmul.f32 %v3433_v3, %v8284_v46 }
 0x4e4   : > { %v3447_v5 = vmul.f32 %v7410_v18, %v5445_v4  ;;  %v3507_v17 = vstv %s4852_s14  ;;  %v7426_v41 = vmul.f32 %v7410_v18, %v5440_v2  ;;  %v3490_v6 = vadd.f32 %v3464_v29, %v3410_v40 }
 0x4e5   : > { %v7964_v38 = vrot.slane %v7406_v39, 5  ;;  %v3475_v62 = vrot.slane %v3446_v32, 5  ;;  %v3518_v21 = vmul.f32 %v3507_v17, %v8140_v55  ;;  %v3519_v9 = vmul.f32 %v3507_v17, %v8281_v53 }
 0x4e6   : > { %v3520_v42 = vmul.f32 %v3507_v17, %v8282_v63  ;;  %v3477_v36 = vrot.slane %v3447_v5, 5  ;;  %v3491_v45 = vadd.f32 %v3466_v58, %v3411_v22  ;;  %v8289_v29 = vrot.slane %v7269_v59, 1 }
 0x4e7   : > { %v3476_v26 = vsel %vm764_vm6, %v7964_v38, %v3475_v62  ;;  %v3471_v62 = vsel %vm764_vm6, %v3468_v50, %v3470_v43  ;;  %v3542_v32 = vrot.slane %v3518_v21, 6  ;;  %v3543_v38 = vrot.slane %v3519_v9, 6 }
 0x4e8   : > { %v3495_v34 = vadd.f32 %v3476_v26, %v3415_v61  ;;  %v3545_v8 = vrot.slane %v3520_v42, 6  ;;  %v3449_v59 = vmul.f32 %v7410_v18, %v5426_v49  ;;  %v8292_v58 = vrot.slane %v7341_v7, 2 }
 0x4e9   : > { %s4854_s19 = spop %4853  ;;  %v3544_v37 = vsel %vm841_vm7, %v3542_v32, %v3543_v38 }
 0x4ea   : > { %s4856_s20 = spop %4855  ;;  %v3510_v14 = vstv %s4854_s19  ;;  %v3546_v9 = vsel %vm841_vm7, %v3543_v38, %v3545_v8  ;;  %v3472_v8 = vrot.slane %v3444_v33, 5  ;;  %v8293_v33 = vrot.slane %v7309_v13, 2 }
 0x4eb   : > { %v3513_v54 = vstv %s4856_s20  ;;  %v3521_v61 = vmul.f32 %v3510_v14, %v8157_v10  ;;  %v3522_v26 = vmul.f32 %v3510_v14, %v8280_v44  ;;  %v3523_v47 = vmul.f32 %v3510_v14, %v8283_v20  ;;  %s4858_s21 = spop %4857 }
 0x4ec   : > { %v3525_v3 = vmul.f32 %v3513_v54, %v8142_v16  ;;  %v3526_v15 = vmul.f32 %v3513_v54, %v8234_v35  ;;  %v3524_v21 = vmul.f32 %v3513_v54, %v8284_v46  ;;  %v3516_v0 = vstv %s4858_s21 }
 0x4ed   : > { %v3547_v43 = vrot.slane %v3521_v61, 6  ;;  %v3548_v50 = vrot.slane %v3522_v26, 6  ;;  %v3550_v5 = vrot.slane %v3523_v47, 6  ;;  %v3527_v32 = vmul.f32 %v3516_v0, %v5445_v4 }
 0x4ee   : > { %v3553_v42 = vrot.slane %v3525_v3, 6  ;;  %v3555_v52 = vrot.slane %v3526_v15, 6  ;;  %v3528_v28 = vmul.f32 %v3516_v0, %v5440_v2  ;;  %v3493_v61 = vadd.f32 %v3471_v62, %v3413_v57 }
 0x4ef   : > { %v3549_v14 = vsel %vm841_vm7, %v3547_v43, %v3548_v50  ;;  %v3551_v17 = vsel %vm841_vm7, %v3548_v50, %v3550_v5  ;;  %v8285_v54 = vrot.slane %v7402_v30, 4  ;;  %v3557_v26 = vrot.slane %v3527_v32, 6 }
 0x4f0   : > { %v3556_v47 = vsel %vm841_vm7, %v3553_v42, %v3555_v52  ;;  %v3558_v3 = vrot.slane %v3528_v28, 6  ;;  %v3369_v15 = vmul.f32 %v7383_v23, %v5426_v49  ;;  %v3573_v43 = vadd.f32 %v3551_v17, %v3493_v61 }
 0x4f1   : > { %v3399_v38 = vsel %vm687_vm5, %v3397_v56, %v8285_v54  ;;  %v3571_v50 = vadd.f32 %v3546_v9, %v3491_v45  ;;  %v3570_v5 = vadd.f32 %v3544_v37, %v3490_v6  ;;  %v8286_v4 = vrot.slane %v7357_v51, 4 }
 0x4f2   : > { %v8287_v52 = vrot.slane %v7426_v41, 5  ;;  %v3552_v57 = vrot.slane %v3524_v21, 6  ;;  %v3572_v56 = vadd.f32 %v3549_v14, %v7412_v25  ;;  %v8288_v28 = vrot.slane %v7290_v1, 1  ;;  %3592 = vrot.lane.b32.xlu2 %v3573_v43, %s4992_s16  ;;  %v8298_v41 = vld [vmem:[#allocation10_spill] sm:$0xff]  ;;  %v8299_v43 = vld [vmem:[#allocation12_spill] sm:$0xff] }
 0x4f3   : > { %v3394_v40 = vsel %vm687_vm5, %v3392_v19, %v8286_v4  ;;  %v3334_v45 = vadd.f32 %v7378_v60, %v7338_v12  ;;  %v3320_v6 = vrot.slane %v7373_v31, 3  ;;  %v3416_v4 = vadd.f32 %v3399_v38, %v7380_v11  ;;  %3588 = vrot.lane.b32.xlu0 %v3571_v50, %s4992_s16  ;;  %3586 = vrot.lane.b32.xlu1 %v3570_v5, %s4992_s16  ;;  %v8300_v50 = vld [vmem:[#allocation15_spill] sm:$0xff] }
 0x4f4   : > { %v3479_v22 = vsel %vm764_vm6, %v3477_v36, %v8287_v52  ;;  %v3161_v23 = vsel %vm456_vm2, %v8289_v29, %v8288_v28  ;;  %v8290_v51 = vrot.slane %v7406_v39, 5  ;;  %v3559_v1 = vsel %vm841_vm7, %v3557_v26, %v3558_v3  ;;  %v8301_v5 = vld [vmem:[#allocation19_spill] sm:$0xff] }
 0x4f5   : > { %v3575_v12 = vadd.f32 %v3556_v47, %v3495_v34  ;;  %v8291_v31 = vstv %s7230_s22  ;;  %v3414_v11 = vadd.f32 %v3394_v40, %v3334_v45  ;;  %v3496_v19 = vadd.f32 %v3479_v22, %v3416_v4  ;;  %v8303_v40 = vld [vmem:[#allocation25_spill] sm:$0xff]  ;;  %v3647_v22 = vpop.permute.xlu0 %3646 }
 0x4f6   : > { %v3474_v25 = vsel %vm764_vm6, %v3472_v8, %v8290_v51  ;;  %v3097_v60 = vmul.f32 %v8291_v31, %v5440_v2  ;;  %v3241_v39 = vsel %vm533_vm3, %v8293_v33, %v8292_v58  ;;  %v3400_v62 = vrot.slane %v3369_v15, 4  ;;  %v8297_v15 = vld [vmem:[#allocation7_spill] sm:$0xff] }
 0x4f7   : > { %v3554_v36 = vsel %vm841_vm7, %v3552_v57, %v3553_v42  ;;  %v3529_v18 = vmul.f32 %v3516_v0, %v5426_v49  ;;  %v3494_v37 = vadd.f32 %v3474_v25, %v3414_v11  ;;  %v3576_v21 = vadd.f32 %v3559_v1, %v3496_v19 }
 0x4f8   : > { %v3177_v17 = vadd.f32 %v3161_v23, %v3097_v60  ;;  %v8294_v34 = vrot.slane %v7334_v48, 3  ;;  %v3480_v14 = vrot.slane %v3449_v59, 5  ;;  %v8295_v7 = vmov %v8285_v54  ;;  %v4962_v48 = vld [vmem:[%s7834_s1 + $0x10] sm:$0x7f] }
 0x4f9   : > { %v3574_v61 = vadd.f32 %v3554_v36, %v3494_v37  ;;  %v3401_v13 = vsel %vm687_vm5, %v8295_v7, %v3400_v62  ;;  %v3560_v47 = vrot.slane %v3529_v18, 6  ;;  %v8296_v0 = vmov %v8287_v52  ;;  %v3625_v52 = vpop.permute.xlu2 %3624 }
 0x4fa   : > { %v3321_v9 = vsel %vm610_vm4, %v8294_v34, %v3320_v6  ;;  %v3257_v32 = vadd.f32 %v3241_v39, %v3177_v17  ;;  %3598 = vrot.lane.b32.xlu2 %v3576_v21, %s4992_s16  ;;  %v3481_v42 = vsel %vm764_vm6, %v8296_v0, %v3480_v14 }
 0x4fb   : > { %3594 = vrot.lane.b32.xlu0 %v3574_v61, %s4992_s16  ;;  %3622 = vrot.lane.b32.xlu1 %v4962_v48, %s4993_s8  ;;  %v3561_v30 = vsel %vm841_vm7, %v3558_v3, %v3560_v47  ;;  %v8302_v3 = vld [vmem:[#allocation22_spill] sm:$0xff] }
 0x4fc   : > { %v3337_v54 = vadd.f32 %v3321_v9, %v3257_v32 }
 0x4fd   : > { %v3653_v23 = vpop.permute.xlu0 %3652 }
 0x4fe   : > { %v3417_v38 = vadd.f32 %v3401_v13, %v3337_v54 }
 0x500   : > { %v3497_v8 = vadd.f32 %v3481_v42, %v3417_v38 }
 0x501   : > { %v3651_v29 = vpop.permute.xlu2 %3650 }
 0x502   : > { %v3577_v26 = vadd.f32 %v3561_v30, %v3497_v8 }
 0x503   : > { %3648 = vrot.lane.b32.xlu1 %v8297_v15, %s4993_s8 }
 0x504   : > { %3600 = vrot.lane.b32.xlu0 %v3577_v26, %s4992_s16 }
 0x505   : > { %v3731_v4 = vpop.permute.xlu0 %3730 }
 0x509   : > { %v3729_v6 = vpop.permute.xlu2 %3728 }
 0x50b   : > { %3726 = vrot.lane.b32.xlu1 %v8298_v41, %s4993_s8 }
 0x50d   : > { %v3809_v25 = vpop.permute.xlu0 %3808 }
 0x513   : > { %3732 = vrot.lane.b32.xlu1 %v8299_v43, %s4993_s8 }
 0x515   : > { %v3887_v1 = vpop.permute.xlu0 %3886 }
 0x51b   : > { %3810 = vrot.lane.b32.xlu1 %v8300_v50, %s4993_s8 }
 0x51d   : > { %v3893_v60 = vpop.permute.xlu0 %3892 }
 0x523   : > { %3888 = vrot.lane.b32.xlu1 %v8301_v5, %s4993_s8 }
 0x525   : > { %v3971_v58 = vpop.permute.xlu0 %3970 }
 0x52b   : > { %3966 = vrot.lane.b32.xlu1 %v8302_v3, %s4993_s8 }
 0x52d   : > { %v4049_v36 = vpop.permute.xlu0 %4048 }
 0x533   : > { %3972 = vrot.lane.b32.xlu1 %v8303_v40, %s4993_s8 }
 0x53b   : > { %4050 = vrot.lane.b32.xlu1 %v8180_v27, %s4993_s8  ;;  %v3807_v27 = vpop.permute.xlu2 %3806 }
 0x543   : > { %3590 = vrot.lane.b32.xlu1 %v3572_v56, %s4992_s16  ;;  %v3813_v59 = vpop.permute.xlu2 %3812 }
 0x54b   : > { %3596 = vrot.lane.b32.xlu1 %v3575_v12, %s4992_s16  ;;  %v3891_v31 = vpop.permute.xlu2 %3890  ;;  %s7526_s16 = spop %4859 }
 0x54c   : > { %s7528_s11 = spop %4861  ;;  %v3627_v37 = vstv %s7526_s16 }
 0x54d   : > { %v3638_v54 = vmul.f32 %v3627_v37, %v8140_v55  ;;  %v3630_v0 = vstv %s7528_s11  ;;  %v3639_v50 = vmul.f32 %v3627_v37, %v8281_v53  ;;  %s8305_s11 = sld [smem:[#allocation90_spill]] }
 0x54e   : > { %v3640_v5 = vmul.f32 %v3630_v0, %v8157_v10 }
 0x553   : > { %v3969_v19 = vpop.permute.xlu2 %3968 }
 0x55b   : > { %v4047_v39 = vpop.permute.xlu2 %4046 }
 0x563   : > { %v4053_v32 = vpop.permute.xlu2 %4052 }
 0x565   : > { %v3587_v57 = vpop.permute.xlu1 %3586 }
 0x566   : > { %v7524_v28 = vadd.f32 %v3587_v57, %v7173_v24 }
 0x56d   : > { %v3623_v45 = vpop.permute.xlu1 %3622 }
 0x56e   : > { %4863 = vpush %v3623_v45 }
 0x56f   : > { %4865 = vpush %v3625_v52  ;;  %v3641_v52 = vmul.f32 %v3630_v0, %v8280_v44 }
 0x570   : > { %4867 = vpush %v3647_v22 }
 0x575   : > { %v3649_v51 = vpop.permute.xlu1 %3648 }
 0x576   : > { %4869 = vpush %v3649_v51 }
 0x577   : > { %4871 = vpush %v3651_v29 }
 0x578   : > { %4873 = vpush %v3653_v23 }
 0x57d   : > { %v3727_v56 = vpop.permute.xlu1 %3726 }
 0x57e   : > { %4875 = vpush %v3727_v56 }
 0x57f   : > { %4877 = vpush %v3729_v6  ;;  %v8304_v6 = vld [vmem:[#allocation46_spill] sm:$0xff] }
 0x580   : > { %4879 = vpush %v3731_v4 }
 0x585   : > { %v3733_v24 = vpop.permute.xlu1 %3732 }
 0x586   : > { %4881 = vpush %v3733_v24 }
 0x587   : > { %4883 = vpush %v3807_v27 }
 0x588   : > { %4885 = vpush %v3809_v25 }
 0x58d   : > { %v3811_v12 = vpop.permute.xlu1 %3810 }
 0x58e   : > { %4887 = vpush %v3811_v12 }
 0x58f   : > { %4889 = vpush %v3813_v59 }
 0x590   : > { %4891 = vpush %v3887_v1 }
 0x595   : > { %v3889_v11 = vpop.permute.xlu1 %3888 }
 0x596   : > { %4893 = vpush %v3889_v11 }
 0x597   : > { %4895 = vpush %v3891_v31 }
 0x598   : > { %4897 = vpush %v3893_v60 }
 0x59d   : > { %v3967_v33 = vpop.permute.xlu1 %3966 }
 0x59e   : > { %4899 = vpush %v3967_v33 }
 0x59f   : > { %4901 = vpush %v3969_v19  ;;  %s7530_s22 = spop %4863 }
 0x5a0   : > { %4903 = vpush %v3971_v58  ;;  %s7532_s23 = spop %4865  ;;  %v3633_v42 = vstv %s7530_s22 }
 0x5a1   : > { %s4868_s24 = spop %4867  ;;  %v3642_v22 = vmul.f32 %v3633_v42, %v8284_v46  ;;  %v3643_v57 = vmul.f32 %v3633_v42, %v8142_v16  ;;  %v3636_v29 = vstv %s7532_s23 }
 0x5a2   : > { %v3655_v18 = vstv %s4868_s24  ;;  %v3644_v59 = vmul.f32 %v3636_v29, %v8304_v6  ;;  %v7562_v60 = vmul.f32 %v3636_v29, %v5440_v2 }
 0x5a3   : > { %v3666_v21 = vmul.f32 %v3655_v18, %v8140_v55  ;;  %v3667_v34 = vmul.f32 %v3655_v18, %v8281_v53  ;;  %v3668_v9 = vmul.f32 %v3655_v18, %v8282_v63 }
 0x5a5   : > { %v3973_v62 = vpop.permute.xlu1 %3972  ;;  %v3690_v48 = vrot.slane %v3666_v21, 1  ;;  %v3691_v38 = vrot.slane %v3667_v34, 1  ;;  %v3693_v30 = vrot.slane %v3668_v9, 1 }
 0x5a6   : > { %4905 = vpush %v3973_v62 }
 0x5a7   : > { %4907 = vpush %v4047_v39  ;;  %s4870_s25 = spop %4869  ;;  %v3692_v23 = vsel %vm456_vm2, %v3690_v48, %v3691_v38  ;;  %v3694_v45 = vsel %vm456_vm2, %v3691_v38, %v3693_v30 }
 0x5a8   : > { %4909 = vpush %v4049_v36  ;;  %v3658_v17 = vstv %s4870_s25  ;;  %s4872_s26 = spop %4871  ;;  %v3718_v11 = vadd.f32 %v3692_v23, %v3638_v54  ;;  %v7566_v33 = vadd.f32 %v3694_v45, %v3639_v50 }
 0x5a9   : > { %v3669_v61 = vmul.f32 %v3658_v17, %v8157_v10  ;;  %v3670_v7 = vmul.f32 %v3658_v17, %v8280_v44  ;;  %v3661_v13 = vstv %s4872_s26  ;;  %v3671_v47 = vmul.f32 %v3658_v17, %v8283_v20  ;;  %s4874_s27 = spop %4873 }
 0x5aa   : > { %v3672_v8 = vmul.f32 %v3661_v13, %v8284_v46  ;;  %v3673_v41 = vmul.f32 %v3661_v13, %v8142_v16  ;;  %v3664_v43 = vstv %s4874_s27  ;;  %v3674_v40 = vmul.f32 %v3661_v13, %v8234_v35 }
 0x5ab   : > { %v3695_v26 = vrot.slane %v3669_v61, 1  ;;  %v3696_v15 = vrot.slane %v3670_v7, 1  ;;  %v3698_v3 = vrot.slane %v3671_v47, 1  ;;  %v3675_v4 = vmul.f32 %v3664_v43, %v8304_v6 }
 0x5ac   : > { %v3700_v56 = vrot.slane %v3672_v8, 1  ;;  %v3701_v25 = vrot.slane %v3673_v41, 1  ;;  %v3676_v24 = vmul.f32 %v3664_v43, %v5440_v2  ;;  %v3703_v12 = vrot.slane %v3674_v40, 1 }
 0x5ad   : > { %v4051_v14 = vpop.permute.xlu1 %4050  ;;  %v3697_v27 = vsel %vm456_vm2, %v3695_v26, %v3696_v15  ;;  %v3699_v1 = vsel %vm456_vm2, %v3696_v15, %v3698_v3  ;;  %v3677_v31 = vmul.f32 %v3664_v43, %v5426_v49  ;;  %v3705_v62 = vrot.slane %v3675_v4, 1 }
 0x5ae   : > { %4911 = vpush %v4051_v14  ;;  %v7568_v39 = vadd.f32 %v3697_v27, %v3640_v5  ;;  %v3721_v18 = vadd.f32 %v3699_v1, %v3641_v52  ;;  %v3702_v17 = vsel %vm456_vm2, %v3700_v56, %v3701_v25  ;;  %v3706_v37 = vrot.slane %v3676_v24, 1 }
 0x5af   : > { %4913 = vpush %v4053_v32  ;;  %s4876_s28 = spop %4875  ;;  %v3704_v34 = vsel %vm456_vm2, %v3701_v25, %v3703_v12  ;;  %v3708_v9 = vrot.slane %v3677_v31, 1  ;;  %v3722_v38 = vadd.f32 %v3702_v17, %v3642_v22 }
 0x5b0   : > { %v3735_v51 = vstv %s4876_s28  ;;  %s4878_s29 = spop %4877  ;;  %v3723_v30 = vadd.f32 %v3704_v34, %v3643_v57  ;;  %v3707_v8 = vsel %vm456_vm2, %v3705_v62, %v3706_v37  ;;  %s8306_s28 = sld [smem:[#allocation5_spill]] }
 0x5b1   : > { %s4880_s30 = spop %4879  ;;  %v3746_v19 = vmul.f32 %v3735_v51, %v8140_v55  ;;  %v3747_v58 = vmul.f32 %v3735_v51, %v8281_v53  ;;  %v3738_v36 = vstv %s4878_s29  ;;  %v3748_v14 = vmul.f32 %v3735_v51, %v8282_v63 }
 0x5b2   : > { %v3741_v21 = vstv %s4880_s30  ;;  %v3749_v13 = vmul.f32 %v3738_v36, %v8157_v10  ;;  %v3750_v47 = vmul.f32 %v3738_v36, %v8280_v44  ;;  %v3751_v54 = vmul.f32 %v3738_v36, %v8283_v20 }
 0x5b3   : > { %v3770_v61 = vrot.slane %v3746_v19, 2  ;;  %v3771_v7 = vrot.slane %v3747_v58, 2  ;;  %v3752_v0 = vmul.f32 %v3741_v21, %v8284_v46  ;;  %v3753_v42 = vmul.f32 %v3741_v21, %v8142_v16 }
 0x5b4   : > { %v3754_v48 = vmul.f32 %v3741_v21, %v8234_v35  ;;  %v7582_v15 = vsel %vm456_vm2, %v3706_v37, %v3708_v9  ;;  %v3773_v41 = vrot.slane %v3748_v14, 2  ;;  %v3775_v3 = vrot.slane %v3749_v13, 2 }
 0x5b5   : > { %v3772_v5 = vsel %vm533_vm3, %v3770_v61, %v3771_v7  ;;  %v3776_v40 = vrot.slane %v3750_v47, 2  ;;  %v3778_v29 = vrot.slane %v3751_v54, 2  ;;  %v3780_v23 = vrot.slane %v3752_v0, 2 }
 0x5b6   : > { %v3781_v22 = vrot.slane %v3753_v42, 2  ;;  %v3783_v57 = vrot.slane %v3754_v48, 2  ;;  %v3724_v12 = vadd.f32 %v3707_v8, %v3644_v59  ;;  %v3774_v31 = vsel %vm533_vm3, %v3771_v7, %v3773_v41 }
 0x5b7   : > { %s4882_s5 = spop %4881  ;;  %v3798_v19 = vadd.f32 %v3772_v5, %v3718_v11  ;;  %v3777_v62 = vsel %vm533_vm3, %v3775_v3, %v3776_v40  ;;  %v3779_v36 = vsel %vm533_vm3, %v3776_v40, %v3778_v29  ;;  %v3799_v7 = vadd.f32 %v3774_v31, %v7566_v33 }
 0x5b8   : > { %v3744_v32 = vstv %s4882_s5  ;;  %s4884_s4 = spop %4883  ;;  %v3782_v17 = vsel %vm533_vm3, %v3780_v23, %v3781_v22  ;;  %v3784_v37 = vsel %vm533_vm3, %v3781_v22, %v3783_v57  ;;  %v3800_v13 = vadd.f32 %v3777_v62, %v7568_v39  ;;  %s8307_s5 = sld [smem:[#allocation91_spill]] }
 0x5b9   : > { %s4886_s2 = spop %4885  ;;  %v3755_v26 = vmul.f32 %v3744_v32, %v8304_v6  ;;  %v3756_v43 = vmul.f32 %v3744_v32, %v5440_v2  ;;  %v3815_v50 = vstv %s4884_s4  ;;  %v3757_v45 = vmul.f32 %v3744_v32, %v5426_v49 }
 0x5ba   : > { %v3818_v52 = vstv %s4886_s2  ;;  %v3826_v51 = vmul.f32 %v3815_v50, %v8140_v55  ;;  %v3827_v27 = vmul.f32 %v3815_v50, %v8281_v53  ;;  %v3828_v25 = vmul.f32 %v3815_v50, %v8282_v63  ;;  %s4518_s2 = sshll.u32 %s8306_s28, 2 }
 0x5bb   : > { %v3785_v4 = vrot.slane %v3755_v26, 2  ;;  %v3786_v56 = vrot.slane %v3756_v43, 2  ;;  %v3829_v24 = vmul.f32 %v3818_v52, %v8157_v10  ;;  %v3830_v1 = vmul.f32 %v3818_v52, %v8280_v44 }
 0x5bc   : > { %v3831_v58 = vmul.f32 %v3818_v52, %v8283_v20  ;;  %v3788_v21 = vrot.slane %v3757_v45, 2  ;;  %v3850_v34 = vrot.slane %v3826_v51, 3  ;;  %v3851_v9 = vrot.slane %v3827_v27, 3 }
 0x5bd   : > { %v3787_v59 = vsel %vm533_vm3, %v3785_v4, %v3786_v56  ;;  %v3853_v32 = vrot.slane %v3828_v25, 3  ;;  %v3855_v61 = vrot.slane %v3829_v24, 3  ;;  %v3856_v11 = vrot.slane %v3830_v1, 3 }
 0x5be   : > { %v3801_v47 = vadd.f32 %v3779_v36, %v3721_v18  ;;  %v3858_v54 = vrot.slane %v3831_v58, 3  ;;  %v3802_v26 = vadd.f32 %v3782_v17, %v3722_v38  ;;  %v3803_v41 = vadd.f32 %v3784_v37, %v3723_v30 }
 0x5bf   : > { %s4888_s0 = spop %4887  ;;  %v7605_v43 = vsel %vm533_vm3, %v3786_v56, %v3788_v21  ;;  %v7607_v50 = vadd.f32 %v3787_v59, %v3724_v12  ;;  %v3852_v33 = vsel %vm610_vm4, %v3850_v34, %v3851_v9  ;;  %v3854_v39 = vsel %vm610_vm4, %v3851_v9, %v3853_v32 }
 0x5c0   : > { %v3821_v14 = vstv %s4888_s0  ;;  %s4890_s3 = spop %4889  ;;  %v3857_v18 = vsel %vm610_vm4, %v3855_v61, %v3856_v11  ;;  %v3859_v3 = vsel %vm610_vm4, %v3856_v11, %v3858_v54  ;;  %v7622_v57 = vadd.f32 %v3852_v33, %v3798_v19 }
 0x5c1   : > { %s4892_s7 = spop %4891  ;;  %v3832_v0 = vmul.f32 %v3821_v14, %v8284_v46  ;;  %v3833_v42 = vmul.f32 %v3821_v14, %v8142_v16  ;;  %v3834_v48 = vmul.f32 %v3821_v14, %v8234_v35  ;;  %v3824_v8 = vstv %s4890_s3 }
 0x5c2   : > { %v3895_v5 = vstv %s4892_s7  ;;  %v7614_v40 = vmul.f32 %v3824_v8, %v8304_v6  ;;  %v7617_v38 = vmul.f32 %v3824_v8, %v5440_v2  ;;  %v7620_v22 = vmul.f32 %v3824_v8, %v5426_v49  ;;  %s8315_s7 = sld [smem:[#allocation92_spill]] }
 0x5c3   : > { %v3860_v52 = vrot.slane %v3832_v0, 3  ;;  %v3861_v29 = vrot.slane %v3833_v42, 3  ;;  %v3863_v23 = vrot.slane %v3834_v48, 3  ;;  %v7624_v45 = vadd.f32 %v3854_v39, %v3799_v7 }
 0x5c4   : > { %v7626_v4 = vadd.f32 %v3857_v18, %v3800_v13  ;;  %v3906_v51 = vmul.f32 %v3895_v5, %v8140_v55  ;;  %v3907_v27 = vmul.f32 %v3895_v5, %v8281_v53  ;;  %v3881_v1 = vadd.f32 %v3859_v3, %v3801_v47 }
 0x5c5   : > { %v3865_v12 = vrot.slane %v7614_v40, 3  ;;  %v3866_v31 = vrot.slane %v7617_v38, 3  ;;  %v3862_v58 = vsel %vm610_vm4, %v3860_v52, %v3861_v29  ;;  %v3864_v62 = vsel %vm610_vm4, %v3861_v29, %v3863_v23 }
 0x5c6   : > { %v3868_v36 = vrot.slane %v7620_v22, 3  ;;  %v3908_v17 = vmul.f32 %v3895_v5, %v8282_v63  ;;  %v3930_v37 = vrot.slane %v3906_v51, 4  ;;  %v3931_v14 = vrot.slane %v3907_v27, 4 }
 0x5c7   : > { %s4894_s17 = spop %4893  ;;  %v3882_v11 = vadd.f32 %v3862_v58, %v3802_v26  ;;  %v7650_v8 = vadd.f32 %v3864_v62, %v3803_v41  ;;  %v4994_v23 = vmov 0  }
 0x5c8   : > { %v3898_v30 = vstv %s4894_s17  ;;  %s4896_s18 = spop %4895  ;;  %v3932_v18 = vsel %vm687_vm5, %v3930_v37, %v3931_v14  ;;  %v3933_v5 = vrot.slane %v3908_v17, 4  ;;  %4947 = vset.pattern.permute.xlu0 %v4994_v23  ;;  %4948 = vset.pattern.permute.xlu1 %v4994_v23  ;;  %s301_s17 = scalar_lea.vmem %s8315_s7, %s4518_s2 }
 0x5c9   : > { %s4898_s15 = spop %4897  ;;  %v3909_v56 = vmul.f32 %v3898_v30, %v8157_v10  ;;  %v3910_v25 = vmul.f32 %v3898_v30, %v8280_v44  ;;  %v3901_v24 = vstv %s4896_s18  ;;  %v3911_v19 = vmul.f32 %v3898_v30, %v8283_v20  ;;  %4949 = vset.pattern.permute.xlu2 %v4994_v23 }
 0x5ca   : > { %v3912_v21 = vmul.f32 %v3901_v24, %v8284_v46  ;;  %v3913_v34 = vmul.f32 %v3901_v24, %v8142_v16  ;;  %v3914_v13 = vmul.f32 %v3901_v24, %v8234_v35  ;;  %v7642_v47 = vstv %s4898_s15 }
 0x5cb   : > { %v3935_v59 = vrot.slane %v3909_v56, 4  ;;  %v3936_v32 = vrot.slane %v3910_v25, 4  ;;  %v3938_v7 = vrot.slane %v3911_v19, 4  ;;  %v7660_v29 = vmul.f32 %v7642_v47, %v8304_v6 }
 0x5cc   : > { %v3940_v33 = vrot.slane %v3912_v21, 4  ;;  %v3941_v39 = vrot.slane %v3913_v34, 4  ;;  %v3943_v52 = vrot.slane %v3914_v13, 4  ;;  %v7666_v19 = vmul.f32 %v7642_v47, %v5440_v2 }
 0x5cd   : > { %v3937_v3 = vsel %vm687_vm5, %v3935_v59, %v3936_v32  ;;  %v3939_v30 = vsel %vm687_vm5, %v3936_v32, %v3938_v7  ;;  %v7669_v17 = vsel %vm687_vm5, %v3931_v14, %v3933_v5  ;;  %v3958_v37 = vadd.f32 %v3932_v18, %v7622_v57 }
 0x5ce   : > { %v3942_v24 = vsel %vm687_vm5, %v3940_v33, %v3941_v39  ;;  %v3960_v59 = vadd.f32 %v3937_v3, %v7626_v4  ;;  %v3961_v32 = vadd.f32 %v3939_v30, %v3881_v1  ;;  %v3946_v4 = vrot.slane %v7666_v19, 4  ;;  %v4950_v19 = vld [vmem:[%s8305_s11 + $0x1] ss:$0 sm:$0xff] }
 0x5cf   : > { %s4900_s12 = spop %4899  ;;  %v3962_v13 = vadd.f32 %v3942_v24, %v3882_v11 }
 0x5d0   : > { %s4902_s13 = spop %4901  ;;  %v3975_v9 = vstv %s4900_s12 }
 0x5d1   : > { %v3978_v61 = vstv %s4902_s13  ;;  %v3986_v54 = vmul.f32 %v3975_v9, %v8140_v55  ;;  %v7646_v0 = vmul.f32 %v3975_v9, %v8281_v53  ;;  %s4904_s6 = spop %4903  ;;  %v3988_v1 = vmul.f32 %v3975_v9, %v8282_v63 }
 0x5d2   : > { %v3989_v42 = vmul.f32 %v3978_v61, %v8157_v10  ;;  %v3990_v48 = vmul.f32 %v3978_v61, %v8280_v44  ;;  %v3991_v26 = vmul.f32 %v3978_v61, %v8283_v20  ;;  %v3981_v41 = vstv %s4904_s6 }
 0x5d3   : > { %v4010_v51 = vrot.slane %v3986_v54, 5  ;;  %v4011_v27 = vrot.slane %v7646_v0, 5  ;;  %v3992_v21 = vmul.f32 %v3981_v41, %v8284_v46  ;;  %v3993_v34 = vmul.f32 %v3981_v41, %v8142_v16 }
 0x5d4   : > { %v4015_v56 = vrot.slane %v3989_v42, 5  ;;  %v4016_v25 = vrot.slane %v3990_v48, 5  ;;  %v4018_v58 = vrot.slane %v3991_v26, 5  ;;  %v3944_v61 = vsel %vm687_vm5, %v3941_v39, %v3943_v52 }
 0x5d5   : > { %v4012_v54 = vsel %vm764_vm6, %v4010_v51, %v4011_v27  ;;  %v3945_v42 = vrot.slane %v7660_v29, 4  ;;  %v4020_v11 = vrot.slane %v3992_v21, 5  ;;  %v4021_v48 = vrot.slane %v3993_v34, 5 }
 0x5d6   : > { %v4017_v14 = vsel %vm764_vm6, %v4015_v56, %v4016_v25  ;;  %v4038_v26 = vadd.f32 %v4012_v54, %v3958_v37  ;;  %v3994_v30 = vmul.f32 %v3981_v41, %v8234_v35  ;;  %v4013_v54 = vrot.slane %v3988_v1, 5 }
 0x5d7   : > { %s7655_s14 = spop %4905  ;;  %v4040_v18 = vadd.f32 %v4017_v14, %v3960_v59  ;;  %v3963_v1 = vadd.f32 %v3944_v61, %v7650_v8 }
 0x5d8   : > { %s4908_s19 = spop %4907  ;;  %v3984_v52 = vstv %s7655_s14 }
 0x5d9   : > { %v4055_v62 = vstv %s4908_s19  ;;  %s4910_s20 = spop %4909 }
 0x5da   : > { %v4066_v7 = vmul.f32 %v4055_v62, %v8140_v55  ;;  %v7682_v57 = vmul.f32 %v4055_v62, %v8281_v53  ;;  %v4019_v55 = vsel %vm764_vm6, %v4016_v25, %v4018_v58  ;;  %v4058_v53 = vstv %s4910_s20 }
 0x5db   : > { %v4041_v3 = vadd.f32 %v4019_v55, %v3961_v32  ;;  %v4069_v9 = vmul.f32 %v4058_v53, %v8157_v10  ;;  %v4070_v23 = vmul.f32 %v4058_v53, %v8280_v44  ;;  %v4071_v51 = vmul.f32 %v4058_v53, %v8283_v20 }
 0x5dc   : > { %v4090_v33 = vrot.slane %v4066_v7, 6  ;;  %v4091_v39 = vrot.slane %v7682_v57, 6  ;;  %v4022_v25 = vsel %vm764_vm6, %v4020_v11, %v4021_v48  ;;  %v4023_v32 = vrot.slane %v3994_v30, 5 }
 0x5dd   : > { %v4095_v41 = vrot.slane %v4069_v9, 6  ;;  %v4096_v21 = vrot.slane %v4070_v23, 6  ;;  %v4098_v34 = vrot.slane %v4071_v51, 6  ;;  %v4068_v10 = vmul.f32 %v4055_v62, %v8282_v63 }
 0x5de   : > { %v4092_v29 = vsel %vm841_vm7, %v4090_v33, %v4091_v39  ;;  %v3995_v20 = vmul.f32 %v3984_v52, %v8304_v6  ;;  %v4042_v14 = vadd.f32 %v4022_v25, %v3962_v13  ;;  %v4024_v53 = vsel %vm764_vm6, %v4021_v48, %v4023_v32 }
 0x5df   : > { %s4912_s21 = spop %4911  ;;  %v4118_v37 = vadd.f32 %v4092_v29, %v4038_v26  ;;  %v3917_v26 = vmul.f32 %v7642_v47, %v5426_v49  ;;  %v3867_v13 = vsel %vm610_vm4, %v3865_v12, %v3866_v31  ;;  %v4014_v47 = vsel %vm764_vm6, %v4011_v27, %v4013_v54 }
 0x5e0   : > { %v4061_v5 = vstv %s4912_s21  ;;  %s4914_s9 = spop %4913  ;;  %v3997_v48 = vmul.f32 %v3984_v52, %v5426_v49  ;;  %v3947_v12 = vsel %vm687_vm5, %v3945_v42, %v3946_v4  ;;  %v4043_v8 = vadd.f32 %v4024_v53, %v3963_v1 }
 0x5e1   : > { %v4072_v56 = vmul.f32 %v4061_v5, %v8284_v46  ;;  %v4073_v24 = vmul.f32 %v4061_v5, %v8142_v16  ;;  %v4074_v58 = vmul.f32 %v4061_v5, %v8234_v35  ;;  %v4064_v7 = vstv %s4914_s9  ;;  %4134 = vrot.lane.b32.xlu1 %v4118_v37, %s4993_s8  ;;  %v4952_v37 = vld [vmem:[%s8305_s11] ss:$0 sm:$0xff] }
 0x5e2   : > { %v3996_v46 = vmul.f32 %v3984_v52, %v5440_v2  ;;  %v4097_v16 = vsel %vm841_vm7, %v4095_v41, %v4096_v21  ;;  %v4099_v35 = vsel %vm841_vm7, %v4096_v21, %v4098_v34  ;;  %v4075_v11 = vmul.f32 %v4064_v7, %v8304_v6  ;;  %v4953_v41 = vld [vmem:[%s8305_s11 + $0x3] ss:$0 sm:$0xff]  ;;  %v3593_v21 = vpop.permute.xlu2 %3592 }
 0x5e3   : > { %v4100_v59 = vrot.slane %v4072_v56, 6  ;;  %v4101_v44 = vrot.slane %v4073_v24, 6  ;;  %v4103_v55 = vrot.slane %v4074_v58, 6  ;;  %v4076_v63 = vmul.f32 %v4064_v7, %v5440_v2  ;;  %v4951_v58 = vld [vmem:[%s8305_s11 + $0x2] ss:$0 sm:$0xff] }
 0x5e4   : > { %v4121_v62 = vadd.f32 %v4099_v35, %v4041_v3  ;;  %v4120_v33 = vadd.f32 %v4097_v16, %v4040_v18  ;;  %v4093_v5 = vrot.slane %v4068_v10, 6  ;;  %v4025_v6 = vrot.slane %v3995_v20, 5  ;;  %v3591_v10 = vpop.permute.xlu1 %3590 }
 0x5e5   : > { %v4102_v57 = vsel %vm841_vm7, %v4100_v59, %v4101_v44  ;;  %v4026_v29 = vrot.slane %v3996_v46, 5  ;;  %v3959_v2 = vadd.f32 %v7669_v17, %v7624_v45  ;;  %v4104_v40 = vsel %vm841_vm7, %v4101_v44, %v4103_v55  ;;  %v3589_v59 = vpop.permute.xlu0 %3588 }
 0x5e6   : > { %v4122_v30 = vadd.f32 %v4102_v57, %v4042_v14  ;;  %4140 = vrot.lane.b32.xlu0 %v4121_v62, %s4993_s8  ;;  %4138 = vrot.lane.b32.xlu2 %v4120_v33, %s4993_s8  ;;  %v4105_v61 = vrot.slane %v4075_v11, 6  ;;  %v4106_v18 = vrot.slane %v4076_v63, 6  ;;  %v3884_v3 = vadd.f32 %v3867_v13, %v7607_v50  ;;  %v8308_v63 = vld [vmem:[#allocation47_spill] sm:$0xff] }
 0x5e7   : > { %v3948_v9 = vrot.slane %v3917_v26, 4  ;;  %v4094_v45 = vsel %vm841_vm7, %v4091_v39, %v4093_v5  ;;  %v4077_v0 = vmul.f32 %v4064_v7, %v5426_v49  ;;  %v3725_v27 = vadd.f32 %v7582_v15, %v7562_v60  ;;  %v8309_v5 = vld [vmem:[#allocation27_spill] sm:$0xff]  ;;  %v8310_v13 = vld [vmem:[#allocation63_spill] sm:$0xff] }
 0x5e8   : > { %v4039_v17 = vadd.f32 %v4014_v47, %v3959_v2  ;;  %v4027_v52 = vsel %vm764_vm6, %v4025_v6, %v4026_v29  ;;  %v4123_v23 = vadd.f32 %v4104_v40, %v4043_v8  ;;  %v3869_v50 = vsel %vm610_vm4, %v3866_v31, %v3868_v36  ;;  %v8311_v2 = vld [vmem:[#allocation55_spill] sm:$0xff] }
 0x5e9   : > { %4142 = vrot.lane.b32.xlu1 %v4122_v30, %s4993_s8  ;;  %v3964_v42 = vadd.f32 %v3947_v12, %v3884_v3  ;;  %v4028_v51 = vrot.slane %v3997_v48, 5  ;;  %v3805_v39 = vadd.f32 %v7605_v43, %v3725_v27  ;;  %v4107_v49 = vsel %vm841_vm7, %v4105_v61, %v4106_v18  ;;  %v8312_v48 = vld [vmem:[#allocation29_spill] sm:$0xff] }
 0x5ea   : > { %v4119_v56 = vadd.f32 %v4094_v45, %v4039_v17  ;;  %v3949_v60 = vsel %vm687_vm5, %v3946_v4, %v3948_v9  ;;  %v4108_v25 = vrot.slane %v4077_v0, 6  ;;  %v3599_v34 = vpop.permute.xlu2 %3598  ;;  %v3611_v62 = vadd.f32 %v3589_v59, %v8308_v63 }
 0x5eb   : > { %v4044_v15 = vadd.f32 %v4027_v52, %v3964_v42  ;;  %v3885_v24 = vadd.f32 %v3869_v50, %v3805_v39  ;;  %v4029_v38 = vsel %vm764_vm6, %v4026_v29, %v4028_v51  ;;  %v3613_v30 = vadd.f32 %v3593_v21, %v8309_v5  ;;  %v8313_v51 = vld [vmem:[#allocation50_spill] sm:$0xff] }
 0x5ec   : > { %v4109_v43 = vsel %vm841_vm7, %v4106_v18, %v4108_v25  ;;  %v3597_v20 = vpop.permute.xlu1 %3596  ;;  %v3612_v1 = vadd.f32 %v3591_v10, %v8310_v13  ;;  %v3616_v39 = vadd.f32 %v3599_v34, %v8313_v51 }
 0x5ed   : > { %v4124_v22 = vadd.f32 %v4107_v49, %v4044_v15  ;;  %v3965_v31 = vadd.f32 %v3949_v60, %v3885_v24  ;;  %v3595_v44 = vpop.permute.xlu0 %3594  ;;  %v3615_v40 = vadd.f32 %v3597_v20, %v8312_v48  ;;  %v8314_v49 = vld [vmem:[#allocation28_spill] sm:$0xff] }
 0x5ee   : > { %4136 = vrot.lane.b32.xlu0 %v4119_v56, %s4993_s8  ;;  %4144 = vrot.lane.b32.xlu2 %v4123_v23, %s4993_s8  ;;  %v3614_v47 = vadd.f32 %v3595_v44, %v8311_v2 }
 0x5ef   : > { %v4045_v36 = vadd.f32 %v4029_v38, %v3965_v31 }
 0x5f1   : > { %4146 = vrot.lane.b32.xlu1 %v4124_v22, %s4993_s8  ;;  %v4125_v4 = vadd.f32 %v4109_v43, %v4045_v36 }
 0x5f5   : > { %v3601_v46 = vpop.permute.xlu0 %3600 }
 0x5f6   : > { %4183 = vperm.xlu0 %4947, %v4950_v19   ;;  %4148 = vrot.lane.b32.xlu2 %v4125_v4, %s4993_s8  ;;  %s4521_s8 = sshll.u32 %s8306_s28, 6  ;;  %v3617_v56 = vadd.f32 %v3601_v46, %v8314_v49 }
 0x5f7   : > { %s7769_s4 = scalar_lea.vmem %s8307_s5, %s4521_s8 }
 0x5f9   : > { %4187 = vperm.xlu1 %4948, %v4951_v58  }
 0x5fe   : > { %4179 = vperm.xlu2 %4949, %v4952_v37  }
 0x601   : > { %4191 = vperm.xlu1 %4948, %v4953_v41  }
 0x640   : > { %v4139_v32 = vpop.permute.xlu2 %4138 }
 0x641   : > { %v4160_v6 = vadd.f32 %v4139_v32, %v3612_v1 }
 0x648   : > { %v4145_v7 = vpop.permute.xlu2 %4144 }
 0x649   : > { %v4163_v18 = vadd.f32 %v4145_v7, %v3615_v40 }
 0x650   : > { %v4149_v16 = vpop.permute.xlu2 %4148 }
 0x651   : > { %v4165_v15 = vadd.f32 %v4149_v16, %v3617_v56 }
 0x653   : > { %v4135_v35 = vpop.permute.xlu1 %4134 }
 0x654   : > { %v4158_v54 = vadd.f32 %v4135_v35, %v7524_v28 }
 0x658   : > { %v4141_v14 = vpop.permute.xlu0 %4140  ;;  %v4180_v57 = vpop.permute.xlu2 %4179 }
 0x659   : > { %v4194_v55 = vadd.f32 %v4180_v57, %v4158_v54  ;;  %v4161_v29 = vadd.f32 %v4141_v14, %v3613_v30 }
 0x65b   : > { %4203 = vst.msk [vmem:[%s7769_s4] sm:$0xff] %vm4202_vm8, %v4194_v55  ;;  %v4143_v11 = vpop.permute.xlu1 %4142  ;;  %v4211_v36 = vsel %vm4202_vm8, %v4194_v55, 0.0  ;;  %v4263_v37 = vmul.f32 %v4194_v55, %v4194_v55 }
 0x65c   : > { %v4162_v3 = vadd.f32 %v4143_v11, %v3614_v47 }
 0x65d   : > { %v4271_v34 = vsel %vm4202_vm8, %v4263_v37, 0.0 }
 0x660   : > { %v4137_v33 = vpop.permute.xlu0 %4136 }
 0x661   : > { %v4159_v28 = vadd.f32 %v4137_v33, %v3611_v62 }
 0x663   : > { %v7774_v26 = vadd.f32 %v4180_v57, %v4159_v28  ;;  %v4147_v53 = vpop.permute.xlu1 %4146 }
 0x664   : > { %v4164_v25 = vadd.f32 %v4147_v53, %v3616_v39 }
 0x665   : > { %4204 = vst.msk [vmem:[%s7769_s4 + $0x8] sm:$0xff] %vm4202_vm8, %v7774_v26  ;;  %v4214_v4 = vsel %vm4202_vm8, %v7774_v26, 0.0  ;;  %v4264_v20 = vmul.f32 %v7774_v26, %v7774_v26 }
 0x667   : > { %v4274_v46 = vsel %vm4202_vm8, %v4264_v20, 0.0 }
 0x668   : > { %v4184_v12 = vpop.permute.xlu0 %4183 }
 0x669   : > { %v4196_v8 = vadd.f32 %v4184_v12, %v4160_v6  ;;  %v4197_v61 = vadd.f32 %v4184_v12, %v4161_v29 }
 0x66b   : > { %4205 = vst.msk [vmem:[%s7769_s4 + $0x10] sm:$0xff] %vm4202_vm8, %v4196_v8  ;;  %v4220_v9 = vsel %vm4202_vm8, %v4197_v61, 0.0  ;;  %v4217_v45 = vsel %vm4202_vm8, %v4196_v8, 0.0  ;;  %v4265_v0 = vmul.f32 %v4196_v8, %v4196_v8  ;;  %v4188_v27 = vpop.permute.xlu1 %4187  ;;  %v4266_v50 = vmul.f32 %v4197_v61, %v4197_v61 }
 0x66c   : > { %4206 = vst.msk [vmem:[%s7769_s4 + $0x18] sm:$0xff] %vm4202_vm8, %v4197_v61  ;;  %4221 = vadd.xlane.f32.xlu0 %v4220_v9  ;;  %4218 = vadd.xlane.f32.xlu2 %v4217_v45  ;;  %v4198_v17 = vadd.f32 %v4188_v27, %v4162_v3  ;;  %v4199_v52 = vadd.f32 %v4188_v27, %v4163_v18 }
 0x66d   : > { %v4277_v23 = vsel %vm4202_vm8, %v4265_v0, 0.0  ;;  %v4280_v24 = vsel %vm4202_vm8, %v4266_v50, 0.0 }
 0x66e   : > { %4278 = vadd.xlane.f32.xlu1 %v4277_v23  ;;  %4207 = vst.msk [vmem:[%s7769_s4 + $0x20] sm:$0xff] %vm4202_vm8, %v4198_v17  ;;  %v4267_v42 = vmul.f32 %v4198_v17, %v4198_v17  ;;  %v4226_v60 = vsel %vm4202_vm8, %v4199_v52, 0.0  ;;  %v4223_v19 = vsel %vm4202_vm8, %v4198_v17, 0.0  ;;  %v4268_v58 = vmul.f32 %v4199_v52, %v4199_v52 }
 0x66f   : > { %4208 = vst.msk [vmem:[%s7769_s4 + $0x28] sm:$0xff] %vm4202_vm8, %v4199_v52 }
 0x670   : > { %v4283_v38 = vsel %vm4202_vm8, %v4267_v42, 0.0  ;;  %v4286_v21 = vsel %vm4202_vm8, %v4268_v58, 0.0 }
 0x673   : > { %v4192_v22 = vpop.permute.xlu1 %4191 }
 0x674   : > { %4227 = vadd.xlane.f32.xlu0 %v4226_v60  ;;  %4281 = vadd.xlane.f32.xlu2 %v4280_v24  ;;  %v4200_v31 = vadd.f32 %v4192_v22, %v4164_v25  ;;  %v4201_v43 = vadd.f32 %v4192_v22, %v4165_v15 }
 0x676   : > { %4284 = vadd.xlane.f32.xlu1 %v4283_v38  ;;  %4209 = vst.msk [vmem:[%s7769_s4 + $0x30] sm:$0xff] %vm4202_vm8, %v4200_v31  ;;  %v4232_v41 = vsel %vm4202_vm8, %v4201_v43, 0.0  ;;  %v4269_v59 = vmul.f32 %v4200_v31, %v4200_v31  ;;  %v4270_v32 = vmul.f32 %v4201_v43, %v4201_v43  ;;  %v4229_v44 = vsel %vm4202_vm8, %v4200_v31, 0.0 }
 0x677   : > { %4210 = vst.msk [vmem:[%s7769_s4 + $0x38] sm:$0xff] %vm4202_vm8, %v4201_v43 }
 0x678   : > { %v4289_v10 = vsel %vm4202_vm8, %v4269_v59, 0.0  ;;  %v4292_v7 = vsel %vm4202_vm8, %v4270_v32, 0.0 }
 0x67c   : > { %4212 = vadd.xlane.f32.xlu0 %v4211_v36  ;;  %4224 = vadd.xlane.f32.xlu2 %v4223_v19 }
 0x67e   : > { %4215 = vadd.xlane.f32.xlu1 %v4214_v4 }
 0x684   : > { %4233 = vadd.xlane.f32.xlu0 %v4232_v41  ;;  %4287 = vadd.xlane.f32.xlu2 %v4286_v21 }
 0x686   : > { %4272 = vadd.xlane.f32.xlu1 %v4271_v34 }
 0x68c   : > { %4290 = vadd.xlane.f32.xlu0 %v4289_v10  ;;  %4230 = vadd.xlane.f32.xlu2 %v4229_v44 }
 0x68e   : > { %4293 = vadd.xlane.f32.xlu1 %v4292_v7 }
 0x694   : > { %4275 = vadd.xlane.f32.xlu2 %v4274_v46 }
 0x6df   : > { %v4222_v16 = vpop.xlane.xlu0 %4221  ;;  %v4219_v35 = vpop.xlane.xlu2 %4218 }
 0x6e0   : > { %v4242_v5 = vadd.f32 %v4222_v16, %v4219_v35 }
 0x6e1   : > { %v4279_v54 = vpop.xlane.xlu1 %4278 }
 0x6e2   : > { %v4243_v29 = vrot.slane %v4242_v5, 4 }
 0x6e4   : > { %v4244_v8 = vadd.f32 %v4243_v29, %v4242_v5 }
 0x6e6   : > { %v4245_v23 = vrot.slane %v4244_v8, 2 }
 0x6e7   : > { %v4228_v14 = vpop.xlane.xlu0 %4227  ;;  %v4282_v57 = vpop.xlane.xlu2 %4281 }
 0x6e8   : > { %v4302_v33 = vadd.f32 %v4282_v57, %v4279_v54  ;;  %v4246_v24 = vadd.f32 %v4245_v23, %v4244_v8 }
 0x6e9   : > { %v4285_v55 = vpop.xlane.xlu1 %4284 }
 0x6ea   : > { %v4303_v26 = vrot.slane %v4302_v33, 4  ;;  %v4247_v41 = vrot.slane %v4246_v24, 1 }
 0x6ec   : > { %v4304_v48 = vadd.f32 %v4303_v26, %v4302_v33  ;;  %v4248_v46 = vadd.f32 %v4247_v41, %v4246_v24 }
 0x6ee   : > { %v4305_v0 = vrot.slane %v4304_v48, 2 }
 0x6ef   : > { %v4213_v11 = vpop.xlane.xlu0 %4212  ;;  %v4225_v63 = vpop.xlane.xlu2 %4224 }
 0x6f0   : > { %v4249_v13 = vadd.f32 %v4228_v14, %v4225_v63  ;;  %v4306_v49 = vadd.f32 %v4305_v0, %v4304_v48 }
 0x6f1   : > { %v4216_v62 = vpop.xlane.xlu1 %4215 }
 0x6f2   : > { %v4235_v2 = vadd.f32 %v4216_v62, %v4213_v11  ;;  %v4250_v47 = vrot.slane %v4249_v13, 4  ;;  %v4307_v36 = vrot.slane %v4306_v49, 1 }
 0x6f4   : > { %v4236_v61 = vrot.slane %v4235_v2, 4  ;;  %v4251_v3 = vadd.f32 %v4250_v47, %v4249_v13  ;;  %v4308_v10 = vadd.f32 %v4307_v36, %v4306_v49 }
 0x6f6   : > { %v4237_v50 = vadd.f32 %v4236_v61, %v4235_v2  ;;  %v4252_v39 = vrot.slane %v4251_v3, 2  ;;  %v4325_v57 = vsel %vm4323_vm9, %v4248_v46, %v4308_v10 }
 0x6f7   : > { %v4234_v28 = vpop.xlane.xlu0 %4233  ;;  %v4288_v53 = vpop.xlane.xlu2 %4287 }
 0x6f8   : > { %v4309_v30 = vadd.f32 %v4288_v53, %v4285_v55  ;;  %v4238_v38 = vrot.slane %v4237_v50, 2  ;;  %v4253_v43 = vadd.f32 %v4252_v39, %v4251_v3  ;;  %v4332_v53 = vrot.slane %v4325_v57, 7 }
 0x6f9   : > { %v4273_v1 = vpop.xlane.xlu1 %4272 }
 0x6fa   : > { %v4310_v6 = vrot.slane %v4309_v30, 4  ;;  %v4239_v21 = vadd.f32 %v4238_v38, %v4237_v50  ;;  %v4254_v32 = vrot.slane %v4253_v43, 1 }
 0x6fc   : > { %v4311_v40 = vadd.f32 %v4310_v6, %v4309_v30  ;;  %v4240_v16 = vrot.slane %v4239_v21, 1  ;;  %v4255_v14 = vadd.f32 %v4254_v32, %v4253_v43 }
 0x6fe   : > { %v4312_v52 = vrot.slane %v4311_v40, 2  ;;  %v4241_v62 = vadd.f32 %v4240_v16, %v4239_v21 }
 0x6ff   : > { %v4231_v12 = vpop.xlane.xlu2 %4230  ;;  %v4291_v9 = vpop.xlane.xlu0 %4290 }
 0x700   : > { %v4256_v18 = vadd.f32 %v4234_v28, %v4231_v12  ;;  %v4313_v15 = vadd.f32 %v4312_v52, %v4311_v40 }
 0x701   : > { %v4294_v45 = vpop.xlane.xlu1 %4293 }
 0x702   : > { %v4257_v27 = vrot.slane %v4256_v18, 4  ;;  %v4316_v17 = vadd.f32 %v4294_v45, %v4291_v9  ;;  %v4314_v37 = vrot.slane %v4313_v15, 1 }
 0x704   : > { %v4258_v42 = vadd.f32 %v4257_v27, %v4256_v18  ;;  %v4317_v51 = vrot.slane %v4316_v17, 4  ;;  %v4315_v20 = vadd.f32 %v4314_v37, %v4313_v15 }
 0x706   : > { %v4259_v56 = vrot.slane %v4258_v42, 2  ;;  %v4318_v60 = vadd.f32 %v4317_v51, %v4316_v17  ;;  %v4326_v63 = vsel %vm4323_vm9, %v4255_v14, %v4315_v20 }
 0x707   : > { %v4276_v25 = vpop.xlane.xlu2 %4275  ;;  %v4335_v5 = vrot.slane %v4326_v63, 6 }
 0x708   : > { %v4319_v22 = vrot.slane %v4318_v60, 2  ;;  %v4295_v31 = vadd.f32 %v4276_v25, %v4273_v1  ;;  %v4260_v19 = vadd.f32 %v4259_v56, %v4258_v42 }
 0x70a   : > { %v4320_v4 = vadd.f32 %v4319_v22, %v4318_v60  ;;  %v4296_v58 = vrot.slane %v4295_v31, 4  ;;  %v4261_v44 = vrot.slane %v4260_v19, 1 }
 0x70c   : > { %v4321_v34 = vrot.slane %v4320_v4, 1  ;;  %v4297_v59 = vadd.f32 %v4296_v58, %v4295_v31  ;;  %v4262_v55 = vadd.f32 %v4261_v44, %v4260_v19 }
 0x70e   : > { %v4298_v7 = vrot.slane %v4297_v59, 2  ;;  %v4322_v35 = vadd.f32 %v4321_v34, %v4320_v4 }
 0x710   : > { %v4299_v54 = vadd.f32 %v4298_v7, %v4297_v59  ;;  %v4327_v33 = vsel %vm4323_vm9, %v4262_v55, %v4322_v35 }
 0x711   : > { %v4338_v13 = vrot.slane %v4327_v33, 5 }
 0x712   : > { %v4300_v11 = vrot.slane %v4299_v54, 1 }
 0x714   : > { %v4301_v28 = vadd.f32 %v4300_v11, %v4299_v54 }
 0x716   : > { %v4324_v30 = vsel %vm4323_vm9, %v4241_v62, %v4301_v28 }
 0x717   : > { %v4334_v1 = vsel %vm4333_vm10, %v4332_v53, %v4324_v30 }
 0x718   : > { %v4337_v26 = vsel %vm4336_vm11, %v4335_v5, %v4334_v1 }
 0x719   : > { %v4340_v6 = vsel %vm4339_vm12, %v4338_v13, %v4337_v26 }
 0x71a   : > { %4343 = vst.msk [vmem:[%s301_s17] sm:$0xf] %vm4342_vm13, %v4340_v6 }
 0x71b PF: > { %s8316_s18 = sld [smem:[#allocation3_spill]] }
 0x71c   : > { %s8317_s15 = sld [smem:[#allocation2_spill]] }
 0x71d   : > { %s8318_s16 = sld [smem:[#allocation4_spill]] }
 0x721   : > { %s15_s17 = sadd.s32 1, %s8316_s18  }
 0x722   : > { %p12_p5 = scmp.ge.s32.totalorder %s15_s17, 4  }
 0x724   :  { %14 = sbr.rel (!%p12_p5) target bundleno = 5 (0x5), region = 80 }

</bundles_post_ra>
